<compile_context>
chip_gen: v6e
topology: v6e:2x2x1
jax: 0.10.0
libtpu: 0.0.40
codegen_flags: <defaults>
</compile_context>

<pallas_src>
import functools

import jax
import jax.numpy as jnp
from jax import lax
from jax.experimental import pallas as pl
from jax.experimental.pallas import tpu as pltpu

_EPS = 1e-12
_VMEM_LIMIT = 32 * 1024 * 1024


def _ln(x, g, b, eps=_EPS):
    mu = jnp.mean(x, axis=-1, keepdims=True)
    c = x - mu
    var = jnp.mean(c * c, axis=-1, keepdims=True)
    return c * lax.rsqrt(var + eps) * g + b


# --------------------------------------------------------------------------
# Fused item-encoding kernel: ctx @ W + item_emb + pos_emb -> LN -> * mask
# --------------------------------------------------------------------------

def _item_enc_kernel(emb_ref, cxt_ref, mask_ref, pos_ref, w_ref, b_ref,
                     g_ref, be_ref, o_ref):
    x = emb_ref[...] + pos_ref[...]
    x = x + jnp.dot(cxt_ref[...], w_ref[...],
                    preferred_element_type=jnp.float32) + b_ref[...]
    x = _ln(x, g_ref[...], be_ref[...])
    o_ref[...] = x * mask_ref[...]


def item_encoding(params, seq, seqcxt, mask):
    B, L = seq.shape
    D = params["item_emb"].shape[1]
    CXT = seqcxt.shape[-1]
    # Embedding gather stays in XLA (tiny table); everything else is fused in the kernel.
    emb = jnp.take(params["item_emb"], seq, axis=0)            # (B, L, D)
    pos = params["pos_emb"][:L]                                # (L, D)
    row = lambda a: a.reshape(1, -1)
    return pl.pallas_call(
        _item_enc_kernel,
        out_shape=jax.ShapeDtypeStruct((B, L, D), jnp.float32),
        grid=(B,),
        in_specs=[
            pl.BlockSpec((None, L, D), lambda b: (b, 0, 0)),
            pl.BlockSpec((None, L, CXT), lambda b: (b, 0, 0)),
            pl.BlockSpec((None, L, 1), lambda b: (b, 0, 0)),
            pl.BlockSpec((L, D), lambda b: (0, 0)),
            pl.BlockSpec((CXT, D), lambda b: (0, 0)),
            pl.BlockSpec((1, D), lambda b: (0, 0)),
            pl.BlockSpec((1, D), lambda b: (0, 0)),
            pl.BlockSpec((1, D), lambda b: (0, 0)),
        ],
        out_specs=pl.BlockSpec((None, L, D), lambda b: (b, 0, 0)),
        compiler_params=pltpu.CompilerParams(
            dimension_semantics=("parallel",),
            vmem_limit_bytes=_VMEM_LIMIT),
    )(emb, seqcxt, mask[..., None], pos,
      params["cxt_proj"]["w"], row(params["cxt_proj"]["b"]),
      row(params["enc_ln"]["g"]), row(params["enc_ln"]["b"]))


# --------------------------------------------------------------------------
# Fused transformer-block kernel (MHA + FFN + LNs + mask + score head)
# --------------------------------------------------------------------------

def _block_kernel(xq_ref, xkv_ref, kvm_ref, qm_ref,
                  wq_ref, bq_ref, wk_ref, bk_ref, wv_ref, bv_ref,
                  wo_ref, bo_ref, ln1g_ref, ln1b_ref,
                  w1_ref, b1_ref, w2_ref, b2_ref, ln2g_ref, ln2b_ref,
                  fing_ref, finb_ref, ws_ref, bs_ref,
                  y_ref, sc_ref,
                  *, H, scale, apply_mask, apply_final_ln):
    x_q = xq_ref[...]                                    # (Lq, D)
    x_kv = xkv_ref[...]                                  # (Lk, D)
    D = x_q.shape[-1]
    dh = D // H

    # QKV projections (lane-dense, full-D tiles)
    q = jnp.dot(x_q, wq_ref[...], preferred_element_type=jnp.float32) + bq_ref[...]
    k = jnp.dot(x_kv, wk_ref[...], preferred_element_type=jnp.float32) + bk_ref[...]
    v = jnp.dot(x_kv, wv_ref[...], preferred_element_type=jnp.float32) + bv_ref[...]

    # Additive key-padding bias computed in-kernel from the (1, Lk) mask.
    bias = jnp.where(kvm_ref[...] > 0.0, 0.0, -1e9)      # (1, Lk)

    # Heads separated via iota column masks (keeps every op full-D / lane-aligned).
    col = lax.broadcasted_iota(jnp.int32, (1, D), 1)
    ctx = jnp.zeros_like(q)
    for h in range(H):
        mh = jnp.where((col >= h * dh) & (col < (h + 1) * dh), 1.0, 0.0)
        kh = k * mh
        vh = v * mh
        s = lax.dot_general(q, kh, (((1,), (1,)), ((), ())),
                            preferred_element_type=jnp.float32) * scale + bias
        s = s - jnp.max(s, axis=-1, keepdims=True)
        p = jnp.exp(s)
        p = p * pl.reciprocal(jnp.sum(p, axis=-1, keepdims=True), approx=True)
        ctx = ctx + jnp.dot(p, vh, preferred_element_type=jnp.float32)

    attn = jnp.dot(ctx, wo_ref[...], preferred_element_type=jnp.float32) + bo_ref[...]
    h1 = _ln(x_q + attn, ln1g_ref[...], ln1b_ref[...])

    f = jnp.maximum(
        jnp.dot(h1, w1_ref[...], preferred_element_type=jnp.float32) + b1_ref[...], 0.0)
    f = jnp.dot(f, w2_ref[...], preferred_element_type=jnp.float32) + b2_ref[...]
    y = _ln(h1 + f, ln2g_ref[...], ln2b_ref[...])

    if apply_mask:                                       # encoder: x *= mask after each block
        y = y * qm_ref[...]
    if apply_final_ln:                                   # encoder: final LN folded into last block
        y = _ln(y, fing_ref[...], finb_ref[...])
    y_ref[...] = y

    # Score head (D -> 1) + sigmoid folded in (used only for the last decoder block).
    sc = jnp.sum(y * ws_ref[...], axis=-1, keepdims=True) + bs_ref[...]   # (Lq, 1)
    sc_ref[...] = 1.0 / (1.0 + jnp.exp(-sc))


def transformer_block(x_q, x_kv, kv_mask, q_mask, blk, score_p, final_ln_p, *,
                      H, apply_mask, apply_final_ln):
    B, Lq, D = x_q.shape
    Lk = x_kv.shape[1]
    dh = D // H
    row = lambda a: a.reshape(1, -1)

    def wspec(a):
        nd = a.ndim
        return pl.BlockSpec(a.shape, lambda b, _nd=nd: (0,) * _nd)

    weight_args = [
        blk["wq"], row(blk["bq"]), blk["wk"], row(blk["bk"]),
        blk["wv"], row(blk["bv"]), blk["wo"], row(blk["bo"]),
        row(blk["ln1_g"]), row(blk["ln1_b"]),
        blk["w1"], row(blk["b1"]), blk["w2"], row(blk["b2"]),
        row(blk["ln2_g"]), row(blk["ln2_b"]),
        row(final_ln_p["g"]), row(final_ln_p["b"]),
        row(score_p["w"]), score_p["b"].reshape(1, 1),
    ]
    kern = functools.partial(_block_kernel, H=H, scale=1.0 / (dh ** 0.5),
                             apply_mask=apply_mask, apply_final_ln=apply_final_ln)
    y, sc = pl.pallas_call(
        kern,
        out_shape=(jax.ShapeDtypeStruct((B, Lq, D), jnp.float32),
                   jax.ShapeDtypeStruct((B, Lq, 1), jnp.float32)),
        grid=(B,),
        in_specs=[
            pl.BlockSpec((None, Lq, D), lambda b: (b, 0, 0)),
            pl.BlockSpec((None, Lk, D), lambda b: (b, 0, 0)),
            pl.BlockSpec((None, 1, Lk), lambda b: (b, 0, 0)),
            pl.BlockSpec((None, Lq, 1), lambda b: (b, 0, 0)),
        ] + [wspec(a) for a in weight_args],
        out_specs=[
            pl.BlockSpec((None, Lq, D), lambda b: (b, 0, 0)),
            pl.BlockSpec((None, Lq, 1), lambda b: (b, 0, 0)),
        ],
        compiler_params=pltpu.CompilerParams(
            dimension_semantics=("parallel",),
            vmem_limit_bytes=_VMEM_LIMIT),
    )(x_q, x_kv, kv_mask[:, None, :], q_mask[..., None], *weight_args)
    return y, sc


# --------------------------------------------------------------------------
# Model composition
# --------------------------------------------------------------------------

def get_mask2(seq):
    return (seq > 0).astype(jnp.float32)          # (B, L), 1 = valid item


def encoder(params, seq, seqcxt, H):
    mask = get_mask2(seq)
    x = item_encoding(params, seq, seqcxt, mask)  # LN + mask already applied in kernel
    # drop_before_encoding: eval-mode dropout -> identity
    n = len(params["encoders"])
    for i, blk in enumerate(params["encoders"]):
        x, _ = transformer_block(
            x, x, mask, mask, blk, params["score"], params["final_ln"],
            H=H, apply_mask=True, apply_final_ln=(i == n - 1))
    return x, mask


def decoder(params, seq, seqcxt, p, p_mask, H):
    o_mask = get_mask2(seq)
    x = item_encoding(params, seq, seqcxt, o_mask)
    score = None
    for blk in params["decoders"]:
        x, score = transformer_block(
            x, p, p_mask, o_mask, blk, params["score"], params["final_ln"],
            H=H, apply_mask=False, apply_final_ln=False)
    return score[..., 0], o_mask                  # (B, L) already sigmoided in-kernel


def forward_test(params, user_seq, seq, seqcxt, test, testcxt, H):
    # add_users=False -> U_Encoder returns None; user embedding path unused
    del user_seq
    p, p_mask = encoder(params, seq, seqcxt, H)
    test_prob, _ = decoder(params, test, testcxt, p, p_mask, H)
    return test_prob
    # TODO(synk): BPR / BCE training-loss branch (pos/neg decoding) not implemented
    # because BPRLoss / BinaryCrossEntropy definitions are not in the reference.


# --------------------------------------------------------------------------
# Parameters (deterministic init)
# --------------------------------------------------------------------------

def _block_params(key, D, d_ff):
    k = jax.random.split(key, 6)
    n = lambda kk, s: 0.02 * jax.random.normal(kk, s, jnp.float32)
    return {
        "wq": n(k[0], (D, D)), "bq": jnp.zeros((D,), jnp.float32),
        "wk": n(k[1], (D, D)), "bk": jnp.zeros((D,), jnp.float32),
        "wv": n(k[2], (D, D)), "bv": jnp.zeros((D,), jnp.float32),
        "wo": n(k[3], (D, D)), "bo": jnp.zeros((D,), jnp.float32),
        "ln1_g": jnp.ones((D,), jnp.float32), "ln1_b": jnp.zeros((D,), jnp.float32),
        "w1": n(k[4], (D, d_ff)), "b1": jnp.zeros((d_ff,), jnp.float32),
        "w2": n(k[5], (d_ff, D)), "b2": jnp.zeros((D,), jnp.float32),
        "ln2_g": jnp.ones((D,), jnp.float32), "ln2_b": jnp.zeros((D,), jnp.float32),
    }


def init_params(key, *, n_items, cxt_dim, D, d_ff, L_max, n_enc, n_dec):
    keys = jax.random.split(key, 4 + n_enc + n_dec)
    item_emb = 0.02 * jax.random.normal(keys[0], (n_items, D), jnp.float32)
    item_emb = item_emb.at[0].set(0.0)            # padding_idx = 0
    return {
        "item_emb": item_emb,
        "pos_emb": 0.02 * jax.random.normal(keys[1], (L_max, D), jnp.float32),
        "cxt_proj": {"w": 0.02 * jax.random.normal(keys[2], (cxt_dim, D), jnp.float32),
                     "b": jnp.zeros((D,), jnp.float32)},
        "enc_ln": {"g": jnp.ones((D,), jnp.float32), "b": jnp.zeros((D,), jnp.float32)},
        "final_ln": {"g": jnp.ones((D,), jnp.float32), "b": jnp.zeros((D,), jnp.float32)},
        "score": {"w": 0.02 * jax.random.normal(keys[3], (D,), jnp.float32),
                  "b": jnp.zeros((1,), jnp.float32)},
        "encoders": [_block_params(keys[4 + i], D, d_ff) for i in range(n_enc)],
        "decoders": [_block_params(keys[4 + n_enc + i], D, d_ff) for i in range(n_dec)],
    }


# --------------------------------------------------------------------------

if __name__ == "__main__":
    B, L, D, H, d_ff, CXT = 2, 8, 32, 2, 64, 4
    n_items, n_enc, n_dec = 20, 2, 1

    key = jax.random.PRNGKey(0)
    kp, k1, k2, k3, k4, k5 = jax.random.split(key, 6)

    params = init_params(kp, n_items=n_items, cxt_dim=CXT, D=D, d_ff=d_ff,
                         L_max=L, n_enc=n_enc, n_dec=n_dec)

    user_seq = jax.random.randint(k1, (B, 1), 1, 5)
    seq = jax.random.randint(k2, (B, L), 1, n_items)
    seq = seq.at[:, :2].set(0)                    # left padding
    seqcxt = jax.random.normal(k3, (B, L, CXT), jnp.float32)
    test = jax.random.randint(k4, (B, L), 1, n_items)
    testcxt = jax.random.normal(k5, (B, L, CXT), jnp.float32)

    fwd = jax.jit(functools.partial(forward_test, H=H))
    out = fwd(params, user_seq, seq, seqcxt, test, testcxt)
    out = jax.block_until_ready(out)

    assert out.shape == (B, L)
    assert bool(jnp.all(jnp.isfinite(out)))
    assert bool(jnp.all((out >= 0.0) & (out <= 1.0)))
    print("KERNEL_OK")
</pallas_src>

<mosaic_0001>
module attributes {stable_mosaic.version = 11 : i64} {
  func.func @_item_enc_kernel(%arg0: i32, %arg1: memref<1x8x32xf32, #tpu.memory_space<vmem>>, %arg2: memref<1x8x4xf32, #tpu.memory_space<vmem>>, %arg3: memref<1x8x1xf32, #tpu.memory_space<vmem>>, %arg4: memref<8x32xf32, #tpu.memory_space<vmem>>, %arg5: memref<4x32xf32, #tpu.memory_space<vmem>>, %arg6: memref<1x32xf32, #tpu.memory_space<vmem>>, %arg7: memref<1x32xf32, #tpu.memory_space<vmem>>, %arg8: memref<1x32xf32, #tpu.memory_space<vmem>>, %arg9: memref<1x8x32xf32, #tpu.memory_space<vmem>>) attributes {dimension_semantics = [#tpu.dimension_semantics<parallel>], iteration_bounds = array<i64: 2>, scalar_prefetch = 0 : i64, scratch_operands = 0 : i64, tpu.core_type = #tpu.core_type<tc>, window_params = [{transform_indices = @transform_0, window_bounds = array<i64: 1, 8, 32>}, {transform_indices = @transform_1, window_bounds = array<i64: 1, 8, 4>}, {transform_indices = @transform_2, window_bounds = array<i64: 1, 8, 1>}, {pipeline_mode = #tpu.pipeline_mode<synchronous>, transform_indices = @transform_3, window_bounds = array<i64: 8, 32>}, {pipeline_mode = #tpu.pipeline_mode<synchronous>, transform_indices = @transform_4, window_bounds = array<i64: 4, 32>}, {pipeline_mode = #tpu.pipeline_mode<synchronous>, transform_indices = @transform_5, window_bounds = array<i64: 1, 32>}, {pipeline_mode = #tpu.pipeline_mode<synchronous>, transform_indices = @transform_6, window_bounds = array<i64: 1, 32>}, {pipeline_mode = #tpu.pipeline_mode<synchronous>, transform_indices = @transform_7, window_bounds = array<i64: 1, 32>}, {transform_indices = @transform_8, window_bounds = array<i64: 1, 8, 32>}]} {
    %c0 = arith.constant 0 : index
    %c0_0 = arith.constant 0 : index
    %c0_1 = arith.constant 0 : index
    %0 = vector.load %arg1[%c0, %c0_0, %c0_1] : memref<1x8x32xf32, #tpu.memory_space<vmem>>, vector<1x8x32xf32>
    %1 = vector.shape_cast %0 : vector<1x8x32xf32> to vector<8x32xf32>
    %c0_2 = arith.constant 0 : index
    %c0_3 = arith.constant 0 : index
    %2 = vector.load %arg4[%c0_2, %c0_3] : memref<8x32xf32, #tpu.memory_space<vmem>>, vector<8x32xf32>
    %3 = arith.addf %1, %2 : vector<8x32xf32>
    %c0_4 = arith.constant 0 : index
    %c0_5 = arith.constant 0 : index
    %c0_6 = arith.constant 0 : index
    %4 = vector.load %arg2[%c0_4, %c0_5, %c0_6] : memref<1x8x4xf32, #tpu.memory_space<vmem>>, vector<1x8x4xf32>
    %5 = vector.shape_cast %4 : vector<1x8x4xf32> to vector<8x4xf32>
    %c0_7 = arith.constant 0 : index
    %c0_8 = arith.constant 0 : index
    %6 = vector.load %arg5[%c0_7, %c0_8] : memref<4x32xf32, #tpu.memory_space<vmem>>, vector<4x32xf32>
    %cst = arith.constant dense<0.000000e+00> : vector<8x32xf32>
    %7 = tpu.matmul %5, %6, %cst {dimension_numbers = #tpu.dot_dimension_numbers<[1], [0], [0], [1], [0, 0, 1, 1], [], []>} : vector<8x4xf32>, vector<4x32xf32>, vector<8x32xf32> -> vector<8x32xf32>
    %8 = arith.addf %3, %7 : vector<8x32xf32>
    %c0_9 = arith.constant 0 : index
    %c0_10 = arith.constant 0 : index
    %9 = vector.load %arg6[%c0_9, %c0_10] : memref<1x32xf32, #tpu.memory_space<vmem>>, vector<1x32xf32>
    %10 = vector.broadcast %9 : vector<1x32xf32> to vector<8x32xf32>
    %11 = arith.addf %8, %10 : vector<8x32xf32>
    %c0_11 = arith.constant 0 : index
    %c0_12 = arith.constant 0 : index
    %12 = vector.load %arg7[%c0_11, %c0_12] : memref<1x32xf32, #tpu.memory_space<vmem>>, vector<1x32xf32>
    %c0_13 = arith.constant 0 : index
    %c0_14 = arith.constant 0 : index
    %13 = vector.load %arg8[%c0_13, %c0_14] : memref<1x32xf32, #tpu.memory_space<vmem>>, vector<1x32xf32>
    %cst_15 = arith.constant dense<0.000000e+00> : vector<8xf32>
    %14 = vector.multi_reduction <add>, %11, %cst_15 [1] : vector<8x32xf32> to vector<8xf32>
    %15 = vector.shape_cast %14 : vector<8xf32> to vector<8x1xf32>
    %cst_16 = arith.constant 3.200000e+01 : f32
    %16 = vector.broadcast %cst_16 : f32 to vector<8x1xf32>
    %17 = arith.divf %15, %16 : vector<8x1xf32>
    %18 = vector.broadcast %17 : vector<8x1xf32> to vector<8x32xf32>
    %19 = arith.subf %11, %18 : vector<8x32xf32>
    %20 = arith.mulf %19, %19 : vector<8x32xf32>
    %cst_17 = arith.constant dense<0.000000e+00> : vector<8xf32>
    %21 = vector.multi_reduction <add>, %20, %cst_17 [1] : vector<8x32xf32> to vector<8xf32>
    %22 = vector.shape_cast %21 : vector<8xf32> to vector<8x1xf32>
    %cst_18 = arith.constant 3.200000e+01 : f32
    %23 = vector.broadcast %cst_18 : f32 to vector<8x1xf32>
    %24 = arith.divf %22, %23 : vector<8x1xf32>
    %cst_19 = arith.constant 9.99999996E-13 : f32
    %25 = vector.broadcast %cst_19 : f32 to vector<8x1xf32>
    %26 = arith.addf %24, %25 : vector<8x1xf32>
    %27 = math.rsqrt %26 : vector<8x1xf32>
    %28 = vector.broadcast %27 : vector<8x1xf32> to vector<8x32xf32>
    %29 = arith.mulf %19, %28 : vector<8x32xf32>
    %30 = vector.broadcast %12 : vector<1x32xf32> to vector<8x32xf32>
    %31 = arith.mulf %29, %30 : vector<8x32xf32>
    %32 = vector.broadcast %13 : vector<1x32xf32> to vector<8x32xf32>
    %33 = arith.addf %31, %32 : vector<8x32xf32>
    %c0_20 = arith.constant 0 : index
    %c0_21 = arith.constant 0 : index
    %c0_22 = arith.constant 0 : index
    %34 = vector.load %arg3[%c0_20, %c0_21, %c0_22] : memref<1x8x1xf32, #tpu.memory_space<vmem>>, vector<1x8x1xf32>
    %35 = vector.shape_cast %34 : vector<1x8x1xf32> to vector<8x1xf32>
    %36 = vector.broadcast %35 : vector<8x1xf32> to vector<8x32xf32>
    %37 = arith.mulf %33, %36 : vector<8x32xf32>
    %c0_23 = arith.constant 0 : index
    %c0_24 = arith.constant 0 : index
    %c0_25 = arith.constant 0 : index
    %38 = vector.load %arg9[%c0_23, %c0_24, %c0_25] : memref<1x8x32xf32, #tpu.memory_space<vmem>>, vector<1x8x32xf32>
    %39 = vector.shape_cast %38 : vector<1x8x32xf32> to vector<8x32xf32>
    %40 = vector.shape_cast %37 : vector<8x32xf32> to vector<1x8x32xf32>
    tpu.vector_store %arg9[%c0_23, %c0_24, %c0_25], %40 {strides = array<i32>} : memref<1x8x32xf32, #tpu.memory_space<vmem>>, vector<1x8x32xf32>,
    return
  }
  func.func @transform_0(%arg0: i32) -> (i32, i32, i32) {
    %c0_i32 = arith.constant 0 : i32
    %c0_i32_0 = arith.constant 0 : i32
    %c0_i32_1 = arith.constant 0 : i32
    return %arg0, %c0_i32, %c0_i32_0 : i32, i32, i32
  }
  func.func @transform_1(%arg0: i32) -> (i32, i32, i32) {
    %c0_i32 = arith.constant 0 : i32
    %c0_i32_0 = arith.constant 0 : i32
    %c0_i32_1 = arith.constant 0 : i32
    return %arg0, %c0_i32, %c0_i32_0 : i32, i32, i32
  }
  func.func @transform_2(%arg0: i32) -> (i32, i32, i32) {
    %c0_i32 = arith.constant 0 : i32
    %c0_i32_0 = arith.constant 0 : i32
    %c0_i32_1 = arith.constant 0 : i32
    return %arg0, %c0_i32, %c0_i32_0 : i32, i32, i32
  }
  func.func @transform_3(%arg0: i32) -> (i32, i32) {
    %c0_i32 = arith.constant 0 : i32
    %c0_i32_0 = arith.constant 0 : i32
    %c0_i32_1 = arith.constant 0 : i32
    return %c0_i32, %c0_i32_0 : i32, i32
  }
  func.func @transform_4(%arg0: i32) -> (i32, i32) {
    %c0_i32 = arith.constant 0 : i32
    %c0_i32_0 = arith.constant 0 : i32
    %c0_i32_1 = arith.constant 0 : i32
    return %c0_i32, %c0_i32_0 : i32, i32
  }
  func.func @transform_5(%arg0: i32) -> (i32, i32) {
    %c0_i32 = arith.constant 0 : i32
    %c0_i32_0 = arith.constant 0 : i32
    %c0_i32_1 = arith.constant 0 : i32
    return %c0_i32, %c0_i32_0 : i32, i32
  }
  func.func @transform_6(%arg0: i32) -> (i32, i32) {
    %c0_i32 = arith.constant 0 : i32
    %c0_i32_0 = arith.constant 0 : i32
    %c0_i32_1 = arith.constant 0 : i32
    return %c0_i32, %c0_i32_0 : i32, i32
  }
  func.func @transform_7(%arg0: i32) -> (i32, i32) {
    %c0_i32 = arith.constant 0 : i32
    %c0_i32_0 = arith.constant 0 : i32
    %c0_i32_1 = arith.constant 0 : i32
    return %c0_i32, %c0_i32_0 : i32, i32
  }
  func.func @transform_8(%arg0: i32) -> (i32, i32, i32) {
    %c0_i32 = arith.constant 0 : i32
    %c0_i32_0 = arith.constant 0 : i32
    %c0_i32_1 = arith.constant 0 : i32
    return %arg0, %c0_i32, %c0_i32_0 : i32, i32, i32
  }
}

module attributes {stable_mosaic.version = 11 : i64} {
  func.func @_block_kernel(%arg0: i32, %arg1: memref<1x8x32xf32, #tpu.memory_space<vmem>>, %arg2: memref<1x8x32xf32, #tpu.memory_space<vmem>>, %arg3: memref<1x1x8xf32, #tpu.memory_space<vmem>>, %arg4: memref<1x8x1xf32, #tpu.memory_space<vmem>>, %arg5: memref<32x32xf32, #tpu.memory_space<vmem>>, %arg6: memref<1x32xf32, #tpu.memory_space<vmem>>, %arg7: memref<32x32xf32, #tpu.memory_space<vmem>>, %arg8: memref<1x32xf32, #tpu.memory_space<vmem>>, %arg9: memref<32x32xf32, #tpu.memory_space<vmem>>, %arg10: memref<1x32xf32, #tpu.memory_space<vmem>>, %arg11: memref<32x32xf32, #tpu.memory_space<vmem>>, %arg12: memref<1x32xf32, #tpu.memory_space<vmem>>, %arg13: memref<1x32xf32, #tpu.memory_space<vmem>>, %arg14: memref<1x32xf32, #tpu.memory_space<vmem>>, %arg15: memref<32x64xf32, #tpu.memory_space<vmem>>, %arg16: memref<1x64xf32, #tpu.memory_space<vmem>>, %arg17: memref<64x32xf32, #tpu.memory_space<vmem>>, %arg18: memref<1x32xf32, #tpu.memory_space<vmem>>, %arg19: memref<1x32xf32, #tpu.memory_space<vmem>>, %arg20: memref<1x32xf32, #tpu.memory_space<vmem>>, %arg21: memref<1x32xf32, #tpu.memory_space<vmem>>, %arg22: memref<1x32xf32, #tpu.memory_space<vmem>>, %arg23: memref<1x32xf32, #tpu.memory_space<vmem>>, %arg24: memref<1x1xf32, #tpu.memory_space<vmem>>, %arg25: memref<1x8x32xf32, #tpu.memory_space<vmem>>, %arg26: memref<1x8x1xf32, #tpu.memory_space<vmem>>) attributes {dimension_semantics = [#tpu.dimension_semantics<parallel>], iteration_bounds = array<i64: 2>, scalar_prefetch = 0 : i64, scratch_operands = 0 : i64, tpu.core_type = #tpu.core_type<tc>, window_params = [{transform_indices = @transform_0, window_bounds = array<i64: 1, 8, 32>}, {transform_indices = @transform_1, window_bounds = array<i64: 1, 8, 32>}, {transform_indices = @transform_2, window_bounds = array<i64: 1, 1, 8>}, {transform_indices = @transform_3, window_bounds = array<i64: 1, 8, 1>}, {pipeline_mode = #tpu.pipeline_mode<synchronous>, transform_indices = @transform_4, window_bounds = array<i64: 32, 32>}, {pipeline_mode = #tpu.pipeline_mode<synchronous>, transform_indices = @transform_5, window_bounds = array<i64: 1, 32>}, {pipeline_mode = #tpu.pipeline_mode<synchronous>, transform_indices = @transform_6, window_bounds = array<i64: 32, 32>}, {pipeline_mode = #tpu.pipeline_mode<synchronous>, transform_indices = @transform_7, window_bounds = array<i64: 1, 32>}, {pipeline_mode = #tpu.pipeline_mode<synchronous>, transform_indices = @transform_8, window_bounds = array<i64: 32, 32>}, {pipeline_mode = #tpu.pipeline_mode<synchronous>, transform_indices = @transform_9, window_bounds = array<i64: 1, 32>}, {pipeline_mode = #tpu.pipeline_mode<synchronous>, transform_indices = @transform_10, window_bounds = array<i64: 32, 32>}, {pipeline_mode = #tpu.pipeline_mode<synchronous>, transform_indices = @transform_11, window_bounds = array<i64: 1, 32>}, {pipeline_mode = #tpu.pipeline_mode<synchronous>, transform_indices = @transform_12, window_bounds = array<i64: 1, 32>}, {pipeline_mode = #tpu.pipeline_mode<synchronous>, transform_indices = @transform_13, window_bounds = array<i64: 1, 32>}, {pipeline_mode = #tpu.pipeline_mode<synchronous>, transform_indices = @transform_14, window_bounds = array<i64: 32, 64>}, {pipeline_mode = #tpu.pipeline_mode<synchronous>, transform_indices = @transform_15, window_bounds = array<i64: 1, 64>}, {pipeline_mode = #tpu.pipeline_mode<synchronous>, transform_indices = @transform_16, window_bounds = array<i64: 64, 32>}, {pipeline_mode = #tpu.pipeline_mode<synchronous>, transform_indices = @transform_17, window_bounds = array<i64: 1, 32>}, {pipeline_mode = #tpu.pipeline_mode<synchronous>, transform_indices = @transform_18, window_bounds = array<i64: 1, 32>}, {pipeline_mode = #tpu.pipeline_mode<synchronous>, transform_indices = @transform_19, window_bounds = array<i64: 1, 32>}, {pipeline_mode = #tpu.pipeline_mode<synchronous>, transform_indices = @transform_20, window_bounds = array<i64: 1, 32>}, {pipeline_mode = #tpu.pipeline_mode<synchronous>, transform_indices = @transform_21, window_bounds = array<i64: 1, 32>}, {pipeline_mode = #tpu.pipeline_mode<synchronous>, transform_indices = @transform_22, window_bounds = array<i64: 1, 32>}, {pipeline_mode = #tpu.pipeline_mode<synchronous>, transform_indices = @transform_23, window_bounds = array<i64: 1, 1>}, {transform_indices = @transform_24, window_bounds = array<i64: 1, 8, 32>}, {transform_indices = @transform_25, window_bounds = array<i64: 1, 8, 1>}]} {
    %c0 = arith.constant 0 : index
    %c0_0 = arith.constant 0 : index
    %c0_1 = arith.constant 0 : index
    %0 = vector.load %arg1[%c0, %c0_0, %c0_1] : memref<1x8x32xf32, #tpu.memory_space<vmem>>, vector<1x8x32xf32>
    %1 = vector.shape_cast %0 : vector<1x8x32xf32> to vector<8x32xf32>
    %c0_2 = arith.constant 0 : index
    %c0_3 = arith.constant 0 : index
    %c0_4 = arith.constant 0 : index
    %2 = vector.load %arg2[%c0_2, %c0_3, %c0_4] : memref<1x8x32xf32, #tpu.memory_space<vmem>>, vector<1x8x32xf32>
    %3 = vector.shape_cast %2 : vector<1x8x32xf32> to vector<8x32xf32>
    %c0_5 = arith.constant 0 : index
    %c0_6 = arith.constant 0 : index
    %4 = vector.load %arg5[%c0_5, %c0_6] : memref<32x32xf32, #tpu.memory_space<vmem>>, vector<32x32xf32>
    %cst = arith.constant dense<0.000000e+00> : vector<8x32xf32>
    %5 = tpu.matmul %1, %4, %cst {dimension_numbers = #tpu.dot_dimension_numbers<[1], [0], [0], [1], [0, 0, 1, 1], [], []>} : vector<8x32xf32>, vector<32x32xf32>, vector<8x32xf32> -> vector<8x32xf32>
    %c0_7 = arith.constant 0 : index
    %c0_8 = arith.constant 0 : index
    %6 = vector.load %arg6[%c0_7, %c0_8] : memref<1x32xf32, #tpu.memory_space<vmem>>, vector<1x32xf32>
    %7 = vector.broadcast %6 : vector<1x32xf32> to vector<8x32xf32>
    %8 = arith.addf %5, %7 : vector<8x32xf32>
    %c0_9 = arith.constant 0 : index
    %c0_10 = arith.constant 0 : index
    %9 = vector.load %arg7[%c0_9, %c0_10] : memref<32x32xf32, #tpu.memory_space<vmem>>, vector<32x32xf32>
    %cst_11 = arith.constant dense<0.000000e+00> : vector<8x32xf32>
    %10 = tpu.matmul %3, %9, %cst_11 {dimension_numbers = #tpu.dot_dimension_numbers<[1], [0], [0], [1], [0, 0, 1, 1], [], []>} : vector<8x32xf32>, vector<32x32xf32>, vector<8x32xf32> -> vector<8x32xf32>
    %c0_12 = arith.constant 0 : index
    %c0_13 = arith.constant 0 : index
    %11 = vector.load %arg8[%c0_12, %c0_13] : memref<1x32xf32, #tpu.memory_space<vmem>>, vector<1x32xf32>
    %12 = vector.broadcast %11 : vector<1x32xf32> to vector<8x32xf32>
    %13 = arith.addf %10, %12 : vector<8x32xf32>
    %c0_14 = arith.constant 0 : index
    %c0_15 = arith.constant 0 : index
    %14 = vector.load %arg9[%c0_14, %c0_15] : memref<32x32xf32, #tpu.memory_space<vmem>>, vector<32x32xf32>
    %cst_16 = arith.constant dense<0.000000e+00> : vector<8x32xf32>
    %15 = tpu.matmul %3, %14, %cst_16 {dimension_numbers = #tpu.dot_dimension_numbers<[1], [0], [0], [1], [0, 0, 1, 1], [], []>} : vector<8x32xf32>, vector<32x32xf32>, vector<8x32xf32> -> vector<8x32xf32>
    %c0_17 = arith.constant 0 : index
    %c0_18 = arith.constant 0 : index
    %16 = vector.load %arg10[%c0_17, %c0_18] : memref<1x32xf32, #tpu.memory_space<vmem>>, vector<1x32xf32>
    %17 = vector.broadcast %16 : vector<1x32xf32> to vector<8x32xf32>
    %18 = arith.addf %15, %17 : vector<8x32xf32>
    %c0_19 = arith.constant 0 : index
    %c0_20 = arith.constant 0 : index
    %c0_21 = arith.constant 0 : index
    %19 = vector.load %arg3[%c0_19, %c0_20, %c0_21] : memref<1x1x8xf32, #tpu.memory_space<vmem>>, vector<1x1x8xf32>
    %20 = vector.shape_cast %19 : vector<1x1x8xf32> to vector<1x8xf32>
    %cst_22 = arith.constant 0.000000e+00 : f32
    %21 = vector.broadcast %cst_22 : f32 to vector<1x8xf32>
    %22 = arith.cmpf ogt, %20, %21 : vector<1x8xf32>
    %cst_23 = arith.constant 0.000000e+00 : f32
    %cst_24 = arith.constant -1.000000e+09 : f32
    %23 = vector.broadcast %cst_23 : f32 to vector<1x8xf32>
    %24 = vector.broadcast %cst_24 : f32 to vector<1x8xf32>
    %25 = arith.select %22, %23, %24 : vector<1x8xi1>, vector<1x8xf32>
    %26 = tpu.iota {dimensions = array<i32: 1>} : vector<1x32xi32>
    %cst_25 = arith.constant 0.000000e+00 : f32
    %27 = vector.broadcast %cst_25 : f32 to vector<8x32xf32>
    %c0_i32 = arith.constant 0 : i32
    %28 = vector.broadcast %c0_i32 : i32 to vector<1x32xi32>
    %29 = arith.cmpi sge, %26, %28 : vector<1x32xi32>
    %c16_i32 = arith.constant 16 : i32
    %30 = vector.broadcast %c16_i32 : i32 to vector<1x32xi32>
    %31 = arith.cmpi slt, %26, %30 : vector<1x32xi32>
    %32 = arith.andi %29, %31 : vector<1x32xi1>
    %cst_26 = arith.constant 1.000000e+00 : f32
    %cst_27 = arith.constant 0.000000e+00 : f32
    %33 = vector.broadcast %cst_26 : f32 to vector<1x32xf32>
    %34 = vector.broadcast %cst_27 : f32 to vector<1x32xf32>
    %35 = arith.select %32, %33, %34 : vector<1x32xi1>, vector<1x32xf32>
    %36 = vector.broadcast %35 : vector<1x32xf32> to vector<8x32xf32>
    %37 = arith.mulf %13, %36 : vector<8x32xf32>
    %38 = vector.broadcast %35 : vector<1x32xf32> to vector<8x32xf32>
    %39 = arith.mulf %18, %38 : vector<8x32xf32>
    %cst_28 = arith.constant dense<0.000000e+00> : vector<8x8xf32>
    %40 = tpu.matmul %8, %37, %cst_28 {dimension_numbers = #tpu.dot_dimension_numbers<[1], [1], [0], [0], [0, 0, 1, 0], [], []>} : vector<8x32xf32>, vector<8x32xf32>, vector<8x8xf32> -> vector<8x8xf32>
    %cst_29 = arith.constant 2.500000e-01 : f32
    %41 = vector.broadcast %cst_29 : f32 to vector<8x8xf32>
    %42 = arith.mulf %40, %41 : vector<8x8xf32>
    %43 = vector.broadcast %25 : vector<1x8xf32> to vector<8x8xf32>
    %44 = arith.addf %42, %43 : vector<8x8xf32>
    %cst_30 = arith.constant dense<0xFF800000> : vector<8xf32>
    %45 = vector.multi_reduction <maximumf>, %44, %cst_30 [1] : vector<8x8xf32> to vector<8xf32>
    %46 = vector.shape_cast %45 : vector<8xf32> to vector<8x1xf32>
    %47 = vector.broadcast %46 : vector<8x1xf32> to vector<8x8xf32>
    %48 = arith.subf %44, %47 : vector<8x8xf32>
    %49 = math.exp %48 : vector<8x8xf32>
    %cst_31 = arith.constant dense<0.000000e+00> : vector<8xf32>
    %50 = vector.multi_reduction <add>, %49, %cst_31 [1] : vector<8x8xf32> to vector<8xf32>
    %51 = vector.shape_cast %50 : vector<8xf32> to vector<8x1xf32>
    %52 = tpu.reciprocal %51 {approx = true} : vector<8x1xf32> -> vector<8x1xf32>
    %53 = vector.broadcast %52 : vector<8x1xf32> to vector<8x8xf32>
    %54 = arith.mulf %49, %53 : vector<8x8xf32>
    %cst_32 = arith.constant dense<0.000000e+00> : vector<8x32xf32>
    %55 = tpu.matmul %54, %39, %cst_32 {dimension_numbers = #tpu.dot_dimension_numbers<[1], [0], [0], [1], [0, 0, 1, 1], [], []>} : vector<8x8xf32>, vector<8x32xf32>, vector<8x32xf32> -> vector<8x32xf32>
    %56 = arith.addf %27, %55 : vector<8x32xf32>
    %c16_i32_33 = arith.constant 16 : i32
    %57 = vector.broadcast %c16_i32_33 : i32 to vector<1x32xi32>
    %58 = arith.cmpi sge, %26, %57 : vector<1x32xi32>
    %c32_i32 = arith.constant 32 : i32
    %59 = vector.broadcast %c32_i32 : i32 to vector<1x32xi32>
    %60 = arith.cmpi slt, %26, %59 : vector<1x32xi32>
    %61 = arith.andi %58, %60 : vector<1x32xi1>
    %cst_34 = arith.constant 1.000000e+00 : f32
    %cst_35 = arith.constant 0.000000e+00 : f32
    %62 = vector.broadcast %cst_34 : f32 to vector<1x32xf32>
    %63 = vector.broadcast %cst_35 : f32 to vector<1x32xf32>
    %64 = arith.select %61, %62, %63 : vector<1x32xi1>, vector<1x32xf32>
    %65 = vector.broadcast %64 : vector<1x32xf32> to vector<8x32xf32>
    %66 = arith.mulf %13, %65 : vector<8x32xf32>
    %67 = vector.broadcast %64 : vector<1x32xf32> to vector<8x32xf32>
    %68 = arith.mulf %18, %67 : vector<8x32xf32>
    %cst_36 = arith.constant dense<0.000000e+00> : vector<8x8xf32>
    %69 = tpu.matmul %8, %66, %cst_36 {dimension_numbers = #tpu.dot_dimension_numbers<[1], [1], [0], [0], [0, 0, 1, 0], [], []>} : vector<8x32xf32>, vector<8x32xf32>, vector<8x8xf32> -> vector<8x8xf32>
    %cst_37 = arith.constant 2.500000e-01 : f32
    %70 = vector.broadcast %cst_37 : f32 to vector<8x8xf32>
    %71 = arith.mulf %69, %70 : vector<8x8xf32>
    %72 = vector.broadcast %25 : vector<1x8xf32> to vector<8x8xf32>
    %73 = arith.addf %71, %72 : vector<8x8xf32>
    %cst_38 = arith.constant dense<0xFF800000> : vector<8xf32>
    %74 = vector.multi_reduction <maximumf>, %73, %cst_38 [1] : vector<8x8xf32> to vector<8xf32>
    %75 = vector.shape_cast %74 : vector<8xf32> to vector<8x1xf32>
    %76 = vector.broadcast %75 : vector<8x1xf32> to vector<8x8xf32>
    %77 = arith.subf %73, %76 : vector<8x8xf32>
    %78 = math.exp %77 : vector<8x8xf32>
    %cst_39 = arith.constant dense<0.000000e+00> : vector<8xf32>
    %79 = vector.multi_reduction <add>, %78, %cst_39 [1] : vector<8x8xf32> to vector<8xf32>
    %80 = vector.shape_cast %79 : vector<8xf32> to vector<8x1xf32>
    %81 = tpu.reciprocal %80 {approx = true} : vector<8x1xf32> -> vector<8x1xf32>
    %82 = vector.broadcast %81 : vector<8x1xf32> to vector<8x8xf32>
    %83 = arith.mulf %78, %82 : vector<8x8xf32>
    %cst_40 = arith.constant dense<0.000000e+00> : vector<8x32xf32>
    %84 = tpu.matmul %83, %68, %cst_40 {dimension_numbers = #tpu.dot_dimension_numbers<[1], [0], [0], [1], [0, 0, 1, 1], [], []>} : vector<8x8xf32>, vector<8x32xf32>, vector<8x32xf32> -> vector<8x32xf32>
    %85 = arith.addf %56, %84 : vector<8x32xf32>
    %c0_41 = arith.constant 0 : index
    %c0_42 = arith.constant 0 : index
    %86 = vector.load %arg11[%c0_41, %c0_42] : memref<32x32xf32, #tpu.memory_space<vmem>>, vector<32x32xf32>
    %cst_43 = arith.constant dense<0.000000e+00> : vector<8x32xf32>
    %87 = tpu.matmul %85, %86, %cst_43 {dimension_numbers = #tpu.dot_dimension_numbers<[1], [0], [0], [1], [0, 0, 1, 1], [], []>} : vector<8x32xf32>, vector<32x32xf32>, vector<8x32xf32> -> vector<8x32xf32>
    %c0_44 = arith.constant 0 : index
    %c0_45 = arith.constant 0 : index
    %88 = vector.load %arg12[%c0_44, %c0_45] : memref<1x32xf32, #tpu.memory_space<vmem>>, vector<1x32xf32>
    %89 = vector.broadcast %88 : vector<1x32xf32> to vector<8x32xf32>
    %90 = arith.addf %87, %89 : vector<8x32xf32>
    %91 = arith.addf %1, %90 : vector<8x32xf32>
    %c0_46 = arith.constant 0 : index
    %c0_47 = arith.constant 0 : index
    %92 = vector.load %arg13[%c0_46, %c0_47] : memref<1x32xf32, #tpu.memory_space<vmem>>, vector<1x32xf32>
    %c0_48 = arith.constant 0 : index
    %c0_49 = arith.constant 0 : index
    %93 = vector.load %arg14[%c0_48, %c0_49] : memref<1x32xf32, #tpu.memory_space<vmem>>, vector<1x32xf32>
    %cst_50 = arith.constant dense<0.000000e+00> : vector<8xf32>
    %94 = vector.multi_reduction <add>, %91, %cst_50 [1] : vector<8x32xf32> to vector<8xf32>
    %95 = vector.shape_cast %94 : vector<8xf32> to vector<8x1xf32>
    %cst_51 = arith.constant 3.200000e+01 : f32
    %96 = vector.broadcast %cst_51 : f32 to vector<8x1xf32>
    %97 = arith.divf %95, %96 : vector<8x1xf32>
    %98 = vector.broadcast %97 : vector<8x1xf32> to vector<8x32xf32>
    %99 = arith.subf %91, %98 : vector<8x32xf32>
    %100 = arith.mulf %99, %99 : vector<8x32xf32>
    %cst_52 = arith.constant dense<0.000000e+00> : vector<8xf32>
    %101 = vector.multi_reduction <add>, %100, %cst_52 [1] : vector<8x32xf32> to vector<8xf32>
    %102 = vector.shape_cast %101 : vector<8xf32> to vector<8x1xf32>
    %cst_53 = arith.constant 3.200000e+01 : f32
    %103 = vector.broadcast %cst_53 : f32 to vector<8x1xf32>
    %104 = arith.divf %102, %103 : vector<8x1xf32>
    %cst_54 = arith.constant 9.99999996E-13 : f32
    %105 = vector.broadcast %cst_54 : f32 to vector<8x1xf32>
    %106 = arith.addf %104, %105 : vector<8x1xf32>
    %107 = math.rsqrt %106 : vector<8x1xf32>
    %108 = vector.broadcast %107 : vector<8x1xf32> to vector<8x32xf32>
    %109 = arith.mulf %99, %108 : vector<8x32xf32>
    %110 = vector.broadcast %92 : vector<1x32xf32> to vector<8x32xf32>
    %111 = arith.mulf %109, %110 : vector<8x32xf32>
    %112 = vector.broadcast %93 : vector<1x32xf32> to vector<8x32xf32>
    %113 = arith.addf %111, %112 : vector<8x32xf32>
    %c0_55 = arith.constant 0 : index
    %c0_56 = arith.constant 0 : index
    %114 = vector.load %arg15[%c0_55, %c0_56] : memref<32x64xf32, #tpu.memory_space<vmem>>, vector<32x64xf32>
    %cst_57 = arith.constant dense<0.000000e+00> : vector<8x64xf32>
    %115 = tpu.matmul %113, %114, %cst_57 {dimension_numbers = #tpu.dot_dimension_numbers<[1], [0], [0], [1], [0, 0, 1, 1], [], []>} : vector<8x32xf32>, vector<32x64xf32>, vector<8x64xf32> -> vector<8x64xf32>
    %c0_58 = arith.constant 0 : index
    %c0_59 = arith.constant 0 : index
    %116 = vector.load %arg16[%c0_58, %c0_59] : memref<1x64xf32, #tpu.memory_space<vmem>>, vector<1x64xf32>
    %117 = vector.broadcast %116 : vector<1x64xf32> to vector<8x64xf32>
    %118 = arith.addf %115, %117 : vector<8x64xf32>
    %cst_60 = arith.constant 0.000000e+00 : f32
    %119 = vector.broadcast %cst_60 : f32 to vector<8x64xf32>
    %120 = arith.maximumf %118, %119 : vector<8x64xf32>
    %c0_61 = arith.constant 0 : index
    %c0_62 = arith.constant 0 : index
    %121 = vector.load %arg17[%c0_61, %c0_62] : memref<64x32xf32, #tpu.memory_space<vmem>>, vector<64x32xf32>
    %cst_63 = arith.constant dense<0.000000e+00> : vector<8x32xf32>
    %122 = tpu.matmul %120, %121, %cst_63 {dimension_numbers = #tpu.dot_dimension_numbers<[1], [0], [0], [1], [0, 0, 1, 1], [], []>} : vector<8x64xf32>, vector<64x32xf32>, vector<8x32xf32> -> vector<8x32xf32>
    %c0_64 = arith.constant 0 : index
    %c0_65 = arith.constant 0 : index
    %123 = vector.load %arg18[%c0_64, %c0_65] : memref<1x32xf32, #tpu.memory_space<vmem>>, vector<1x32xf32>
    %124 = vector.broadcast %123 : vector<1x32xf32> to vector<8x32xf32>
    %125 = arith.addf %122, %124 : vector<8x32xf32>
    %126 = arith.addf %113, %125 : vector<8x32xf32>
    %c0_66 = arith.constant 0 : index
    %c0_67 = arith.constant 0 : index
    %127 = vector.load %arg19[%c0_66, %c0_67] : memref<1x32xf32, #tpu.memory_space<vmem>>, vector<1x32xf32>
    %c0_68 = arith.constant 0 : index
    %c0_69 = arith.constant 0 : index
    %128 = vector.load %arg20[%c0_68, %c0_69] : memref<1x32xf32, #tpu.memory_space<vmem>>, vector<1x32xf32>
    %cst_70 = arith.constant dense<0.000000e+00> : vector<8xf32>
    %129 = vector.multi_reduction <add>, %126, %cst_70 [1] : vector<8x32xf32> to vector<8xf32>
    %130 = vector.shape_cast %129 : vector<8xf32> to vector<8x1xf32>
    %cst_71 = arith.constant 3.200000e+01 : f32
    %131 = vector.broadcast %cst_71 : f32 to vector<8x1xf32>
    %132 = arith.divf %130, %131 : vector<8x1xf32>
    %133 = vector.broadcast %132 : vector<8x1xf32> to vector<8x32xf32>
    %134 = arith.subf %126, %133 : vector<8x32xf32>
    %135 = arith.mulf %134, %134 : vector<8x32xf32>
    %cst_72 = arith.constant dense<0.000000e+00> : vector<8xf32>
    %136 = vector.multi_reduction <add>, %135, %cst_72 [1] : vector<8x32xf32> to vector<8xf32>
    %137 = vector.shape_cast %136 : vector<8xf32> to vector<8x1xf32>
    %cst_73 = arith.constant 3.200000e+01 : f32
    %138 = vector.broadcast %cst_73 : f32 to vector<8x1xf32>
    %139 = arith.divf %137, %138 : vector<8x1xf32>
    %cst_74 = arith.constant 9.99999996E-13 : f32
    %140 = vector.broadcast %cst_74 : f32 to vector<8x1xf32>
    %141 = arith.addf %139, %140 : vector<8x1xf32>
    %142 = math.rsqrt %141 : vector<8x1xf32>
    %143 = vector.broadcast %142 : vector<8x1xf32> to vector<8x32xf32>
    %144 = arith.mulf %134, %143 : vector<8x32xf32>
    %145 = vector.broadcast %127 : vector<1x32xf32> to vector<8x32xf32>
    %146 = arith.mulf %144, %145 : vector<8x32xf32>
    %147 = vector.broadcast %128 : vector<1x32xf32> to vector<8x32xf32>
    %148 = arith.addf %146, %147 : vector<8x32xf32>
    %c0_75 = arith.constant 0 : index
    %c0_76 = arith.constant 0 : index
    %c0_77 = arith.constant 0 : index
    %149 = vector.load %arg25[%c0_75, %c0_76, %c0_77] : memref<1x8x32xf32, #tpu.memory_space<vmem>>, vector<1x8x32xf32>
    %150 = vector.shape_cast %149 : vector<1x8x32xf32> to vector<8x32xf32>
    %151 = vector.shape_cast %148 : vector<8x32xf32> to vector<1x8x32xf32>
    tpu.vector_store %arg25[%c0_75, %c0_76, %c0_77], %151 {strides = array<i32>} : memref<1x8x32xf32, #tpu.memory_space<vmem>>, vector<1x8x32xf32>,
    %c0_78 = arith.constant 0 : index
    %c0_79 = arith.constant 0 : index
    %152 = vector.load %arg23[%c0_78, %c0_79] : memref<1x32xf32, #tpu.memory_space<vmem>>, vector<1x32xf32>
    %153 = vector.broadcast %152 : vector<1x32xf32> to vector<8x32xf32>
    %154 = arith.mulf %148, %153 : vector<8x32xf32>
    %cst_80 = arith.constant dense<0.000000e+00> : vector<8xf32>
    %155 = vector.multi_reduction <add>, %154, %cst_80 [1] : vector<8x32xf32> to vector<8xf32>
    %156 = vector.shape_cast %155 : vector<8xf32> to vector<8x1xf32>
    %c0_81 = arith.constant 0 : index
    %c0_82 = arith.constant 0 : index
    %157 = vector.load %arg24[%c0_81, %c0_82] : memref<1x1xf32, #tpu.memory_space<vmem>>, vector<1x1xf32>
    %158 = vector.broadcast %157 : vector<1x1xf32> to vector<8x1xf32>
    %159 = arith.addf %156, %158 : vector<8x1xf32>
    %cst_83 = arith.constant 0.000000e+00 : f32
    %160 = vector.broadcast %cst_83 : f32 to vector<8x1xf32>
    %161 = arith.subf %160, %159 : vector<8x1xf32>
    %162 = math.exp %161 : vector<8x1xf32>
    %cst_84 = arith.constant 1.000000e+00 : f32
    %163 = vector.broadcast %cst_84 : f32 to vector<8x1xf32>
    %164 = arith.addf %163, %162 : vector<8x1xf32>
    %cst_85 = arith.constant 1.000000e+00 : f32
    %165 = vector.broadcast %cst_85 : f32 to vector<8x1xf32>
    %166 = arith.divf %165, %164 : vector<8x1xf32>
    %c0_86 = arith.constant 0 : index
    %c0_87 = arith.constant 0 : index
    %c0_88 = arith.constant 0 : index
    %167 = vector.load %arg26[%c0_86, %c0_87, %c0_88] : memref<1x8x1xf32, #tpu.memory_space<vmem>>, vector<1x8x1xf32>
    %168 = vector.shape_cast %167 : vector<1x8x1xf32> to vector<8x1xf32>
    %169 = vector.shape_cast %166 : vector<8x1xf32> to vector<1x8x1xf32>
    tpu.vector_store %arg26[%c0_86, %c0_87, %c0_88], %169 {strides = array<i32>} : memref<1x8x1xf32, #tpu.memory_space<vmem>>, vector<1x8x1xf32>,
    return
  }
  func.func @transform_0(%arg0: i32) -> (i32, i32, i32) {
    %c0_i32 = arith.constant 0 : i32
    %c0_i32_0 = arith.constant 0 : i32
    %c0_i32_1 = arith.constant 0 : i32
    return %arg0, %c0_i32, %c0_i32_0 : i32, i32, i32
  }
  func.func @transform_1(%arg0: i32) -> (i32, i32, i32) {
    %c0_i32 = arith.constant 0 : i32
    %c0_i32_0 = arith.constant 0 : i32
    %c0_i32_1 = arith.constant 0 : i32
    return %arg0, %c0_i32, %c0_i32_0 : i32, i32, i32
  }
  func.func @transform_2(%arg0: i32) -> (i32, i32, i32) {
    %c0_i32 = arith.constant 0 : i32
    %c0_i32_0 = arith.constant 0 : i32
    %c0_i32_1 = arith.constant 0 : i32
    return %arg0, %c0_i32, %c0_i32_0 : i32, i32, i32
  }
  func.func @transform_3(%arg0: i32) -> (i32, i32, i32) {
    %c0_i32 = arith.constant 0 : i32
    %c0_i32_0 = arith.constant 0 : i32
    %c0_i32_1 = arith.constant 0 : i32
    return %arg0, %c0_i32, %c0_i32_0 : i32, i32, i32
  }
  func.func @transform_4(%arg0: i32) -> (i32, i32) {
    %c0_i32 = arith.constant 0 : i32
    %c0_i32_0 = arith.constant 0 : i32
    %c0_i32_1 = arith.constant 0 : i32
    return %c0_i32, %c0_i32_0 : i32, i32
  }
  func.func @transform_5(%arg0: i32) -> (i32, i32) {
    %c0_i32 = arith.constant 0 : i32
    %c0_i32_0 = arith.constant 0 : i32
    %c0_i32_1 = arith.constant 0 : i32
    return %c0_i32, %c0_i32_0 : i32, i32
  }
  func.func @transform_6(%arg0: i32) -> (i32, i32) {
    %c0_i32 = arith.constant 0 : i32
    %c0_i32_0 = arith.constant 0 : i32
    %c0_i32_1 = arith.constant 0 : i32
    return %c0_i32, %c0_i32_0 : i32, i32
  }
  func.func @transform_7(%arg0: i32) -> (i32, i32) {
    %c0_i32 = arith.constant 0 : i32
    %c0_i32_0 = arith.constant 0 : i32
    %c0_i32_1 = arith.constant 0 : i32
    return %c0_i32, %c0_i32_0 : i32, i32
  }
  func.func @transform_8(%arg0: i32) -> (i32, i32) {
    %c0_i32 = arith.constant 0 : i32
    %c0_i32_0 = arith.constant 0 : i32
    %c0_i32_1 = arith.constant 0 : i32
    return %c0_i32, %c0_i32_0 : i32, i32
  }
  func.func @transform_9(%arg0: i32) -> (i32, i32) {
    %c0_i32 = arith.constant 0 : i32
    %c0_i32_0 = arith.constant 0 : i32
    %c0_i32_1 = arith.constant 0 : i32
    return %c0_i32, %c0_i32_0 : i32, i32
  }
  func.func @transform_10(%arg0: i32) -> (i32, i32) {
    %c0_i32 = arith.constant 0 : i32
    %c0_i32_0 = arith.constant 0 : i32
    %c0_i32_1 = arith.constant 0 : i32
    return %c0_i32, %c0_i32_0 : i32, i32
  }
  func.func @transform_11(%arg0: i32) -> (i32, i32) {
    %c0_i32 = arith.constant 0 : i32
    %c0_i32_0 = arith.constant 0 : i32
    %c0_i32_1 = arith.constant 0 : i32
    return %c0_i32, %c0_i32_0 : i32, i32
  }
  func.func @transform_12(%arg0: i32) -> (i32, i32) {
    %c0_i32 = arith.constant 0 : i32
    %c0_i32_0 = arith.constant 0 : i32
    %c0_i32_1 = arith.constant 0 : i32
    return %c0_i32, %c0_i32_0 : i32, i32
  }
  func.func @transform_13(%arg0: i32) -> (i32, i32) {
    %c0_i32 = arith.constant 0 : i32
    %c0_i32_0 = arith.constant 0 : i32
    %c0_i32_1 = arith.constant 0 : i32
    return %c0_i32, %c0_i32_0 : i32, i32
  }
  func.func @transform_14(%arg0: i32) -> (i32, i32) {
    %c0_i32 = arith.constant 0 : i32
    %c0_i32_0 = arith.constant 0 : i32
    %c0_i32_1 = arith.constant 0 : i32
    return %c0_i32, %c0_i32_0 : i32, i32
  }
  func.func @transform_15(%arg0: i32) -> (i32, i32) {
    %c0_i32 = arith.constant 0 : i32
    %c0_i32_0 = arith.constant 0 : i32
    %c0_i32_1 = arith.constant 0 : i32
    return %c0_i32, %c0_i32_0 : i32, i32
  }
  func.func @transform_16(%arg0: i32) -> (i32, i32) {
    %c0_i32 = arith.constant 0 : i32
    %c0_i32_0 = arith.constant 0 : i32
    %c0_i32_1 = arith.constant 0 : i32
    return %c0_i32, %c0_i32_0 : i32, i32
  }
  func.func @transform_17(%arg0: i32) -> (i32, i32) {
    %c0_i32 = arith.constant 0 : i32
    %c0_i32_0 = arith.constant 0 : i32
    %c0_i32_1 = arith.constant 0 : i32
    return %c0_i32, %c0_i32_0 : i32, i32
  }
  func.func @transform_18(%arg0: i32) -> (i32, i32) {
    %c0_i32 = arith.constant 0 : i32
    %c0_i32_0 = arith.constant 0 : i32
    %c0_i32_1 = arith.constant 0 : i32
    return %c0_i32, %c0_i32_0 : i32, i32
  }
  func.func @transform_19(%arg0: i32) -> (i32, i32) {
    %c0_i32 = arith.constant 0 : i32
    %c0_i32_0 = arith.constant 0 : i32
    %c0_i32_1 = arith.constant 0 : i32
    return %c0_i32, %c0_i32_0 : i32, i32
  }
  func.func @transform_20(%arg0: i32) -> (i32, i32) {
    %c0_i32 = arith.constant 0 : i32
    %c0_i32_0 = arith.constant 0 : i32
    %c0_i32_1 = arith.constant 0 : i32
    return %c0_i32, %c0_i32_0 : i32, i32
  }
  func.func @transform_21(%arg0: i32) -> (i32, i32) {
    %c0_i32 = arith.constant 0 : i32
    %c0_i32_0 = arith.constant 0 : i32
    %c0_i32_1 = arith.constant 0 : i32
    return %c0_i32, %c0_i32_0 : i32, i32
  }
  func.func @transform_22(%arg0: i32) -> (i32, i32) {
    %c0_i32 = arith.constant 0 : i32
    %c0_i32_0 = arith.constant 0 : i32
    %c0_i32_1 = arith.constant 0 : i32
    return %c0_i32, %c0_i32_0 : i32, i32
  }
  func.func @transform_23(%arg0: i32) -> (i32, i32) {
    %c0_i32 = arith.constant 0 : i32
    %c0_i32_0 = arith.constant 0 : i32
    %c0_i32_1 = arith.constant 0 : i32
    return %c0_i32, %c0_i32_0 : i32, i32
  }
  func.func @transform_24(%arg0: i32) -> (i32, i32, i32) {
    %c0_i32 = arith.constant 0 : i32
    %c0_i32_0 = arith.constant 0 : i32
    %c0_i32_1 = arith.constant 0 : i32
    return %arg0, %c0_i32, %c0_i32_0 : i32, i32, i32
  }
  func.func @transform_25(%arg0: i32) -> (i32, i32, i32) {
    %c0_i32 = arith.constant 0 : i32
    %c0_i32_0 = arith.constant 0 : i32
    %c0_i32_1 = arith.constant 0 : i32
    return %arg0, %c0_i32, %c0_i32_0 : i32, i32, i32
  }
}

module attributes {stable_mosaic.version = 11 : i64} {
  func.func @_block_kernel(%arg0: i32, %arg1: memref<1x8x32xf32, #tpu.memory_space<vmem>>, %arg2: memref<1x8x32xf32, #tpu.memory_space<vmem>>, %arg3: memref<1x1x8xf32, #tpu.memory_space<vmem>>, %arg4: memref<1x8x1xf32, #tpu.memory_space<vmem>>, %arg5: memref<32x32xf32, #tpu.memory_space<vmem>>, %arg6: memref<1x32xf32, #tpu.memory_space<vmem>>, %arg7: memref<32x32xf32, #tpu.memory_space<vmem>>, %arg8: memref<1x32xf32, #tpu.memory_space<vmem>>, %arg9: memref<32x32xf32, #tpu.memory_space<vmem>>, %arg10: memref<1x32xf32, #tpu.memory_space<vmem>>, %arg11: memref<32x32xf32, #tpu.memory_space<vmem>>, %arg12: memref<1x32xf32, #tpu.memory_space<vmem>>, %arg13: memref<1x32xf32, #tpu.memory_space<vmem>>, %arg14: memref<1x32xf32, #tpu.memory_space<vmem>>, %arg15: memref<32x64xf32, #tpu.memory_space<vmem>>, %arg16: memref<1x64xf32, #tpu.memory_space<vmem>>, %arg17: memref<64x32xf32, #tpu.memory_space<vmem>>, %arg18: memref<1x32xf32, #tpu.memory_space<vmem>>, %arg19: memref<1x32xf32, #tpu.memory_space<vmem>>, %arg20: memref<1x32xf32, #tpu.memory_space<vmem>>, %arg21: memref<1x32xf32, #tpu.memory_space<vmem>>, %arg22: memref<1x32xf32, #tpu.memory_space<vmem>>, %arg23: memref<1x32xf32, #tpu.memory_space<vmem>>, %arg24: memref<1x1xf32, #tpu.memory_space<vmem>>, %arg25: memref<1x8x32xf32, #tpu.memory_space<vmem>>, %arg26: memref<1x8x1xf32, #tpu.memory_space<vmem>>) attributes {dimension_semantics = [#tpu.dimension_semantics<parallel>], iteration_bounds = array<i64: 2>, scalar_prefetch = 0 : i64, scratch_operands = 0 : i64, tpu.core_type = #tpu.core_type<tc>, window_params = [{transform_indices = @transform_0, window_bounds = array<i64: 1, 8, 32>}, {transform_indices = @transform_1, window_bounds = array<i64: 1, 8, 32>}, {transform_indices = @transform_2, window_bounds = array<i64: 1, 1, 8>}, {transform_indices = @transform_3, window_bounds = array<i64: 1, 8, 1>}, {pipeline_mode = #tpu.pipeline_mode<synchronous>, transform_indices = @transform_4, window_bounds = array<i64: 32, 32>}, {pipeline_mode = #tpu.pipeline_mode<synchronous>, transform_indices = @transform_5, window_bounds = array<i64: 1, 32>}, {pipeline_mode = #tpu.pipeline_mode<synchronous>, transform_indices = @transform_6, window_bounds = array<i64: 32, 32>}, {pipeline_mode = #tpu.pipeline_mode<synchronous>, transform_indices = @transform_7, window_bounds = array<i64: 1, 32>}, {pipeline_mode = #tpu.pipeline_mode<synchronous>, transform_indices = @transform_8, window_bounds = array<i64: 32, 32>}, {pipeline_mode = #tpu.pipeline_mode<synchronous>, transform_indices = @transform_9, window_bounds = array<i64: 1, 32>}, {pipeline_mode = #tpu.pipeline_mode<synchronous>, transform_indices = @transform_10, window_bounds = array<i64: 32, 32>}, {pipeline_mode = #tpu.pipeline_mode<synchronous>, transform_indices = @transform_11, window_bounds = array<i64: 1, 32>}, {pipeline_mode = #tpu.pipeline_mode<synchronous>, transform_indices = @transform_12, window_bounds = array<i64: 1, 32>}, {pipeline_mode = #tpu.pipeline_mode<synchronous>, transform_indices = @transform_13, window_bounds = array<i64: 1, 32>}, {pipeline_mode = #tpu.pipeline_mode<synchronous>, transform_indices = @transform_14, window_bounds = array<i64: 32, 64>}, {pipeline_mode = #tpu.pipeline_mode<synchronous>, transform_indices = @transform_15, window_bounds = array<i64: 1, 64>}, {pipeline_mode = #tpu.pipeline_mode<synchronous>, transform_indices = @transform_16, window_bounds = array<i64: 64, 32>}, {pipeline_mode = #tpu.pipeline_mode<synchronous>, transform_indices = @transform_17, window_bounds = array<i64: 1, 32>}, {pipeline_mode = #tpu.pipeline_mode<synchronous>, transform_indices = @transform_18, window_bounds = array<i64: 1, 32>}, {pipeline_mode = #tpu.pipeline_mode<synchronous>, transform_indices = @transform_19, window_bounds = array<i64: 1, 32>}, {pipeline_mode = #tpu.pipeline_mode<synchronous>, transform_indices = @transform_20, window_bounds = array<i64: 1, 32>}, {pipeline_mode = #tpu.pipeline_mode<synchronous>, transform_indices = @transform_21, window_bounds = array<i64: 1, 32>}, {pipeline_mode = #tpu.pipeline_mode<synchronous>, transform_indices = @transform_22, window_bounds = array<i64: 1, 32>}, {pipeline_mode = #tpu.pipeline_mode<synchronous>, transform_indices = @transform_23, window_bounds = array<i64: 1, 1>}, {transform_indices = @transform_24, window_bounds = array<i64: 1, 8, 32>}, {transform_indices = @transform_25, window_bounds = array<i64: 1, 8, 1>}]} {
    %c0 = arith.constant 0 : index
    %c0_0 = arith.constant 0 : index
    %c0_1 = arith.constant 0 : index
    %0 = vector.load %arg1[%c0, %c0_0, %c0_1] : memref<1x8x32xf32, #tpu.memory_space<vmem>>, vector<1x8x32xf32>
    %1 = vector.shape_cast %0 : vector<1x8x32xf32> to vector<8x32xf32>
    %c0_2 = arith.constant 0 : index
    %c0_3 = arith.constant 0 : index
    %c0_4 = arith.constant 0 : index
    %2 = vector.load %arg2[%c0_2, %c0_3, %c0_4] : memref<1x8x32xf32, #tpu.memory_space<vmem>>, vector<1x8x32xf32>
    %3 = vector.shape_cast %2 : vector<1x8x32xf32> to vector<8x32xf32>
    %c0_5 = arith.constant 0 : index
    %c0_6 = arith.constant 0 : index
    %4 = vector.load %arg5[%c0_5, %c0_6] : memref<32x32xf32, #tpu.memory_space<vmem>>, vector<32x32xf32>
    %cst = arith.constant dense<0.000000e+00> : vector<8x32xf32>
    %5 = tpu.matmul %1, %4, %cst {dimension_numbers = #tpu.dot_dimension_numbers<[1], [0], [0], [1], [0, 0, 1, 1], [], []>} : vector<8x32xf32>, vector<32x32xf32>, vector<8x32xf32> -> vector<8x32xf32>
    %c0_7 = arith.constant 0 : index
    %c0_8 = arith.constant 0 : index
    %6 = vector.load %arg6[%c0_7, %c0_8] : memref<1x32xf32, #tpu.memory_space<vmem>>, vector<1x32xf32>
    %7 = vector.broadcast %6 : vector<1x32xf32> to vector<8x32xf32>
    %8 = arith.addf %5, %7 : vector<8x32xf32>
    %c0_9 = arith.constant 0 : index
    %c0_10 = arith.constant 0 : index
    %9 = vector.load %arg7[%c0_9, %c0_10] : memref<32x32xf32, #tpu.memory_space<vmem>>, vector<32x32xf32>
    %cst_11 = arith.constant dense<0.000000e+00> : vector<8x32xf32>
    %10 = tpu.matmul %3, %9, %cst_11 {dimension_numbers = #tpu.dot_dimension_numbers<[1], [0], [0], [1], [0, 0, 1, 1], [], []>} : vector<8x32xf32>, vector<32x32xf32>, vector<8x32xf32> -> vector<8x32xf32>
    %c0_12 = arith.constant 0 : index
    %c0_13 = arith.constant 0 : index
    %11 = vector.load %arg8[%c0_12, %c0_13] : memref<1x32xf32, #tpu.memory_space<vmem>>, vector<1x32xf32>
    %12 = vector.broadcast %11 : vector<1x32xf32> to vector<8x32xf32>
    %13 = arith.addf %10, %12 : vector<8x32xf32>
    %c0_14 = arith.constant 0 : index
    %c0_15 = arith.constant 0 : index
    %14 = vector.load %arg9[%c0_14, %c0_15] : memref<32x32xf32, #tpu.memory_space<vmem>>, vector<32x32xf32>
    %cst_16 = arith.constant dense<0.000000e+00> : vector<8x32xf32>
    %15 = tpu.matmul %3, %14, %cst_16 {dimension_numbers = #tpu.dot_dimension_numbers<[1], [0], [0], [1], [0, 0, 1, 1], [], []>} : vector<8x32xf32>, vector<32x32xf32>, vector<8x32xf32> -> vector<8x32xf32>
    %c0_17 = arith.constant 0 : index
    %c0_18 = arith.constant 0 : index
    %16 = vector.load %arg10[%c0_17, %c0_18] : memref<1x32xf32, #tpu.memory_space<vmem>>, vector<1x32xf32>
    %17 = vector.broadcast %16 : vector<1x32xf32> to vector<8x32xf32>
    %18 = arith.addf %15, %17 : vector<8x32xf32>
    %c0_19 = arith.constant 0 : index
    %c0_20 = arith.constant 0 : index
    %c0_21 = arith.constant 0 : index
    %19 = vector.load %arg3[%c0_19, %c0_20, %c0_21] : memref<1x1x8xf32, #tpu.memory_space<vmem>>, vector<1x1x8xf32>
    %20 = vector.shape_cast %19 : vector<1x1x8xf32> to vector<1x8xf32>
    %cst_22 = arith.constant 0.000000e+00 : f32
    %21 = vector.broadcast %cst_22 : f32 to vector<1x8xf32>
    %22 = arith.cmpf ogt, %20, %21 : vector<1x8xf32>
    %cst_23 = arith.constant 0.000000e+00 : f32
    %cst_24 = arith.constant -1.000000e+09 : f32
    %23 = vector.broadcast %cst_23 : f32 to vector<1x8xf32>
    %24 = vector.broadcast %cst_24 : f32 to vector<1x8xf32>
    %25 = arith.select %22, %23, %24 : vector<1x8xi1>, vector<1x8xf32>
    %26 = tpu.iota {dimensions = array<i32: 1>} : vector<1x32xi32>
    %cst_25 = arith.constant 0.000000e+00 : f32
    %27 = vector.broadcast %cst_25 : f32 to vector<8x32xf32>
    %c0_i32 = arith.constant 0 : i32
    %28 = vector.broadcast %c0_i32 : i32 to vector<1x32xi32>
    %29 = arith.cmpi sge, %26, %28 : vector<1x32xi32>
    %c16_i32 = arith.constant 16 : i32
    %30 = vector.broadcast %c16_i32 : i32 to vector<1x32xi32>
    %31 = arith.cmpi slt, %26, %30 : vector<1x32xi32>
    %32 = arith.andi %29, %31 : vector<1x32xi1>
    %cst_26 = arith.constant 1.000000e+00 : f32
    %cst_27 = arith.constant 0.000000e+00 : f32
    %33 = vector.broadcast %cst_26 : f32 to vector<1x32xf32>
    %34 = vector.broadcast %cst_27 : f32 to vector<1x32xf32>
    %35 = arith.select %32, %33, %34 : vector<1x32xi1>, vector<1x32xf32>
    %36 = vector.broadcast %35 : vector<1x32xf32> to vector<8x32xf32>
    %37 = arith.mulf %13, %36 : vector<8x32xf32>
    %38 = vector.broadcast %35 : vector<1x32xf32> to vector<8x32xf32>
    %39 = arith.mulf %18, %38 : vector<8x32xf32>
    %cst_28 = arith.constant dense<0.000000e+00> : vector<8x8xf32>
    %40 = tpu.matmul %8, %37, %cst_28 {dimension_numbers = #tpu.dot_dimension_numbers<[1], [1], [0], [0], [0, 0, 1, 0], [], []>} : vector<8x32xf32>, vector<8x32xf32>, vector<8x8xf32> -> vector<8x8xf32>
    %cst_29 = arith.constant 2.500000e-01 : f32
    %41 = vector.broadcast %cst_29 : f32 to vector<8x8xf32>
    %42 = arith.mulf %40, %41 : vector<8x8xf32>
    %43 = vector.broadcast %25 : vector<1x8xf32> to vector<8x8xf32>
    %44 = arith.addf %42, %43 : vector<8x8xf32>
    %cst_30 = arith.constant dense<0xFF800000> : vector<8xf32>
    %45 = vector.multi_reduction <maximumf>, %44, %cst_30 [1] : vector<8x8xf32> to vector<8xf32>
    %46 = vector.shape_cast %45 : vector<8xf32> to vector<8x1xf32>
    %47 = vector.broadcast %46 : vector<8x1xf32> to vector<8x8xf32>
    %48 = arith.subf %44, %47 : vector<8x8xf32>
    %49 = math.exp %48 : vector<8x8xf32>
    %cst_31 = arith.constant dense<0.000000e+00> : vector<8xf32>
    %50 = vector.multi_reduction <add>, %49, %cst_31 [1] : vector<8x8xf32> to vector<8xf32>
    %51 = vector.shape_cast %50 : vector<8xf32> to vector<8x1xf32>
    %52 = tpu.reciprocal %51 {approx = true} : vector<8x1xf32> -> vector<8x1xf32>
    %53 = vector.broadcast %52 : vector<8x1xf32> to vector<8x8xf32>
    %54 = arith.mulf %49, %53 : vector<8x8xf32>
    %cst_32 = arith.constant dense<0.000000e+00> : vector<8x32xf32>
    %55 = tpu.matmul %54, %39, %cst_32 {dimension_numbers = #tpu.dot_dimension_numbers<[1], [0], [0], [1], [0, 0, 1, 1], [], []>} : vector<8x8xf32>, vector<8x32xf32>, vector<8x32xf32> -> vector<8x32xf32>
    %56 = arith.addf %27, %55 : vector<8x32xf32>
    %c16_i32_33 = arith.constant 16 : i32
    %57 = vector.broadcast %c16_i32_33 : i32 to vector<1x32xi32>
    %58 = arith.cmpi sge, %26, %57 : vector<1x32xi32>
    %c32_i32 = arith.constant 32 : i32
    %59 = vector.broadcast %c32_i32 : i32 to vector<1x32xi32>
    %60 = arith.cmpi slt, %26, %59 : vector<1x32xi32>
    %61 = arith.andi %58, %60 : vector<1x32xi1>
    %cst_34 = arith.constant 1.000000e+00 : f32
    %cst_35 = arith.constant 0.000000e+00 : f32
    %62 = vector.broadcast %cst_34 : f32 to vector<1x32xf32>
    %63 = vector.broadcast %cst_35 : f32 to vector<1x32xf32>
    %64 = arith.select %61, %62, %63 : vector<1x32xi1>, vector<1x32xf32>
    %65 = vector.broadcast %64 : vector<1x32xf32> to vector<8x32xf32>
    %66 = arith.mulf %13, %65 : vector<8x32xf32>
    %67 = vector.broadcast %64 : vector<1x32xf32> to vector<8x32xf32>
    %68 = arith.mulf %18, %67 : vector<8x32xf32>
    %cst_36 = arith.constant dense<0.000000e+00> : vector<8x8xf32>
    %69 = tpu.matmul %8, %66, %cst_36 {dimension_numbers = #tpu.dot_dimension_numbers<[1], [1], [0], [0], [0, 0, 1, 0], [], []>} : vector<8x32xf32>, vector<8x32xf32>, vector<8x8xf32> -> vector<8x8xf32>
    %cst_37 = arith.constant 2.500000e-01 : f32
    %70 = vector.broadcast %cst_37 : f32 to vector<8x8xf32>
    %71 = arith.mulf %69, %70 : vector<8x8xf32>
    %72 = vector.broadcast %25 : vector<1x8xf32> to vector<8x8xf32>
    %73 = arith.addf %71, %72 : vector<8x8xf32>
    %cst_38 = arith.constant dense<0xFF800000> : vector<8xf32>
    %74 = vector.multi_reduction <maximumf>, %73, %cst_38 [1] : vector<8x8xf32> to vector<8xf32>
    %75 = vector.shape_cast %74 : vector<8xf32> to vector<8x1xf32>
    %76 = vector.broadcast %75 : vector<8x1xf32> to vector<8x8xf32>
    %77 = arith.subf %73, %76 : vector<8x8xf32>
    %78 = math.exp %77 : vector<8x8xf32>
    %cst_39 = arith.constant dense<0.000000e+00> : vector<8xf32>
    %79 = vector.multi_reduction <add>, %78, %cst_39 [1] : vector<8x8xf32> to vector<8xf32>
    %80 = vector.shape_cast %79 : vector<8xf32> to vector<8x1xf32>
    %81 = tpu.reciprocal %80 {approx = true} : vector<8x1xf32> -> vector<8x1xf32>
    %82 = vector.broadcast %81 : vector<8x1xf32> to vector<8x8xf32>
    %83 = arith.mulf %78, %82 : vector<8x8xf32>
    %cst_40 = arith.constant dense<0.000000e+00> : vector<8x32xf32>
    %84 = tpu.matmul %83, %68, %cst_40 {dimension_numbers = #tpu.dot_dimension_numbers<[1], [0], [0], [1], [0, 0, 1, 1], [], []>} : vector<8x8xf32>, vector<8x32xf32>, vector<8x32xf32> -> vector<8x32xf32>
    %85 = arith.addf %56, %84 : vector<8x32xf32>
    %c0_41 = arith.constant 0 : index
    %c0_42 = arith.constant 0 : index
    %86 = vector.load %arg11[%c0_41, %c0_42] : memref<32x32xf32, #tpu.memory_space<vmem>>, vector<32x32xf32>
    %cst_43 = arith.constant dense<0.000000e+00> : vector<8x32xf32>
    %87 = tpu.matmul %85, %86, %cst_43 {dimension_numbers = #tpu.dot_dimension_numbers<[1], [0], [0], [1], [0, 0, 1, 1], [], []>} : vector<8x32xf32>, vector<32x32xf32>, vector<8x32xf32> -> vector<8x32xf32>
    %c0_44 = arith.constant 0 : index
    %c0_45 = arith.constant 0 : index
    %88 = vector.load %arg12[%c0_44, %c0_45] : memref<1x32xf32, #tpu.memory_space<vmem>>, vector<1x32xf32>
    %89 = vector.broadcast %88 : vector<1x32xf32> to vector<8x32xf32>
    %90 = arith.addf %87, %89 : vector<8x32xf32>
    %91 = arith.addf %1, %90 : vector<8x32xf32>
    %c0_46 = arith.constant 0 : index
    %c0_47 = arith.constant 0 : index
    %92 = vector.load %arg13[%c0_46, %c0_47] : memref<1x32xf32, #tpu.memory_space<vmem>>, vector<1x32xf32>
    %c0_48 = arith.constant 0 : index
    %c0_49 = arith.constant 0 : index
    %93 = vector.load %arg14[%c0_48, %c0_49] : memref<1x32xf32, #tpu.memory_space<vmem>>, vector<1x32xf32>
    %cst_50 = arith.constant dense<0.000000e+00> : vector<8xf32>
    %94 = vector.multi_reduction <add>, %91, %cst_50 [1] : vector<8x32xf32> to vector<8xf32>
    %95 = vector.shape_cast %94 : vector<8xf32> to vector<8x1xf32>
    %cst_51 = arith.constant 3.200000e+01 : f32
    %96 = vector.broadcast %cst_51 : f32 to vector<8x1xf32>
    %97 = arith.divf %95, %96 : vector<8x1xf32>
    %98 = vector.broadcast %97 : vector<8x1xf32> to vector<8x32xf32>
    %99 = arith.subf %91, %98 : vector<8x32xf32>
    %100 = arith.mulf %99, %99 : vector<8x32xf32>
    %cst_52 = arith.constant dense<0.000000e+00> : vector<8xf32>
    %101 = vector.multi_reduction <add>, %100, %cst_52 [1] : vector<8x32xf32> to vector<8xf32>
    %102 = vector.shape_cast %101 : vector<8xf32> to vector<8x1xf32>
    %cst_53 = arith.constant 3.200000e+01 : f32
    %103 = vector.broadcast %cst_53 : f32 to vector<8x1xf32>
    %104 = arith.divf %102, %103 : vector<8x1xf32>
    %cst_54 = arith.constant 9.99999996E-13 : f32
    %105 = vector.broadcast %cst_54 : f32 to vector<8x1xf32>
    %106 = arith.addf %104, %105 : vector<8x1xf32>
    %107 = math.rsqrt %106 : vector<8x1xf32>
    %108 = vector.broadcast %107 : vector<8x1xf32> to vector<8x32xf32>
    %109 = arith.mulf %99, %108 : vector<8x32xf32>
    %110 = vector.broadcast %92 : vector<1x32xf32> to vector<8x32xf32>
    %111 = arith.mulf %109, %110 : vector<8x32xf32>
    %112 = vector.broadcast %93 : vector<1x32xf32> to vector<8x32xf32>
    %113 = arith.addf %111, %112 : vector<8x32xf32>
    %c0_55 = arith.constant 0 : index
    %c0_56 = arith.constant 0 : index
    %114 = vector.load %arg15[%c0_55, %c0_56] : memref<32x64xf32, #tpu.memory_space<vmem>>, vector<32x64xf32>
    %cst_57 = arith.constant dense<0.000000e+00> : vector<8x64xf32>
    %115 = tpu.matmul %113, %114, %cst_57 {dimension_numbers = #tpu.dot_dimension_numbers<[1], [0], [0], [1], [0, 0, 1, 1], [], []>} : vector<8x32xf32>, vector<32x64xf32>, vector<8x64xf32> -> vector<8x64xf32>
    %c0_58 = arith.constant 0 : index
    %c0_59 = arith.constant 0 : index
    %116 = vector.load %arg16[%c0_58, %c0_59] : memref<1x64xf32, #tpu.memory_space<vmem>>, vector<1x64xf32>
    %117 = vector.broadcast %116 : vector<1x64xf32> to vector<8x64xf32>
    %118 = arith.addf %115, %117 : vector<8x64xf32>
    %cst_60 = arith.constant 0.000000e+00 : f32
    %119 = vector.broadcast %cst_60 : f32 to vector<8x64xf32>
    %120 = arith.maximumf %118, %119 : vector<8x64xf32>
    %c0_61 = arith.constant 0 : index
    %c0_62 = arith.constant 0 : index
    %121 = vector.load %arg17[%c0_61, %c0_62] : memref<64x32xf32, #tpu.memory_space<vmem>>, vector<64x32xf32>
    %cst_63 = arith.constant dense<0.000000e+00> : vector<8x32xf32>
    %122 = tpu.matmul %120, %121, %cst_63 {dimension_numbers = #tpu.dot_dimension_numbers<[1], [0], [0], [1], [0, 0, 1, 1], [], []>} : vector<8x64xf32>, vector<64x32xf32>, vector<8x32xf32> -> vector<8x32xf32>
    %c0_64 = arith.constant 0 : index
    %c0_65 = arith.constant 0 : index
    %123 = vector.load %arg18[%c0_64, %c0_65] : memref<1x32xf32, #tpu.memory_space<vmem>>, vector<1x32xf32>
    %124 = vector.broadcast %123 : vector<1x32xf32> to vector<8x32xf32>
    %125 = arith.addf %122, %124 : vector<8x32xf32>
    %126 = arith.addf %113, %125 : vector<8x32xf32>
    %c0_66 = arith.constant 0 : index
    %c0_67 = arith.constant 0 : index
    %127 = vector.load %arg19[%c0_66, %c0_67] : memref<1x32xf32, #tpu.memory_space<vmem>>, vector<1x32xf32>
    %c0_68 = arith.constant 0 : index
    %c0_69 = arith.constant 0 : index
    %128 = vector.load %arg20[%c0_68, %c0_69] : memref<1x32xf32, #tpu.memory_space<vmem>>, vector<1x32xf32>
    %cst_70 = arith.constant dense<0.000000e+00> : vector<8xf32>
    %129 = vector.multi_reduction <add>, %126, %cst_70 [1] : vector<8x32xf32> to vector<8xf32>
    %130 = vector.shape_cast %129 : vector<8xf32> to vector<8x1xf32>
    %cst_71 = arith.constant 3.200000e+01 : f32
    %131 = vector.broadcast %cst_71 : f32 to vector<8x1xf32>
    %132 = arith.divf %130, %131 : vector<8x1xf32>
    %133 = vector.broadcast %132 : vector<8x1xf32> to vector<8x32xf32>
    %134 = arith.subf %126, %133 : vector<8x32xf32>
    %135 = arith.mulf %134, %134 : vector<8x32xf32>
    %cst_72 = arith.constant dense<0.000000e+00> : vector<8xf32>
    %136 = vector.multi_reduction <add>, %135, %cst_72 [1] : vector<8x32xf32> to vector<8xf32>
    %137 = vector.shape_cast %136 : vector<8xf32> to vector<8x1xf32>
    %cst_73 = arith.constant 3.200000e+01 : f32
    %138 = vector.broadcast %cst_73 : f32 to vector<8x1xf32>
    %139 = arith.divf %137, %138 : vector<8x1xf32>
    %cst_74 = arith.constant 9.99999996E-13 : f32
    %140 = vector.broadcast %cst_74 : f32 to vector<8x1xf32>
    %141 = arith.addf %139, %140 : vector<8x1xf32>
    %142 = math.rsqrt %141 : vector<8x1xf32>
    %143 = vector.broadcast %142 : vector<8x1xf32> to vector<8x32xf32>
    %144 = arith.mulf %134, %143 : vector<8x32xf32>
    %145 = vector.broadcast %127 : vector<1x32xf32> to vector<8x32xf32>
    %146 = arith.mulf %144, %145 : vector<8x32xf32>
    %147 = vector.broadcast %128 : vector<1x32xf32> to vector<8x32xf32>
    %148 = arith.addf %146, %147 : vector<8x32xf32>
    %c0_75 = arith.constant 0 : index
    %c0_76 = arith.constant 0 : index
    %c0_77 = arith.constant 0 : index
    %149 = vector.load %arg4[%c0_75, %c0_76, %c0_77] : memref<1x8x1xf32, #tpu.memory_space<vmem>>, vector<1x8x1xf32>
    %150 = vector.shape_cast %149 : vector<1x8x1xf32> to vector<8x1xf32>
    %151 = vector.broadcast %150 : vector<8x1xf32> to vector<8x32xf32>
    %152 = arith.mulf %148, %151 : vector<8x32xf32>
    %c0_78 = arith.constant 0 : index
    %c0_79 = arith.constant 0 : index
    %153 = vector.load %arg21[%c0_78, %c0_79] : memref<1x32xf32, #tpu.memory_space<vmem>>, vector<1x32xf32>
    %c0_80 = arith.constant 0 : index
    %c0_81 = arith.constant 0 : index
    %154 = vector.load %arg22[%c0_80, %c0_81] : memref<1x32xf32, #tpu.memory_space<vmem>>, vector<1x32xf32>
    %cst_82 = arith.constant dense<0.000000e+00> : vector<8xf32>
    %155 = vector.multi_reduction <add>, %152, %cst_82 [1] : vector<8x32xf32> to vector<8xf32>
    %156 = vector.shape_cast %155 : vector<8xf32> to vector<8x1xf32>
    %cst_83 = arith.constant 3.200000e+01 : f32
    %157 = vector.broadcast %cst_83 : f32 to vector<8x1xf32>
    %158 = arith.divf %156, %157 : vector<8x1xf32>
    %159 = vector.broadcast %158 : vector<8x1xf32> to vector<8x32xf32>
    %160 = arith.subf %152, %159 : vector<8x32xf32>
    %161 = arith.mulf %160, %160 : vector<8x32xf32>
    %cst_84 = arith.constant dense<0.000000e+00> : vector<8xf32>
    %162 = vector.multi_reduction <add>, %161, %cst_84 [1] : vector<8x32xf32> to vector<8xf32>
    %163 = vector.shape_cast %162 : vector<8xf32> to vector<8x1xf32>
    %cst_85 = arith.constant 3.200000e+01 : f32
    %164 = vector.broadcast %cst_85 : f32 to vector<8x1xf32>
    %165 = arith.divf %163, %164 : vector<8x1xf32>
    %cst_86 = arith.constant 9.99999996E-13 : f32
    %166 = vector.broadcast %cst_86 : f32 to vector<8x1xf32>
    %167 = arith.addf %165, %166 : vector<8x1xf32>
    %168 = math.rsqrt %167 : vector<8x1xf32>
    %169 = vector.broadcast %168 : vector<8x1xf32> to vector<8x32xf32>
    %170 = arith.mulf %160, %169 : vector<8x32xf32>
    %171 = vector.broadcast %153 : vector<1x32xf32> to vector<8x32xf32>
    %172 = arith.mulf %170, %171 : vector<8x32xf32>
    %173 = vector.broadcast %154 : vector<1x32xf32> to vector<8x32xf32>
    %174 = arith.addf %172, %173 : vector<8x32xf32>
    %c0_87 = arith.constant 0 : index
    %c0_88 = arith.constant 0 : index
    %c0_89 = arith.constant 0 : index
    %175 = vector.load %arg25[%c0_87, %c0_88, %c0_89] : memref<1x8x32xf32, #tpu.memory_space<vmem>>, vector<1x8x32xf32>
    %176 = vector.shape_cast %175 : vector<1x8x32xf32> to vector<8x32xf32>
    %177 = vector.shape_cast %174 : vector<8x32xf32> to vector<1x8x32xf32>
    tpu.vector_store %arg25[%c0_87, %c0_88, %c0_89], %177 {strides = array<i32>} : memref<1x8x32xf32, #tpu.memory_space<vmem>>, vector<1x8x32xf32>,
    %c0_90 = arith.constant 0 : index
    %c0_91 = arith.constant 0 : index
    %178 = vector.load %arg23[%c0_90, %c0_91] : memref<1x32xf32, #tpu.memory_space<vmem>>, vector<1x32xf32>
    %179 = vector.broadcast %178 : vector<1x32xf32> to vector<8x32xf32>
    %180 = arith.mulf %174, %179 : vector<8x32xf32>
    %cst_92 = arith.constant dense<0.000000e+00> : vector<8xf32>
    %181 = vector.multi_reduction <add>, %180, %cst_92 [1] : vector<8x32xf32> to vector<8xf32>
    %182 = vector.shape_cast %181 : vector<8xf32> to vector<8x1xf32>
    %c0_93 = arith.constant 0 : index
    %c0_94 = arith.constant 0 : index
    %183 = vector.load %arg24[%c0_93, %c0_94] : memref<1x1xf32, #tpu.memory_space<vmem>>, vector<1x1xf32>
    %184 = vector.broadcast %183 : vector<1x1xf32> to vector<8x1xf32>
    %185 = arith.addf %182, %184 : vector<8x1xf32>
    %cst_95 = arith.constant 0.000000e+00 : f32
    %186 = vector.broadcast %cst_95 : f32 to vector<8x1xf32>
    %187 = arith.subf %186, %185 : vector<8x1xf32>
    %188 = math.exp %187 : vector<8x1xf32>
    %cst_96 = arith.constant 1.000000e+00 : f32
    %189 = vector.broadcast %cst_96 : f32 to vector<8x1xf32>
    %190 = arith.addf %189, %188 : vector<8x1xf32>
    %cst_97 = arith.constant 1.000000e+00 : f32
    %191 = vector.broadcast %cst_97 : f32 to vector<8x1xf32>
    %192 = arith.divf %191, %190 : vector<8x1xf32>
    %c0_98 = arith.constant 0 : index
    %c0_99 = arith.constant 0 : index
    %c0_100 = arith.constant 0 : index
    %193 = vector.load %arg26[%c0_98, %c0_99, %c0_100] : memref<1x8x1xf32, #tpu.memory_space<vmem>>, vector<1x8x1xf32>
    %194 = vector.shape_cast %193 : vector<1x8x1xf32> to vector<8x1xf32>
    %195 = vector.shape_cast %192 : vector<8x1xf32> to vector<1x8x1xf32>
    tpu.vector_store %arg26[%c0_98, %c0_99, %c0_100], %195 {strides = array<i32>} : memref<1x8x1xf32, #tpu.memory_space<vmem>>, vector<1x8x1xf32>,
    return
  }
  func.func @transform_0(%arg0: i32) -> (i32, i32, i32) {
    %c0_i32 = arith.constant 0 : i32
    %c0_i32_0 = arith.constant 0 : i32
    %c0_i32_1 = arith.constant 0 : i32
    return %arg0, %c0_i32, %c0_i32_0 : i32, i32, i32
  }
  func.func @transform_1(%arg0: i32) -> (i32, i32, i32) {
    %c0_i32 = arith.constant 0 : i32
    %c0_i32_0 = arith.constant 0 : i32
    %c0_i32_1 = arith.constant 0 : i32
    return %arg0, %c0_i32, %c0_i32_0 : i32, i32, i32
  }
  func.func @transform_2(%arg0: i32) -> (i32, i32, i32) {
    %c0_i32 = arith.constant 0 : i32
    %c0_i32_0 = arith.constant 0 : i32
    %c0_i32_1 = arith.constant 0 : i32
    return %arg0, %c0_i32, %c0_i32_0 : i32, i32, i32
  }
  func.func @transform_3(%arg0: i32) -> (i32, i32, i32) {
    %c0_i32 = arith.constant 0 : i32
    %c0_i32_0 = arith.constant 0 : i32
    %c0_i32_1 = arith.constant 0 : i32
    return %arg0, %c0_i32, %c0_i32_0 : i32, i32, i32
  }
  func.func @transform_4(%arg0: i32) -> (i32, i32) {
    %c0_i32 = arith.constant 0 : i32
    %c0_i32_0 = arith.constant 0 : i32
    %c0_i32_1 = arith.constant 0 : i32
    return %c0_i32, %c0_i32_0 : i32, i32
  }
  func.func @transform_5(%arg0: i32) -> (i32, i32) {
    %c0_i32 = arith.constant 0 : i32
    %c0_i32_0 = arith.constant 0 : i32
    %c0_i32_1 = arith.constant 0 : i32
    return %c0_i32, %c0_i32_0 : i32, i32
  }
  func.func @transform_6(%arg0: i32) -> (i32, i32) {
    %c0_i32 = arith.constant 0 : i32
    %c0_i32_0 = arith.constant 0 : i32
    %c0_i32_1 = arith.constant 0 : i32
    return %c0_i32, %c0_i32_0 : i32, i32
  }
  func.func @transform_7(%arg0: i32) -> (i32, i32) {
    %c0_i32 = arith.constant 0 : i32
    %c0_i32_0 = arith.constant 0 : i32
    %c0_i32_1 = arith.constant 0 : i32
    return %c0_i32, %c0_i32_0 : i32, i32
  }
  func.func @transform_8(%arg0: i32) -> (i32, i32) {
    %c0_i32 = arith.constant 0 : i32
    %c0_i32_0 = arith.constant 0 : i32
    %c0_i32_1 = arith.constant 0 : i32
    return %c0_i32, %c0_i32_0 : i32, i32
  }
  func.func @transform_9(%arg0: i32) -> (i32, i32) {
    %c0_i32 = arith.constant 0 : i32
    %c0_i32_0 = arith.constant 0 : i32
    %c0_i32_1 = arith.constant 0 : i32
    return %c0_i32, %c0_i32_0 : i32, i32
  }
  func.func @transform_10(%arg0: i32) -> (i32, i32) {
    %c0_i32 = arith.constant 0 : i32
    %c0_i32_0 = arith.constant 0 : i32
    %c0_i32_1 = arith.constant 0 : i32
    return %c0_i32, %c0_i32_0 : i32, i32
  }
  func.func @transform_11(%arg0: i32) -> (i32, i32) {
    %c0_i32 = arith.constant 0 : i32
    %c0_i32_0 = arith.constant 0 : i32
    %c0_i32_1 = arith.constant 0 : i32
    return %c0_i32, %c0_i32_0 : i32, i32
  }
  func.func @transform_12(%arg0: i32) -> (i32, i32) {
    %c0_i32 = arith.constant 0 : i32
    %c0_i32_0 = arith.constant 0 : i32
    %c0_i32_1 = arith.constant 0 : i32
    return %c0_i32, %c0_i32_0 : i32, i32
  }
  func.func @transform_13(%arg0: i32) -> (i32, i32) {
    %c0_i32 = arith.constant 0 : i32
    %c0_i32_0 = arith.constant 0 : i32
    %c0_i32_1 = arith.constant 0 : i32
    return %c0_i32, %c0_i32_0 : i32, i32
  }
  func.func @transform_14(%arg0: i32) -> (i32, i32) {
    %c0_i32 = arith.constant 0 : i32
    %c0_i32_0 = arith.constant 0 : i32
    %c0_i32_1 = arith.constant 0 : i32
    return %c0_i32, %c0_i32_0 : i32, i32
  }
  func.func @transform_15(%arg0: i32) -> (i32, i32) {
    %c0_i32 = arith.constant 0 : i32
    %c0_i32_0 = arith.constant 0 : i32
    %c0_i32_1 = arith.constant 0 : i32
    return %c0_i32, %c0_i32_0 : i32, i32
  }
  func.func @transform_16(%arg0: i32) -> (i32, i32) {
    %c0_i32 = arith.constant 0 : i32
    %c0_i32_0 = arith.constant 0 : i32
    %c0_i32_1 = arith.constant 0 : i32
    return %c0_i32, %c0_i32_0 : i32, i32
  }
  func.func @transform_17(%arg0: i32) -> (i32, i32) {
    %c0_i32 = arith.constant 0 : i32
    %c0_i32_0 = arith.constant 0 : i32
    %c0_i32_1 = arith.constant 0 : i32
    return %c0_i32, %c0_i32_0 : i32, i32
  }
  func.func @transform_18(%arg0: i32) -> (i32, i32) {
    %c0_i32 = arith.constant 0 : i32
    %c0_i32_0 = arith.constant 0 : i32
    %c0_i32_1 = arith.constant 0 : i32
    return %c0_i32, %c0_i32_0 : i32, i32
  }
  func.func @transform_19(%arg0: i32) -> (i32, i32) {
    %c0_i32 = arith.constant 0 : i32
    %c0_i32_0 = arith.constant 0 : i32
    %c0_i32_1 = arith.constant 0 : i32
    return %c0_i32, %c0_i32_0 : i32, i32
  }
  func.func @transform_20(%arg0: i32) -> (i32, i32) {
    %c0_i32 = arith.constant 0 : i32
    %c0_i32_0 = arith.constant 0 : i32
    %c0_i32_1 = arith.constant 0 : i32
    return %c0_i32, %c0_i32_0 : i32, i32
  }
  func.func @transform_21(%arg0: i32) -> (i32, i32) {
    %c0_i32 = arith.constant 0 : i32
    %c0_i32_0 = arith.constant 0 : i32
    %c0_i32_1 = arith.constant 0 : i32
    return %c0_i32, %c0_i32_0 : i32, i32
  }
  func.func @transform_22(%arg0: i32) -> (i32, i32) {
    %c0_i32 = arith.constant 0 : i32
    %c0_i32_0 = arith.constant 0 : i32
    %c0_i32_1 = arith.constant 0 : i32
    return %c0_i32, %c0_i32_0 : i32, i32
  }
  func.func @transform_23(%arg0: i32) -> (i32, i32) {
    %c0_i32 = arith.constant 0 : i32
    %c0_i32_0 = arith.constant 0 : i32
    %c0_i32_1 = arith.constant 0 : i32
    return %c0_i32, %c0_i32_0 : i32, i32
  }
  func.func @transform_24(%arg0: i32) -> (i32, i32, i32) {
    %c0_i32 = arith.constant 0 : i32
    %c0_i32_0 = arith.constant 0 : i32
    %c0_i32_1 = arith.constant 0 : i32
    return %arg0, %c0_i32, %c0_i32_0 : i32, i32, i32
  }
  func.func @transform_25(%arg0: i32) -> (i32, i32, i32) {
    %c0_i32 = arith.constant 0 : i32
    %c0_i32_0 = arith.constant 0 : i32
    %c0_i32_1 = arith.constant 0 : i32
    return %arg0, %c0_i32, %c0_i32_0 : i32, i32, i32
  }
}

module attributes {stable_mosaic.version = 11 : i64} {
  func.func @_block_kernel(%arg0: i32, %arg1: memref<1x8x32xf32, #tpu.memory_space<vmem>>, %arg2: memref<1x8x32xf32, #tpu.memory_space<vmem>>, %arg3: memref<1x1x8xf32, #tpu.memory_space<vmem>>, %arg4: memref<1x8x1xf32, #tpu.memory_space<vmem>>, %arg5: memref<32x32xf32, #tpu.memory_space<vmem>>, %arg6: memref<1x32xf32, #tpu.memory_space<vmem>>, %arg7: memref<32x32xf32, #tpu.memory_space<vmem>>, %arg8: memref<1x32xf32, #tpu.memory_space<vmem>>, %arg9: memref<32x32xf32, #tpu.memory_space<vmem>>, %arg10: memref<1x32xf32, #tpu.memory_space<vmem>>, %arg11: memref<32x32xf32, #tpu.memory_space<vmem>>, %arg12: memref<1x32xf32, #tpu.memory_space<vmem>>, %arg13: memref<1x32xf32, #tpu.memory_space<vmem>>, %arg14: memref<1x32xf32, #tpu.memory_space<vmem>>, %arg15: memref<32x64xf32, #tpu.memory_space<vmem>>, %arg16: memref<1x64xf32, #tpu.memory_space<vmem>>, %arg17: memref<64x32xf32, #tpu.memory_space<vmem>>, %arg18: memref<1x32xf32, #tpu.memory_space<vmem>>, %arg19: memref<1x32xf32, #tpu.memory_space<vmem>>, %arg20: memref<1x32xf32, #tpu.memory_space<vmem>>, %arg21: memref<1x32xf32, #tpu.memory_space<vmem>>, %arg22: memref<1x32xf32, #tpu.memory_space<vmem>>, %arg23: memref<1x32xf32, #tpu.memory_space<vmem>>, %arg24: memref<1x1xf32, #tpu.memory_space<vmem>>, %arg25: memref<1x8x32xf32, #tpu.memory_space<vmem>>, %arg26: memref<1x8x1xf32, #tpu.memory_space<vmem>>) attributes {dimension_semantics = [#tpu.dimension_semantics<parallel>], iteration_bounds = array<i64: 2>, scalar_prefetch = 0 : i64, scratch_operands = 0 : i64, tpu.core_type = #tpu.core_type<tc>, window_params = [{transform_indices = @transform_0, window_bounds = array<i64: 1, 8, 32>}, {transform_indices = @transform_1, window_bounds = array<i64: 1, 8, 32>}, {transform_indices = @transform_2, window_bounds = array<i64: 1, 1, 8>}, {transform_indices = @transform_3, window_bounds = array<i64: 1, 8, 1>}, {pipeline_mode = #tpu.pipeline_mode<synchronous>, transform_indices = @transform_4, window_bounds = array<i64: 32, 32>}, {pipeline_mode = #tpu.pipeline_mode<synchronous>, transform_indices = @transform_5, window_bounds = array<i64: 1, 32>}, {pipeline_mode = #tpu.pipeline_mode<synchronous>, transform_indices = @transform_6, window_bounds = array<i64: 32, 32>}, {pipeline_mode = #tpu.pipeline_mode<synchronous>, transform_indices = @transform_7, window_bounds = array<i64: 1, 32>}, {pipeline_mode = #tpu.pipeline_mode<synchronous>, transform_indices = @transform_8, window_bounds = array<i64: 32, 32>}, {pipeline_mode = #tpu.pipeline_mode<synchronous>, transform_indices = @transform_9, window_bounds = array<i64: 1, 32>}, {pipeline_mode = #tpu.pipeline_mode<synchronous>, transform_indices = @transform_10, window_bounds = array<i64: 32, 32>}, {pipeline_mode = #tpu.pipeline_mode<synchronous>, transform_indices = @transform_11, window_bounds = array<i64: 1, 32>}, {pipeline_mode = #tpu.pipeline_mode<synchronous>, transform_indices = @transform_12, window_bounds = array<i64: 1, 32>}, {pipeline_mode = #tpu.pipeline_mode<synchronous>, transform_indices = @transform_13, window_bounds = array<i64: 1, 32>}, {pipeline_mode = #tpu.pipeline_mode<synchronous>, transform_indices = @transform_14, window_bounds = array<i64: 32, 64>}, {pipeline_mode = #tpu.pipeline_mode<synchronous>, transform_indices = @transform_15, window_bounds = array<i64: 1, 64>}, {pipeline_mode = #tpu.pipeline_mode<synchronous>, transform_indices = @transform_16, window_bounds = array<i64: 64, 32>}, {pipeline_mode = #tpu.pipeline_mode<synchronous>, transform_indices = @transform_17, window_bounds = array<i64: 1, 32>}, {pipeline_mode = #tpu.pipeline_mode<synchronous>, transform_indices = @transform_18, window_bounds = array<i64: 1, 32>}, {pipeline_mode = #tpu.pipeline_mode<synchronous>, transform_indices = @transform_19, window_bounds = array<i64: 1, 32>}, {pipeline_mode = #tpu.pipeline_mode<synchronous>, transform_indices = @transform_20, window_bounds = array<i64: 1, 32>}, {pipeline_mode = #tpu.pipeline_mode<synchronous>, transform_indices = @transform_21, window_bounds = array<i64: 1, 32>}, {pipeline_mode = #tpu.pipeline_mode<synchronous>, transform_indices = @transform_22, window_bounds = array<i64: 1, 32>}, {pipeline_mode = #tpu.pipeline_mode<synchronous>, transform_indices = @transform_23, window_bounds = array<i64: 1, 1>}, {transform_indices = @transform_24, window_bounds = array<i64: 1, 8, 32>}, {transform_indices = @transform_25, window_bounds = array<i64: 1, 8, 1>}]} {
    %c0 = arith.constant 0 : index
    %c0_0 = arith.constant 0 : index
    %c0_1 = arith.constant 0 : index
    %0 = vector.load %arg1[%c0, %c0_0, %c0_1] : memref<1x8x32xf32, #tpu.memory_space<vmem>>, vector<1x8x32xf32>
    %1 = vector.shape_cast %0 : vector<1x8x32xf32> to vector<8x32xf32>
    %c0_2 = arith.constant 0 : index
    %c0_3 = arith.constant 0 : index
    %c0_4 = arith.constant 0 : index
    %2 = vector.load %arg2[%c0_2, %c0_3, %c0_4] : memref<1x8x32xf32, #tpu.memory_space<vmem>>, vector<1x8x32xf32>
    %3 = vector.shape_cast %2 : vector<1x8x32xf32> to vector<8x32xf32>
    %c0_5 = arith.constant 0 : index
    %c0_6 = arith.constant 0 : index
    %4 = vector.load %arg5[%c0_5, %c0_6] : memref<32x32xf32, #tpu.memory_space<vmem>>, vector<32x32xf32>
    %cst = arith.constant dense<0.000000e+00> : vector<8x32xf32>
    %5 = tpu.matmul %1, %4, %cst {dimension_numbers = #tpu.dot_dimension_numbers<[1], [0], [0], [1], [0, 0, 1, 1], [], []>} : vector<8x32xf32>, vector<32x32xf32>, vector<8x32xf32> -> vector<8x32xf32>
    %c0_7 = arith.constant 0 : index
    %c0_8 = arith.constant 0 : index
    %6 = vector.load %arg6[%c0_7, %c0_8] : memref<1x32xf32, #tpu.memory_space<vmem>>, vector<1x32xf32>
    %7 = vector.broadcast %6 : vector<1x32xf32> to vector<8x32xf32>
    %8 = arith.addf %5, %7 : vector<8x32xf32>
    %c0_9 = arith.constant 0 : index
    %c0_10 = arith.constant 0 : index
    %9 = vector.load %arg7[%c0_9, %c0_10] : memref<32x32xf32, #tpu.memory_space<vmem>>, vector<32x32xf32>
    %cst_11 = arith.constant dense<0.000000e+00> : vector<8x32xf32>
    %10 = tpu.matmul %3, %9, %cst_11 {dimension_numbers = #tpu.dot_dimension_numbers<[1], [0], [0], [1], [0, 0, 1, 1], [], []>} : vector<8x32xf32>, vector<32x32xf32>, vector<8x32xf32> -> vector<8x32xf32>
    %c0_12 = arith.constant 0 : index
    %c0_13 = arith.constant 0 : index
    %11 = vector.load %arg8[%c0_12, %c0_13] : memref<1x32xf32, #tpu.memory_space<vmem>>, vector<1x32xf32>
    %12 = vector.broadcast %11 : vector<1x32xf32> to vector<8x32xf32>
    %13 = arith.addf %10, %12 : vector<8x32xf32>
    %c0_14 = arith.constant 0 : index
    %c0_15 = arith.constant 0 : index
    %14 = vector.load %arg9[%c0_14, %c0_15] : memref<32x32xf32, #tpu.memory_space<vmem>>, vector<32x32xf32>
    %cst_16 = arith.constant dense<0.000000e+00> : vector<8x32xf32>
    %15 = tpu.matmul %3, %14, %cst_16 {dimension_numbers = #tpu.dot_dimension_numbers<[1], [0], [0], [1], [0, 0, 1, 1], [], []>} : vector<8x32xf32>, vector<32x32xf32>, vector<8x32xf32> -> vector<8x32xf32>
    %c0_17 = arith.constant 0 : index
    %c0_18 = arith.constant 0 : index
    %16 = vector.load %arg10[%c0_17, %c0_18] : memref<1x32xf32, #tpu.memory_space<vmem>>, vector<1x32xf32>
    %17 = vector.broadcast %16 : vector<1x32xf32> to vector<8x32xf32>
    %18 = arith.addf %15, %17 : vector<8x32xf32>
    %c0_19 = arith.constant 0 : index
    %c0_20 = arith.constant 0 : index
    %c0_21 = arith.constant 0 : index
    %19 = vector.load %arg3[%c0_19, %c0_20, %c0_21] : memref<1x1x8xf32, #tpu.memory_space<vmem>>, vector<1x1x8xf32>
    %20 = vector.shape_cast %19 : vector<1x1x8xf32> to vector<1x8xf32>
    %cst_22 = arith.constant 0.000000e+00 : f32
    %21 = vector.broadcast %cst_22 : f32 to vector<1x8xf32>
    %22 = arith.cmpf ogt, %20, %21 : vector<1x8xf32>
    %cst_23 = arith.constant 0.000000e+00 : f32
    %cst_24 = arith.constant -1.000000e+09 : f32
    %23 = vector.broadcast %cst_23 : f32 to vector<1x8xf32>
    %24 = vector.broadcast %cst_24 : f32 to vector<1x8xf32>
    %25 = arith.select %22, %23, %24 : vector<1x8xi1>, vector<1x8xf32>
    %26 = tpu.iota {dimensions = array<i32: 1>} : vector<1x32xi32>
    %cst_25 = arith.constant 0.000000e+00 : f32
    %27 = vector.broadcast %cst_25 : f32 to vector<8x32xf32>
    %c0_i32 = arith.constant 0 : i32
    %28 = vector.broadcast %c0_i32 : i32 to vector<1x32xi32>
    %29 = arith.cmpi sge, %26, %28 : vector<1x32xi32>
    %c16_i32 = arith.constant 16 : i32
    %30 = vector.broadcast %c16_i32 : i32 to vector<1x32xi32>
    %31 = arith.cmpi slt, %26, %30 : vector<1x32xi32>
    %32 = arith.andi %29, %31 : vector<1x32xi1>
    %cst_26 = arith.constant 1.000000e+00 : f32
    %cst_27 = arith.constant 0.000000e+00 : f32
    %33 = vector.broadcast %cst_26 : f32 to vector<1x32xf32>
    %34 = vector.broadcast %cst_27 : f32 to vector<1x32xf32>
    %35 = arith.select %32, %33, %34 : vector<1x32xi1>, vector<1x32xf32>
    %36 = vector.broadcast %35 : vector<1x32xf32> to vector<8x32xf32>
    %37 = arith.mulf %13, %36 : vector<8x32xf32>
    %38 = vector.broadcast %35 : vector<1x32xf32> to vector<8x32xf32>
    %39 = arith.mulf %18, %38 : vector<8x32xf32>
    %cst_28 = arith.constant dense<0.000000e+00> : vector<8x8xf32>
    %40 = tpu.matmul %8, %37, %cst_28 {dimension_numbers = #tpu.dot_dimension_numbers<[1], [1], [0], [0], [0, 0, 1, 0], [], []>} : vector<8x32xf32>, vector<8x32xf32>, vector<8x8xf32> -> vector<8x8xf32>
    %cst_29 = arith.constant 2.500000e-01 : f32
    %41 = vector.broadcast %cst_29 : f32 to vector<8x8xf32>
    %42 = arith.mulf %40, %41 : vector<8x8xf32>
    %43 = vector.broadcast %25 : vector<1x8xf32> to vector<8x8xf32>
    %44 = arith.addf %42, %43 : vector<8x8xf32>
    %cst_30 = arith.constant dense<0xFF800000> : vector<8xf32>
    %45 = vector.multi_reduction <maximumf>, %44, %cst_30 [1] : vector<8x8xf32> to vector<8xf32>
    %46 = vector.shape_cast %45 : vector<8xf32> to vector<8x1xf32>
    %47 = vector.broadcast %46 : vector<8x1xf32> to vector<8x8xf32>
    %48 = arith.subf %44, %47 : vector<8x8xf32>
    %49 = math.exp %48 : vector<8x8xf32>
    %cst_31 = arith.constant dense<0.000000e+00> : vector<8xf32>
    %50 = vector.multi_reduction <add>, %49, %cst_31 [1] : vector<8x8xf32> to vector<8xf32>
    %51 = vector.shape_cast %50 : vector<8xf32> to vector<8x1xf32>
    %52 = tpu.reciprocal %51 {approx = true} : vector<8x1xf32> -> vector<8x1xf32>
    %53 = vector.broadcast %52 : vector<8x1xf32> to vector<8x8xf32>
    %54 = arith.mulf %49, %53 : vector<8x8xf32>
    %cst_32 = arith.constant dense<0.000000e+00> : vector<8x32xf32>
    %55 = tpu.matmul %54, %39, %cst_32 {dimension_numbers = #tpu.dot_dimension_numbers<[1], [0], [0], [1], [0, 0, 1, 1], [], []>} : vector<8x8xf32>, vector<8x32xf32>, vector<8x32xf32> -> vector<8x32xf32>
    %56 = arith.addf %27, %55 : vector<8x32xf32>
    %c16_i32_33 = arith.constant 16 : i32
    %57 = vector.broadcast %c16_i32_33 : i32 to vector<1x32xi32>
    %58 = arith.cmpi sge, %26, %57 : vector<1x32xi32>
    %c32_i32 = arith.constant 32 : i32
    %59 = vector.broadcast %c32_i32 : i32 to vector<1x32xi32>
    %60 = arith.cmpi slt, %26, %59 : vector<1x32xi32>
    %61 = arith.andi %58, %60 : vector<1x32xi1>
    %cst_34 = arith.constant 1.000000e+00 : f32
    %cst_35 = arith.constant 0.000000e+00 : f32
    %62 = vector.broadcast %cst_34 : f32 to vector<1x32xf32>
    %63 = vector.broadcast %cst_35 : f32 to vector<1x32xf32>
    %64 = arith.select %61, %62, %63 : vector<1x32xi1>, vector<1x32xf32>
    %65 = vector.broadcast %64 : vector<1x32xf32> to vector<8x32xf32>
    %66 = arith.mulf %13, %65 : vector<8x32xf32>
    %67 = vector.broadcast %64 : vector<1x32xf32> to vector<8x32xf32>
    %68 = arith.mulf %18, %67 : vector<8x32xf32>
    %cst_36 = arith.constant dense<0.000000e+00> : vector<8x8xf32>
    %69 = tpu.matmul %8, %66, %cst_36 {dimension_numbers = #tpu.dot_dimension_numbers<[1], [1], [0], [0], [0, 0, 1, 0], [], []>} : vector<8x32xf32>, vector<8x32xf32>, vector<8x8xf32> -> vector<8x8xf32>
    %cst_37 = arith.constant 2.500000e-01 : f32
    %70 = vector.broadcast %cst_37 : f32 to vector<8x8xf32>
    %71 = arith.mulf %69, %70 : vector<8x8xf32>
    %72 = vector.broadcast %25 : vector<1x8xf32> to vector<8x8xf32>
    %73 = arith.addf %71, %72 : vector<8x8xf32>
    %cst_38 = arith.constant dense<0xFF800000> : vector<8xf32>
    %74 = vector.multi_reduction <maximumf>, %73, %cst_38 [1] : vector<8x8xf32> to vector<8xf32>
    %75 = vector.shape_cast %74 : vector<8xf32> to vector<8x1xf32>
    %76 = vector.broadcast %75 : vector<8x1xf32> to vector<8x8xf32>
    %77 = arith.subf %73, %76 : vector<8x8xf32>
    %78 = math.exp %77 : vector<8x8xf32>
    %cst_39 = arith.constant dense<0.000000e+00> : vector<8xf32>
    %79 = vector.multi_reduction <add>, %78, %cst_39 [1] : vector<8x8xf32> to vector<8xf32>
    %80 = vector.shape_cast %79 : vector<8xf32> to vector<8x1xf32>
    %81 = tpu.reciprocal %80 {approx = true} : vector<8x1xf32> -> vector<8x1xf32>
    %82 = vector.broadcast %81 : vector<8x1xf32> to vector<8x8xf32>
    %83 = arith.mulf %78, %82 : vector<8x8xf32>
    %cst_40 = arith.constant dense<0.000000e+00> : vector<8x32xf32>
    %84 = tpu.matmul %83, %68, %cst_40 {dimension_numbers = #tpu.dot_dimension_numbers<[1], [0], [0], [1], [0, 0, 1, 1], [], []>} : vector<8x8xf32>, vector<8x32xf32>, vector<8x32xf32> -> vector<8x32xf32>
    %85 = arith.addf %56, %84 : vector<8x32xf32>
    %c0_41 = arith.constant 0 : index
    %c0_42 = arith.constant 0 : index
    %86 = vector.load %arg11[%c0_41, %c0_42] : memref<32x32xf32, #tpu.memory_space<vmem>>, vector<32x32xf32>
    %cst_43 = arith.constant dense<0.000000e+00> : vector<8x32xf32>
    %87 = tpu.matmul %85, %86, %cst_43 {dimension_numbers = #tpu.dot_dimension_numbers<[1], [0], [0], [1], [0, 0, 1, 1], [], []>} : vector<8x32xf32>, vector<32x32xf32>, vector<8x32xf32> -> vector<8x32xf32>
    %c0_44 = arith.constant 0 : index
    %c0_45 = arith.constant 0 : index
    %88 = vector.load %arg12[%c0_44, %c0_45] : memref<1x32xf32, #tpu.memory_space<vmem>>, vector<1x32xf32>
    %89 = vector.broadcast %88 : vector<1x32xf32> to vector<8x32xf32>
    %90 = arith.addf %87, %89 : vector<8x32xf32>
    %91 = arith.addf %1, %90 : vector<8x32xf32>
    %c0_46 = arith.constant 0 : index
    %c0_47 = arith.constant 0 : index
    %92 = vector.load %arg13[%c0_46, %c0_47] : memref<1x32xf32, #tpu.memory_space<vmem>>, vector<1x32xf32>
    %c0_48 = arith.constant 0 : index
    %c0_49 = arith.constant 0 : index
    %93 = vector.load %arg14[%c0_48, %c0_49] : memref<1x32xf32, #tpu.memory_space<vmem>>, vector<1x32xf32>
    %cst_50 = arith.constant dense<0.000000e+00> : vector<8xf32>
    %94 = vector.multi_reduction <add>, %91, %cst_50 [1] : vector<8x32xf32> to vector<8xf32>
    %95 = vector.shape_cast %94 : vector<8xf32> to vector<8x1xf32>
    %cst_51 = arith.constant 3.200000e+01 : f32
    %96 = vector.broadcast %cst_51 : f32 to vector<8x1xf32>
    %97 = arith.divf %95, %96 : vector<8x1xf32>
    %98 = vector.broadcast %97 : vector<8x1xf32> to vector<8x32xf32>
    %99 = arith.subf %91, %98 : vector<8x32xf32>
    %100 = arith.mulf %99, %99 : vector<8x32xf32>
    %cst_52 = arith.constant dense<0.000000e+00> : vector<8xf32>
    %101 = vector.multi_reduction <add>, %100, %cst_52 [1] : vector<8x32xf32> to vector<8xf32>
    %102 = vector.shape_cast %101 : vector<8xf32> to vector<8x1xf32>
    %cst_53 = arith.constant 3.200000e+01 : f32
    %103 = vector.broadcast %cst_53 : f32 to vector<8x1xf32>
    %104 = arith.divf %102, %103 : vector<8x1xf32>
    %cst_54 = arith.constant 9.99999996E-13 : f32
    %105 = vector.broadcast %cst_54 : f32 to vector<8x1xf32>
    %106 = arith.addf %104, %105 : vector<8x1xf32>
    %107 = math.rsqrt %106 : vector<8x1xf32>
    %108 = vector.broadcast %107 : vector<8x1xf32> to vector<8x32xf32>
    %109 = arith.mulf %99, %108 : vector<8x32xf32>
    %110 = vector.broadcast %92 : vector<1x32xf32> to vector<8x32xf32>
    %111 = arith.mulf %109, %110 : vector<8x32xf32>
    %112 = vector.broadcast %93 : vector<1x32xf32> to vector<8x32xf32>
    %113 = arith.addf %111, %112 : vector<8x32xf32>
    %c0_55 = arith.constant 0 : index
    %c0_56 = arith.constant 0 : index
    %114 = vector.load %arg15[%c0_55, %c0_56] : memref<32x64xf32, #tpu.memory_space<vmem>>, vector<32x64xf32>
    %cst_57 = arith.constant dense<0.000000e+00> : vector<8x64xf32>
    %115 = tpu.matmul %113, %114, %cst_57 {dimension_numbers = #tpu.dot_dimension_numbers<[1], [0], [0], [1], [0, 0, 1, 1], [], []>} : vector<8x32xf32>, vector<32x64xf32>, vector<8x64xf32> -> vector<8x64xf32>
    %c0_58 = arith.constant 0 : index
    %c0_59 = arith.constant 0 : index
    %116 = vector.load %arg16[%c0_58, %c0_59] : memref<1x64xf32, #tpu.memory_space<vmem>>, vector<1x64xf32>
    %117 = vector.broadcast %116 : vector<1x64xf32> to vector<8x64xf32>
    %118 = arith.addf %115, %117 : vector<8x64xf32>
    %cst_60 = arith.constant 0.000000e+00 : f32
    %119 = vector.broadcast %cst_60 : f32 to vector<8x64xf32>
    %120 = arith.maximumf %118, %119 : vector<8x64xf32>
    %c0_61 = arith.constant 0 : index
    %c0_62 = arith.constant 0 : index
    %121 = vector.load %arg17[%c0_61, %c0_62] : memref<64x32xf32, #tpu.memory_space<vmem>>, vector<64x32xf32>
    %cst_63 = arith.constant dense<0.000000e+00> : vector<8x32xf32>
    %122 = tpu.matmul %120, %121, %cst_63 {dimension_numbers = #tpu.dot_dimension_numbers<[1], [0], [0], [1], [0, 0, 1, 1], [], []>} : vector<8x64xf32>, vector<64x32xf32>, vector<8x32xf32> -> vector<8x32xf32>
    %c0_64 = arith.constant 0 : index
    %c0_65 = arith.constant 0 : index
    %123 = vector.load %arg18[%c0_64, %c0_65] : memref<1x32xf32, #tpu.memory_space<vmem>>, vector<1x32xf32>
    %124 = vector.broadcast %123 : vector<1x32xf32> to vector<8x32xf32>
    %125 = arith.addf %122, %124 : vector<8x32xf32>
    %126 = arith.addf %113, %125 : vector<8x32xf32>
    %c0_66 = arith.constant 0 : index
    %c0_67 = arith.constant 0 : index
    %127 = vector.load %arg19[%c0_66, %c0_67] : memref<1x32xf32, #tpu.memory_space<vmem>>, vector<1x32xf32>
    %c0_68 = arith.constant 0 : index
    %c0_69 = arith.constant 0 : index
    %128 = vector.load %arg20[%c0_68, %c0_69] : memref<1x32xf32, #tpu.memory_space<vmem>>, vector<1x32xf32>
    %cst_70 = arith.constant dense<0.000000e+00> : vector<8xf32>
    %129 = vector.multi_reduction <add>, %126, %cst_70 [1] : vector<8x32xf32> to vector<8xf32>
    %130 = vector.shape_cast %129 : vector<8xf32> to vector<8x1xf32>
    %cst_71 = arith.constant 3.200000e+01 : f32
    %131 = vector.broadcast %cst_71 : f32 to vector<8x1xf32>
    %132 = arith.divf %130, %131 : vector<8x1xf32>
    %133 = vector.broadcast %132 : vector<8x1xf32> to vector<8x32xf32>
    %134 = arith.subf %126, %133 : vector<8x32xf32>
    %135 = arith.mulf %134, %134 : vector<8x32xf32>
    %cst_72 = arith.constant dense<0.000000e+00> : vector<8xf32>
    %136 = vector.multi_reduction <add>, %135, %cst_72 [1] : vector<8x32xf32> to vector<8xf32>
    %137 = vector.shape_cast %136 : vector<8xf32> to vector<8x1xf32>
    %cst_73 = arith.constant 3.200000e+01 : f32
    %138 = vector.broadcast %cst_73 : f32 to vector<8x1xf32>
    %139 = arith.divf %137, %138 : vector<8x1xf32>
    %cst_74 = arith.constant 9.99999996E-13 : f32
    %140 = vector.broadcast %cst_74 : f32 to vector<8x1xf32>
    %141 = arith.addf %139, %140 : vector<8x1xf32>
    %142 = math.rsqrt %141 : vector<8x1xf32>
    %143 = vector.broadcast %142 : vector<8x1xf32> to vector<8x32xf32>
    %144 = arith.mulf %134, %143 : vector<8x32xf32>
    %145 = vector.broadcast %127 : vector<1x32xf32> to vector<8x32xf32>
    %146 = arith.mulf %144, %145 : vector<8x32xf32>
    %147 = vector.broadcast %128 : vector<1x32xf32> to vector<8x32xf32>
    %148 = arith.addf %146, %147 : vector<8x32xf32>
    %c0_75 = arith.constant 0 : index
    %c0_76 = arith.constant 0 : index
    %c0_77 = arith.constant 0 : index
    %149 = vector.load %arg4[%c0_75, %c0_76, %c0_77] : memref<1x8x1xf32, #tpu.memory_space<vmem>>, vector<1x8x1xf32>
    %150 = vector.shape_cast %149 : vector<1x8x1xf32> to vector<8x1xf32>
    %151 = vector.broadcast %150 : vector<8x1xf32> to vector<8x32xf32>
    %152 = arith.mulf %148, %151 : vector<8x32xf32>
    %c0_78 = arith.constant 0 : index
    %c0_79 = arith.constant 0 : index
    %c0_80 = arith.constant 0 : index
    %153 = vector.load %arg25[%c0_78, %c0_79, %c0_80] : memref<1x8x32xf32, #tpu.memory_space<vmem>>, vector<1x8x32xf32>
    %154 = vector.shape_cast %153 : vector<1x8x32xf32> to vector<8x32xf32>
    %155 = vector.shape_cast %152 : vector<8x32xf32> to vector<1x8x32xf32>
    tpu.vector_store %arg25[%c0_78, %c0_79, %c0_80], %155 {strides = array<i32>} : memref<1x8x32xf32, #tpu.memory_space<vmem>>, vector<1x8x32xf32>,
    %c0_81 = arith.constant 0 : index
    %c0_82 = arith.constant 0 : index
    %156 = vector.load %arg23[%c0_81, %c0_82] : memref<1x32xf32, #tpu.memory_space<vmem>>, vector<1x32xf32>
    %157 = vector.broadcast %156 : vector<1x32xf32> to vector<8x32xf32>
    %158 = arith.mulf %152, %157 : vector<8x32xf32>
    %cst_83 = arith.constant dense<0.000000e+00> : vector<8xf32>
    %159 = vector.multi_reduction <add>, %158, %cst_83 [1] : vector<8x32xf32> to vector<8xf32>
    %160 = vector.shape_cast %159 : vector<8xf32> to vector<8x1xf32>
    %c0_84 = arith.constant 0 : index
    %c0_85 = arith.constant 0 : index
    %161 = vector.load %arg24[%c0_84, %c0_85] : memref<1x1xf32, #tpu.memory_space<vmem>>, vector<1x1xf32>
    %162 = vector.broadcast %161 : vector<1x1xf32> to vector<8x1xf32>
    %163 = arith.addf %160, %162 : vector<8x1xf32>
    %cst_86 = arith.constant 0.000000e+00 : f32
    %164 = vector.broadcast %cst_86 : f32 to vector<8x1xf32>
    %165 = arith.subf %164, %163 : vector<8x1xf32>
    %166 = math.exp %165 : vector<8x1xf32>
    %cst_87 = arith.constant 1.000000e+00 : f32
    %167 = vector.broadcast %cst_87 : f32 to vector<8x1xf32>
    %168 = arith.addf %167, %166 : vector<8x1xf32>
    %cst_88 = arith.constant 1.000000e+00 : f32
    %169 = vector.broadcast %cst_88 : f32 to vector<8x1xf32>
    %170 = arith.divf %169, %168 : vector<8x1xf32>
    %c0_89 = arith.constant 0 : index
    %c0_90 = arith.constant 0 : index
    %c0_91 = arith.constant 0 : index
    %171 = vector.load %arg26[%c0_89, %c0_90, %c0_91] : memref<1x8x1xf32, #tpu.memory_space<vmem>>, vector<1x8x1xf32>
    %172 = vector.shape_cast %171 : vector<1x8x1xf32> to vector<8x1xf32>
    %173 = vector.shape_cast %170 : vector<8x1xf32> to vector<1x8x1xf32>
    tpu.vector_store %arg26[%c0_89, %c0_90, %c0_91], %173 {strides = array<i32>} : memref<1x8x1xf32, #tpu.memory_space<vmem>>, vector<1x8x1xf32>,
    return
  }
  func.func @transform_0(%arg0: i32) -> (i32, i32, i32) {
    %c0_i32 = arith.constant 0 : i32
    %c0_i32_0 = arith.constant 0 : i32
    %c0_i32_1 = arith.constant 0 : i32
    return %arg0, %c0_i32, %c0_i32_0 : i32, i32, i32
  }
  func.func @transform_1(%arg0: i32) -> (i32, i32, i32) {
    %c0_i32 = arith.constant 0 : i32
    %c0_i32_0 = arith.constant 0 : i32
    %c0_i32_1 = arith.constant 0 : i32
    return %arg0, %c0_i32, %c0_i32_0 : i32, i32, i32
  }
  func.func @transform_2(%arg0: i32) -> (i32, i32, i32) {
    %c0_i32 = arith.constant 0 : i32
    %c0_i32_0 = arith.constant 0 : i32
    %c0_i32_1 = arith.constant 0 : i32
    return %arg0, %c0_i32, %c0_i32_0 : i32, i32, i32
  }
  func.func @transform_3(%arg0: i32) -> (i32, i32, i32) {
    %c0_i32 = arith.constant 0 : i32
    %c0_i32_0 = arith.constant 0 : i32
    %c0_i32_1 = arith.constant 0 : i32
    return %arg0, %c0_i32, %c0_i32_0 : i32, i32, i32
  }
  func.func @transform_4(%arg0: i32) -> (i32, i32) {
    %c0_i32 = arith.constant 0 : i32
    %c0_i32_0 = arith.constant 0 : i32
    %c0_i32_1 = arith.constant 0 : i32
    return %c0_i32, %c0_i32_0 : i32, i32
  }
  func.func @transform_5(%arg0: i32) -> (i32, i32) {
    %c0_i32 = arith.constant 0 : i32
    %c0_i32_0 = arith.constant 0 : i32
    %c0_i32_1 = arith.constant 0 : i32
    return %c0_i32, %c0_i32_0 : i32, i32
  }
  func.func @transform_6(%arg0: i32) -> (i32, i32) {
    %c0_i32 = arith.constant 0 : i32
    %c0_i32_0 = arith.constant 0 : i32
    %c0_i32_1 = arith.constant 0 : i32
    return %c0_i32, %c0_i32_0 : i32, i32
  }
  func.func @transform_7(%arg0: i32) -> (i32, i32) {
    %c0_i32 = arith.constant 0 : i32
    %c0_i32_0 = arith.constant 0 : i32
    %c0_i32_1 = arith.constant 0 : i32
    return %c0_i32, %c0_i32_0 : i32, i32
  }
  func.func @transform_8(%arg0: i32) -> (i32, i32) {
    %c0_i32 = arith.constant 0 : i32
    %c0_i32_0 = arith.constant 0 : i32
    %c0_i32_1 = arith.constant 0 : i32
    return %c0_i32, %c0_i32_0 : i32, i32
  }
  func.func @transform_9(%arg0: i32) -> (i32, i32) {
    %c0_i32 = arith.constant 0 : i32
    %c0_i32_0 = arith.constant 0 : i32
    %c0_i32_1 = arith.constant 0 : i32
    return %c0_i32, %c0_i32_0 : i32, i32
  }
  func.func @transform_10(%arg0: i32) -> (i32, i32) {
    %c0_i32 = arith.constant 0 : i32
    %c0_i32_0 = arith.constant 0 : i32
    %c0_i32_1 = arith.constant 0 : i32
    return %c0_i32, %c0_i32_0 : i32, i32
  }
  func.func @transform_11(%arg0: i32) -> (i32, i32) {
    %c0_i32 = arith.constant 0 : i32
    %c0_i32_0 = arith.constant 0 : i32
    %c0_i32_1 = arith.constant 0 : i32
    return %c0_i32, %c0_i32_0 : i32, i32
  }
  func.func @transform_12(%arg0: i32) -> (i32, i32) {
    %c0_i32 = arith.constant 0 : i32
    %c0_i32_0 = arith.constant 0 : i32
    %c0_i32_1 = arith.constant 0 : i32
    return %c0_i32, %c0_i32_0 : i32, i32
  }
  func.func @transform_13(%arg0: i32) -> (i32, i32) {
    %c0_i32 = arith.constant 0 : i32
    %c0_i32_0 = arith.constant 0 : i32
    %c0_i32_1 = arith.constant 0 : i32
    return %c0_i32, %c0_i32_0 : i32, i32
  }
  func.func @transform_14(%arg0: i32) -> (i32, i32) {
    %c0_i32 = arith.constant 0 : i32
    %c0_i32_0 = arith.constant 0 : i32
    %c0_i32_1 = arith.constant 0 : i32
    return %c0_i32, %c0_i32_0 : i32, i32
  }
  func.func @transform_15(%arg0: i32) -> (i32, i32) {
    %c0_i32 = arith.constant 0 : i32
    %c0_i32_0 = arith.constant 0 : i32
    %c0_i32_1 = arith.constant 0 : i32
    return %c0_i32, %c0_i32_0 : i32, i32
  }
  func.func @transform_16(%arg0: i32) -> (i32, i32) {
    %c0_i32 = arith.constant 0 : i32
    %c0_i32_0 = arith.constant 0 : i32
    %c0_i32_1 = arith.constant 0 : i32
    return %c0_i32, %c0_i32_0 : i32, i32
  }
  func.func @transform_17(%arg0: i32) -> (i32, i32) {
    %c0_i32 = arith.constant 0 : i32
    %c0_i32_0 = arith.constant 0 : i32
    %c0_i32_1 = arith.constant 0 : i32
    return %c0_i32, %c0_i32_0 : i32, i32
  }
  func.func @transform_18(%arg0: i32) -> (i32, i32) {
    %c0_i32 = arith.constant 0 : i32
    %c0_i32_0 = arith.constant 0 : i32
    %c0_i32_1 = arith.constant 0 : i32
    return %c0_i32, %c0_i32_0 : i32, i32
  }
  func.func @transform_19(%arg0: i32) -> (i32, i32) {
    %c0_i32 = arith.constant 0 : i32
    %c0_i32_0 = arith.constant 0 : i32
    %c0_i32_1 = arith.constant 0 : i32
    return %c0_i32, %c0_i32_0 : i32, i32
  }
  func.func @transform_20(%arg0: i32) -> (i32, i32) {
    %c0_i32 = arith.constant 0 : i32
    %c0_i32_0 = arith.constant 0 : i32
    %c0_i32_1 = arith.constant 0 : i32
    return %c0_i32, %c0_i32_0 : i32, i32
  }
  func.func @transform_21(%arg0: i32) -> (i32, i32) {
    %c0_i32 = arith.constant 0 : i32
    %c0_i32_0 = arith.constant 0 : i32
    %c0_i32_1 = arith.constant 0 : i32
    return %c0_i32, %c0_i32_0 : i32, i32
  }
  func.func @transform_22(%arg0: i32) -> (i32, i32) {
    %c0_i32 = arith.constant 0 : i32
    %c0_i32_0 = arith.constant 0 : i32
    %c0_i32_1 = arith.constant 0 : i32
    return %c0_i32, %c0_i32_0 : i32, i32
  }
  func.func @transform_23(%arg0: i32) -> (i32, i32) {
    %c0_i32 = arith.constant 0 : i32
    %c0_i32_0 = arith.constant 0 : i32
    %c0_i32_1 = arith.constant 0 : i32
    return %c0_i32, %c0_i32_0 : i32, i32
  }
  func.func @transform_24(%arg0: i32) -> (i32, i32, i32) {
    %c0_i32 = arith.constant 0 : i32
    %c0_i32_0 = arith.constant 0 : i32
    %c0_i32_1 = arith.constant 0 : i32
    return %arg0, %c0_i32, %c0_i32_0 : i32, i32, i32
  }
  func.func @transform_25(%arg0: i32) -> (i32, i32, i32) {
    %c0_i32 = arith.constant 0 : i32
    %c0_i32_0 = arith.constant 0 : i32
    %c0_i32_1 = arith.constant 0 : i32
    return %arg0, %c0_i32, %c0_i32_0 : i32, i32, i32
  }
}

</mosaic_0001>

<bundles_post_ra>
// kernel: forward_test.5
= control target key start
LH: loop header
LB: loop body
LE: loop exit
PB: predicated region body
PF: predicated region fallthrough
CT: control target
= control target key end

     0   :  { %s637_s27 = smov 0   ;;  %s684_s0 = inlined_call_operand.vmem [shape: f32[2,8,32], index: 0, kind: input, shape index: {}]   ;;  %s685_s1 = inlined_call_operand.vmem [shape: f32[2,8,4], index: 1, kind: input, shape index: {}]   ;;  %s686_s2 = inlined_call_operand.vmem [shape: f32[2,8,1], index: 2, kind: input, shape index: {}]   ;;  %s687_s3 = inlined_call_operand.vmem [shape: f32[8,32], index: 3, kind: input, shape index: {}]   ;;  %s688_s4 = inlined_call_operand.vmem [shape: f32[4,32], index: 4, kind: input, shape index: {}]   ;;  %s689_s5 = inlined_call_operand.vmem [shape: f32[1,32], index: 5, kind: input, shape index: {}]   ;;  %s690_s6 = inlined_call_operand.vmem [shape: f32[1,32], index: 6, kind: input, shape index: {}]   ;;  %s691_s7 = inlined_call_operand.vmem [shape: f32[1,32], index: 7, kind: input, shape index: {}]   ;;  %s692_s8 = inlined_call_operand.vmem [shape: f32[2,8,32], index: 8, kind: output, shape index: {}]  }
   0x1 LB: > { %s543_s28 = sadd.s32 4294967295, %s587_s27   ;;  %p547_p0 = scmp.ge.s32.totalorder %s587_s27, 1  ;;  %s587_s27 = sphi %s637_s27, %s18_s27  }
   0x2   : > { %p279_p1 = scmp.lt.s32.totalorder %s587_s27, 3 }
   0x4   : > { %p280_p2 = pnand %p547_p0, %p279_p1 }
   0x5   : > { %p319_p3 = scmp.lt.s32.totalorder (!%p280_p2), %s543_s28, 1 }
   0x6   : > { %283 = sbr.rel (%p280_p2) target bundleno = 523 (0x20b), region = 52 }
   0xb   : > { %v339_v0 = vld [vmem:[%s688_s4] sm:$0xf]  ;;  %vm344_vm0 = vcmask 1043456   ;;  %v589_v1 = vmov 0.0   ;;  %vm590_vm1 = vmmov 0   ;;  %s694_s28 = smov (!%p319_p3, %s543_s28), 1 }
   0xc   : > { %561 = vmatprep.subr.mxu0 %v589_v1  ;;  %563 = vmatprep.mubr.msk.f32.mxu0 %vm590_vm1, %v589_v1  ;;  %s648_s9 = sshll.u32 %s694_s28, 3  ;;  %vm340_vm2 = vcmask 31744   ;;  %v336_v4 = vld [vmem:[%s687_s3] sm:$0xff]  ;;  %vm429_vm3 = vcmask 261120   ;;  %v591_v12 = vmov 0  }
   0xd   : > { %562 = vmatpush3.msk.msra.mxu0 %vm344_vm0, %v339_v0  ;;  %s326_s12 = scalar_lea.vmem %s685_s1, %s648_s9  ;;  %s322_s15 = scalar_lea.vmem %s684_s0, %s648_s9  ;;  %v554_v7 = vld [vmem:[%s689_s5] ss:$0 sm:$0xff]  ;;  %577 = vset.pattern.permute.xlu1 %v591_v12 }
   0xe   : > { %v338_v2 = vld [vmem:[%s326_s12] sm:$0xff]  ;;  %s330_s22 = scalar_lea.vmem %s686_s2, %s648_s9  ;;  %578 = vset.pattern.permute.xlu0 %v591_v12  ;;  %s334_s30 = scalar_lea.vmem %s692_s8, %s648_s9 }
   0xf   : > { %564 = vmatmul.mubr.msk.f32.vlgmr.msra.gmra.mxu0 %vm340_vm2, %v338_v2  ;;  %v335_v3 = vld [vmem:[%s322_s15] sm:$0xff] }
  0x10   : > { %v337_v5 = vadd.f32 %v336_v4, %v335_v3  ;;  %v458_v13 = vld [vmem:[%s330_s22] sm:$0xff] }
  0x11   : > { %461 = vperm.xlu1 %577, %v458_v13   ;;  %v555_v23 = vld [vmem:[%s690_s6] ss:$0 sm:$0xff] }
  0x12   : > { %v556_v25 = vld [vmem:[%s691_s7] ss:$0 sm:$0xff] }
  0x8c   : > { %v462_v27 = vpop.permute.xlu1 %461 }
  0xcf   : > { %v414_v6 = vpop.f32.mrf.mxu0 }
  0xd0   : > { %v418_v8 = vadd.f32 %v414_v6, %v337_v5 }
  0xd1   : > { %v565_v9 = vpop.f32.mrf.mxu0 }
  0xd2   : > { %v426_v10 = vadd.f32 %v554_v7, %v418_v8 }
  0xd4   : > { %v430_v11 = vsel %vm429_vm3, %v426_v10, 0.0 }
  0xd5   : > { %431 = vadd.xlane.f32.xlu0 %v430_v11 }
 0x15e   : > { %v432_v14 = vpop.xlane.xlu0 %431 }
 0x15f   : > { %v434_v15 = vmul.f32 0.03125, %v432_v14 }
 0x161   : > { %v435_v16 = vsub.f32 %v426_v10, %v434_v15 }
 0x163   : > { %v436_v17 = vmul.f32 %v435_v16, %v435_v16 }
 0x165   : > { %v437_v18 = vsel %vm429_vm3, %v436_v17, 0.0 }
 0x166   : > { %438 = vadd.xlane.f32.xlu0 %v437_v18 }
 0x1ef   : > { %v439_v19 = vpop.xlane.xlu0 %438 }
 0x1f0   : > { %v440_v20 = vmul.f32 0.03125, %v439_v19 }
 0x1f2   : > { %v441_v21 = vadd.f32 1e-12, %v440_v20 }
 0x1f4   : > { %579 = vrsqrt.f32 %v441_v21 }
 0x201   : > { %v580_v22 = vpop.eup %579 }
 0x202   : > { %v443_v24 = vmul.f32 %v580_v22, %v435_v16 }
 0x204   : > { %v450_v26 = vmul.f32 %v555_v23, %v443_v24 }
 0x206   : > { %v457_v28 = vadd.f32 %v556_v25, %v450_v26 }
 0x208   : > { %v464_v29 = vmul.f32 %v462_v27, %v457_v28 }
 0x20a   : > { %465 = vst.msk [vmem:[%s334_s30] sm:$0xff] %vm429_vm3, %v464_v29 }
 0x20b PF: > { %s18_s27 = sadd.s32 1, %s587_s27  }
 0x20c   : > { %p15_p4 = scmp.ge.s32.totalorder %s18_s27, 4  }
 0x20e   :  { %17 = sbr.rel (!%p15_p4) target bundleno = 1 (0x1), region = 88 }

// kernel: forward_test.7
= control target key start
LH: loop header
LB: loop body
LE: loop exit
PB: predicated region body
PF: predicated region fallthrough
CT: control target
= control target key end

     0   :  { %s2702_s0 = inlined_call_operand.vmem [shape: f32[2,8,32], index: 0, kind: input, shape index: {}, may-alias: {0,1}]   ;;  %s2703_s1 = inlined_call_operand.vmem [shape: f32[2,8,32], index: 1, kind: input, shape index: {}, may-alias: {0,1}]   ;;  %s2704_s2 = inlined_call_operand.vmem [shape: f32[2,1,8], index: 2, kind: input, shape index: {}]   ;;  %s2705_s3 = inlined_call_operand.vmem [shape: f32[2,8,1], index: 3, kind: input, shape index: {}]   ;;  %s2706_s4 = inlined_call_operand.vmem [shape: f32[32,32], index: 4, kind: input, shape index: {}]   ;;  %s2707_s5 = inlined_call_operand.vmem [shape: f32[1,32], index: 5, kind: input, shape index: {}]   ;;  %s2708_s6 = inlined_call_operand.vmem [shape: f32[32,32], index: 6, kind: input, shape index: {}]   ;;  %s2709_s7 = inlined_call_operand.vmem [shape: f32[1,32], index: 7, kind: input, shape index: {}]   ;;  %s2710_s8 = inlined_call_operand.vmem [shape: f32[32,32], index: 8, kind: input, shape index: {}]   ;;  %s2711_s9 = inlined_call_operand.vmem [shape: f32[1,32], index: 9, kind: input, shape index: {}]   ;;  %s2712_s10 = inlined_call_operand.vmem [shape: f32[32,32], index: 10, kind: input, shape index: {}]   ;;  %s2713_s11 = inlined_call_operand.vmem [shape: f32[1,32], index: 11, kind: input, shape index: {}]   ;;  %s2714_s12 = inlined_call_operand.vmem [shape: f32[1,32], index: 12, kind: input, shape index: {}]   ;;  %s2715_s13 = inlined_call_operand.vmem [shape: f32[1,32], index: 13, kind: input, shape index: {}]   ;;  %s2716_s14 = inlined_call_operand.vmem [shape: f32[32,64], index: 14, kind: input, shape index: {}]   ;;  %s2717_s15 = inlined_call_operand.vmem [shape: f32[1,64], index: 15, kind: input, shape index: {}]   ;;  %s2718_s16 = inlined_call_operand.vmem [shape: f32[64,32], index: 16, kind: input, shape index: {}]   ;;  %s2719_s17 = inlined_call_operand.vmem [shape: f32[1,32], index: 17, kind: input, shape index: {}]   ;;  %s2720_s18 = inlined_call_operand.vmem [shape: f32[1,32], index: 18, kind: input, shape index: {}]   ;;  %s2721_s19 = inlined_call_operand.vmem [shape: f32[1,32], index: 19, kind: input, shape index: {}]   ;;  %s2722_s20 = inlined_call_operand.vmem [shape: f32[1,32], index: 20, kind: input, shape index: {}]   ;;  %s2723_s21 = inlined_call_operand.vmem [shape: f32[1,32], index: 21, kind: input, shape index: {}]   ;;  %s2724_s22 = inlined_call_operand.vmem [shape: f32[1,32], index: 22, kind: input, shape index: {}]   ;;  %s2725_s23 = inlined_call_operand.<no memory space> [shape: f32[1,1], index: 23, kind: input, shape index: {}]   ;;  %s2726_s24 = inlined_call_operand.vmem [shape: f32[2,8,32], index: 24, kind: output, shape index: {0}]   ;;  %s2727_s25 = inlined_call_operand.hbm [shape: f32[2,8,1], index: 25, kind: output, shape index: {1}]  }
   0x1   :  { %2738 = sst [smem:[#allocation11_spill]] %s2702_s0  ;;  %v31_v0 = vstv %s2725_s23 }
   0x2   :  { %2739 = sst [smem:[#allocation12_spill]] %s2703_s1  ;;  %32 = vst [vmem:[#allocation2] sm:$0x1] %v31_v0 }
   0x3   :  { %2740 = sst [smem:[#allocation13_spill]] %s2704_s2 }
   0x4   :  { %2741 = sst [smem:[#allocation14_spill]] %s2705_s3 }
   0x5   :  { %2742 = sst [smem:[#allocation15_spill]] %s2706_s4 }
   0x6   :  { %2743 = sst [smem:[#allocation16_spill]] %s2707_s5 }
   0x7   :  { %2744 = sst [smem:[#allocation17_spill]] %s2708_s6 }
   0x8   :  { %2745 = sst [smem:[#allocation18_spill]] %s2709_s7 }
   0x9   :  { %2746 = sst [smem:[#allocation19_spill]] %s2710_s8 }
   0xa   :  { %2747 = sst [smem:[#allocation20_spill]] %s2711_s9 }
   0xb   :  { %2748 = sst [smem:[#allocation21_spill]] %s2712_s10 }
   0xc   :  { %2749 = sst [smem:[#allocation22_spill]] %s2713_s11 }
   0xd   :  { %2750 = sst [smem:[#allocation23_spill]] %s2727_s25 }
   0xe   :  { %33 = vsyncpa [#allocation4], 0 }
   0xf   :  { %35 = vsyncpa [#allocation4 + $0x1], 0  ;;  %s2375_s6 = smov 0   ;;  %s2377_s30 = smov 0  }
  0x10   :  { %s2379_s7 = smov 0   ;;  %s2381_s3 = smov 0  }
  0x11 LB: > { %2751 = sst [smem:[#allocation6_spill]] %s2223_s6  ;;  %s2396_s23 = sadd.s32 4294967295, %s2235_s3   ;;  %s2235_s3 = sphi %s2381_s3, %s2774_s3   ;;  %s2231_s7 = sphi %s2379_s7, %s2779_s7   ;;  %s2227_s30 = sphi %s2377_s30, %s2778_s30   ;;  %s2223_s6 = sphi %s2375_s6, %s2777_s6  }
  0x12   : > { %2752 = sst [smem:[#allocation7_spill]] %s2231_s7  ;;  %s1938_s26 = sadd.s32 4294967294, %s2235_s3  }
  0x13   : > { %s2400_s1 = sadd.s32 1, %s2235_s3   ;;  %s598_s8 = sadd.s32 1, %s2231_s7 }
  0x14   : > { %2753 = sst [smem:[#allocation8_spill]] %s2400_s1  ;;  %s595_s27 = ssub.s32 %s2235_s3, %s2400_s1 }
  0x15   : > { %p608_p0 = scmp.ne.s32.totalorder %s2231_s7, %s2227_s30  ;;  %p596_p1 = scmp.eq.s32.totalorder %s595_s27, 0 }
  0x16   : > { %p609_p2 = scmp.eq.s32.totalorder %s2396_s23, 1  ;;  %p614_p3 = scmp.ne.s32.totalorder %s2227_s30, %s2223_s6 }
  0x17   : > { %p615_p4 = scmp.eq.s32.totalorder %s1938_s26, 1  ;;  %p1941_p7 = scmp.ge.s32.totalorder %s2235_s3, 1 }
  0x18   : > { %s2411_s4 = scalar_select %p596_p1, %s2231_s7, %s598_s8  }
  0x19   : > { %p2413_p5 = por %p609_p2, %p608_p0  ;;  %p2417_p6 = por %p615_p4, %p614_p3 }
  0x1a   : > { %2754 = sst [smem:[#allocation9_spill]] %s2411_s4  ;;  %p720_p8 = scmp.lt.s32.totalorder %s2235_s3, 3 }
  0x1b   : > { %s2756_s9 = scalar_select %p2417_p6, 1, 0 }
  0x1c   : > { %p721_p9 = pnand %p1941_p7, %p720_p8 }
  0x1d   : > { %2757 = sst [smem:[#allocation10_spill]] %s2756_s9  ;;  %p802_p10 = scmp.lt.s32.totalorder (!%p721_p9), %s2396_s23, 1 }
  0x1e   : > { %724 = sbr.rel (%p721_p9) target bundleno = 2667 (0xa6b), region = 116  ;;  %s2758_s29 = sld [smem:[#allocation15_spill]] (!%p721_p9) }
  0x1f   : > { %s2759_s1 = sld [smem:[#allocation11_spill]] (!%p721_p9) }
  0x20   : > { %s2760_s6 = sld [smem:[#allocation17_spill]] (!%p721_p9) }
  0x21   : > { %s2765_s2 = sld [smem:[#allocation19_spill]] (!%p721_p9) }
  0x22   : > { %s2766_s26 = sld [smem:[#allocation13_spill]] (!%p721_p9) }
  0x23   : > { %v2237_v2 = vmov 0.0   ;;  %vm2238_vm0 = vmmov 0   ;;  %s2434_s8 = scalar_select %p802_p10, %s2396_s23, 1  ;;  %vm834_vm1 = vcmask 261120   ;;  %v1076_v12 = vlaneseq }
  0x24   : > { %v826_v1 = vld [vmem:[%s2758_s29 + $0x18] sm:$0xff]  ;;  %2019 = vmatprep.subr.mxu1 %v2237_v2  ;;  %v825_v3 = vld [vmem:[%s2758_s29 + $0x10] sm:$0xff]  ;;  %2027 = vmatprep.mubr.msk.f32.mxu1 %vm2238_vm0, %v2237_v2  ;;  %v824_v4 = vld [vmem:[%s2758_s29 + $0x8] sm:$0xff]  ;;  %v2239_v33 = vmov -1e+09   ;;  %vm1168_vm7 = vcmask 64512  }
  0x25   : > { %2020 = vmatpush3.msra.mxu1 %v826_v1  ;;  %2041 = vmatprep.subr.mxu0 %v2237_v2  ;;  %s2444_s0 = sshll.u32 %s2434_s8, 3  ;;  %v823_v5 = vld [vmem:[%s2758_s29] sm:$0xff]  ;;  %v1077_v14 = vand.u32 127, %v1076_v12  ;;  %v1163_v31 = vshrl.u32 %v1076_v12, 7  ;;  %s2768_s10 = sld [smem:[#allocation21_spill]]  ;;  %vm1633_vm8 = vcmask 523264  }
  0x26   : > { %2021 = vmatprep.subr.mxu1 %v2237_v2  ;;  %2049 = vmatprep.mubr.msk.f32.mxu0 %vm2238_vm0, %v2237_v2  ;;  %s805_s9 = scalar_lea.vmem %s2759_s1, %s2444_s0  ;;  %s2761_s25 = smov %s2760_s6  ;;  %v911_v7 = vld [vmem:[%s2760_s6 + $0x18] sm:$0xff]  ;;  %vm1799_vm9 = vcmask 7168  }
  0x27   : > { %2022 = vmatpush3.msra.mxu1 %v825_v3  ;;  %v2454_v6 = vld [vmem:[%s805_s9] sm:$0xff]  ;;  %v910_v8 = vld [vmem:[%s2761_s25 + $0x10] sm:$0xff]  ;;  %v909_v9 = vld [vmem:[%s2761_s25 + $0x8] sm:$0xff]  ;;  %s2762_s9 = sld [smem:[#allocation12_spill]]  ;;  %vm1079_vm2 = vcmp.lt.s32.totalorder %v1077_v14, 16  ;;  %vm1180_vm3 = vcmp.ge.s32.totalorder %v1077_v14, 16 }
  0x28   : > { %2023 = vmatprep.subr.mxu1 %v2237_v2  ;;  %v908_v10 = vld [vmem:[%s2761_s25] sm:$0xff]  ;;  %s2763_s1 = sld [smem:[#allocation18_spill]]  ;;  %vm1181_vm4 = vcmp.lt.s32.totalorder %v1077_v14, 32  ;;  %v2489_v18 = vsel %vm1079_vm2, 1.0, %v2237_v2  ;;  %v995_v26 = vld [vmem:[%s2765_s2 + $0x18] sm:$0xff]  ;;  %v994_v27 = vld [vmem:[%s2765_s2 + $0x10] sm:$0xff]  ;;  %s812_s7 = scalar_lea.vmem %s2766_s26, %s2434_s8 }
  0x29   : > { %2024 = vmatpush3.msra.mxu1 %v824_v4  ;;  %vm1182_vm5 = vmand %vm1180_vm3, %vm1181_vm4  ;;  %2042 = vmatpush3.msra.mxu0 %v995_v26  ;;  %v993_v28 = vld [vmem:[%s2765_s2 + $0x8] sm:$0xff]  ;;  %v992_v29 = vld [vmem:[%s2765_s2] sm:$0xff]  ;;  %v1164_v32 = vsub.s32 0, %v1163_v31  ;;  %s2767_s6 = sld [smem:[#allocation20_spill]]  ;;  %s1974_s8 = sshll.u32 %s2396_s23, 7 }
  0x2a   : > { %2025 = vmatprep.subr.mxu1 %v2237_v2  ;;  %v2496_v23 = vsel %vm1182_vm5, 1.0, %v2237_v2  ;;  %2043 = vmatprep.subr.mxu0 %v2237_v2  ;;  %v1073_v30 = vld [vmem:[%s812_s7] sm:$0x1]  ;;  %s2769_s11 = sld [smem:[#allocation22_spill]]  ;;  %v1536_v26 = vld [vmem:[%s2716_s14 + $0x18] sm:$0xff]  ;;  %v1623_v31 = vld [vmem:[%s2718_s16 + $0x28] sm:$0xff] }
  0x2b   : > { %2026 = vmatpush3.msra.mxu1 %v823_v5  ;;  %2044 = vmatpush3.msra.mxu0 %v994_v27  ;;  %vm1074_vm6 = vcmp.gt.f32.partialorder %v1073_v30, 0.0  ;;  %v1421_v5 = vld [vmem:[%s2768_s10 + $0x18] sm:$0xff]  ;;  %v1534_v27 = vld [vmem:[%s2716_s14 + $0x8] sm:$0xff]  ;;  %v1624_v30 = vld [vmem:[%s2718_s16 + $0x30] sm:$0xff] }
  0x2c   : > { %2028 = vmatmul.mubr.msk.f32.vlgmr.msra.gmra.mxu1 %vm834_vm1, %v2454_v6  ;;  %2030 = vmatprep.subr.mxu1 %v2237_v2  ;;  %v1075_v34 = vsel %vm1074_vm6, 0.0, %v2239_v33  ;;  %v1621_v33 = vld [vmem:[%s2718_s16 + $0x18] sm:$0xff] }
  0x2d   : > { %2031 = vmatpush3.msra.mxu1 %v911_v7  ;;  %2038 = vmatprep.mubr.msk.f32.mxu1 %vm2238_vm0, %v2237_v2  ;;  %s809_s27 = scalar_lea.vmem %s2762_s9, %s2444_s0  ;;  %s2764_s9 = sld [smem:[#allocation16_spill]]  ;;  %v1165_v35 = vrot.slane %v1075_v34, %v1164_v32  ;;  %v1420_v7 = vld [vmem:[%s2768_s10 + $0x10] sm:$0xff]  ;;  %v1622_v32 = vld [vmem:[%s2718_s16 + $0x20] sm:$0xff] }
  0x2e   : > { %2032 = vmatprep.subr.mxu1 %v2237_v2  ;;  %v822_v11 = vld [vmem:[%s809_s27] sm:$0xff]  ;;  %2045 = vmatprep.subr.mxu0 %v2237_v2  ;;  %s820_s27 = scalar_lea.vmem %s2726_s24, %s2444_s0 }
  0x2f   : > { %2033 = vmatpush3.msra.mxu1 %v910_v8  ;;  %v1949_v16 = vld [vmem:[%s2763_s1] ss:$0 sm:$0xff]  ;;  %2046 = vmatpush3.msra.mxu0 %v993_v28  ;;  %v1419_v8 = vld [vmem:[%s2768_s10 + $0x8] sm:$0xff] }
  0x30   : > { %2034 = vmatprep.subr.mxu1 %v2237_v2  ;;  %2047 = vmatprep.subr.mxu0 %v2237_v2  ;;  %v1951_v56 = vld [vmem:[%s2767_s6] ss:$0 sm:$0xff]  ;;  %s2770_s6 = sld [smem:[#allocation14_spill]] }
  0x31   : > { %2035 = vmatpush3.msra.mxu1 %v909_v9  ;;  %2048 = vmatpush3.msra.mxu0 %v992_v29  ;;  %v1418_v9 = vld [vmem:[%s2768_s10] sm:$0xff]  ;;  %v1625_v29 = vld [vmem:[%s2718_s16 + $0x38] sm:$0xff]  ;;  %s2241_s10 = smov [#allocation3]  }
  0x32   : > { %2036 = vmatprep.subr.mxu1 %v2237_v2  ;;  %2050 = vmatmul.mubr.msk.f32.vlgmr.msra.gmra.mxu0 %vm834_vm1, %v822_v11  ;;  %v1533_v28 = vld [vmem:[%s2716_s14] sm:$0xff] }
  0x33   : > { %2037 = vmatpush3.msra.mxu1 %v908_v10  ;;  %v1947_v21 = vld [vmem:[%s2764_s9] ss:$0 sm:$0xff]  ;;  %2062 = vmatprep.subr.mxu0 %v2237_v2 }
  0x34   : > { %2039 = vmatmul.mubr.msk.f32.vlgmr.msra.gmra.mxu1 %vm834_vm1, %v822_v11  ;;  %2052 = vmatprep.subr.mxu1 %v2237_v2 }
  0x35   : > { %2054 = vmatprep.mubr.msk.f32.mxu1 %vm2238_vm0, %v2237_v2  ;;  %2064 = vmatprep.mubr.msk.f32.mxu0 %vm2238_vm0, %v2237_v2 }
  0x36   : > { %s816_s4 = scalar_lea.vmem %s2770_s6, %s2444_s0  ;;  %s799_s0 = sand.u32 1, %s2227_s30  }
  0x37   : > { %s1942_s7 = sshll.u32 %s799_s0, 3  ;;  %s1806_s26 = scalar_lea.sflag [#allocation4], %s799_s0 }
  0x38   : > { %s801_s1 = scalar_lea.vmem [#allocation3], %s1942_s7 }
  0x39   : > { %s1822_s6 = sshll.u32 %s801_s1, 4  ;;  %s1823_s6 = int_to_ptr.vmem [resolvable:$true] %s1822_s6 }
  0x3a   : > { %s2175_s2 = scalar_lea.vmem %s1823_s6, 128 }
  0x3b   : > { %p2176_p11 = scmp.ne.s32.totalorder %s1823_s6, %s2175_s2 }
  0x3d   : > { %p2177_p12 = pnand %p2176_p11, %p2413_p5 }
  0x3f   : > { %p2178_p13 = pneg %p2177_p12 }
  0xec   : > { %v904_v13 = vpop.f32.mrf.mxu1 }
  0xed   : > { %v905_v24 = vadd.f32 %v1947_v21, %v904_v13 }
  0xee   : > { %v2029_v15 = vpop.f32.mrf.mxu1 }
  0xef   : > { %v1959_v15 = vld [vmem:[%s2769_s11] ss:$0 sm:$0xff]  ;;  %s2179_s11 = sshll.u32 %s2241_s10, 4  ;;  %s2180_s11 = int_to_ptr.vmem [resolvable:$false] %s2179_s11 }
  0xf0   : > { %s2181_s23 = scalar_lea.vmem %s2180_s11, 256  ;;  %p2182_p0 = scmp.lt.s32.totalorder %s1823_s6, %s2180_s11 }
  0xf1   : > { %p2183_p1 = scmp.lt.s32.totalorder %s2181_s23, %s2175_s2 }
  0xf2   : > { %v1069_v57 = vpop.f32.mrf.mxu0 }
  0xf3   : > { %v1070_v58 = vadd.f32 %v1951_v56, %v1069_v57  ;;  %v2240_v56 = vmov 0   ;;  %v1737_v57 = vld [vmem:[%s816_s4] sm:$0xff]  ;;  %p2184_p2 = por %p2183_p1, %p2182_p0 }
  0xf4   : > { %v988_v17 = vpop.f32.mrf.mxu1  ;;  %v2051_v59 = vpop.f32.mrf.mxu0  ;;  %2156 = vset.pattern.permute.xlu0 %v2240_v56 }
  0xf5   : > { %v989_v19 = vadd.f32 %v1949_v16, %v988_v17  ;;  %v1083_v60 = vmul.f32 %v2489_v18, %v1070_v58  ;;  %v1185_v61 = vmul.f32 %v2496_v23, %v1070_v58  ;;  %p2185_p3 = pnand %p2184_p2, %p2178_p13 }
  0xf6   : > { %v2040_v20 = vpop.f32.mrf.mxu1 }
  0xf7   : > { %v1082_v22 = vmul.f32 %v2489_v18, %v989_v19  ;;  %v1184_v25 = vmul.f32 %v2496_v23, %v989_v19  ;;  %2063 = vmatpush3.msra.mxu0 %v1185_v61 }
  0xf8   : > { %2072 = vmatprep.subr.mxu0 %v2237_v2 }
  0xf9   : > { %2053 = vmatpush3.xpose.msk.msra.mxu1 %vm834_vm1, %v1082_v22 }
  0xfa   : > { %2057 = vmatprep.subr.mxu1 %v2237_v2 }
  0xfc   : > { %2055 = vmatmul.mubr.msk.f32.vlgmr.msra.gmra.mxu1 %vm834_vm1, %v905_v24 }
  0xfd   : > { %2058 = vmatpush3.xpose.msk.msra.mxu1 %vm834_vm1, %v1184_v25  ;;  %2059 = vmatprep.mubr.msk.f32.mxu1 %vm2238_vm0, %v2237_v2 }
  0xfe   : > { %2067 = vmatprep.subr.mxu1 %v2237_v2 }
 0x100   : > { %2060 = vmatmul.mubr.msk.f32.vlgmr.msra.gmra.mxu1 %vm834_vm1, %v905_v24 }
 0x101   : > { %2069 = vmatprep.mubr.msk.f32.mxu1 %vm2238_vm0, %v2237_v2  ;;  %2068 = vmatpush3.msra.mxu1 %v1083_v60 }
 0x102   : > { %2083 = vmatprep.subr.mxu1 %v2237_v2 }
 0x1bc   : > { %v1156_v36 = vpop.f32.mrf.mxu1 }
 0x1bd   : > { %v1160_v37 = vmul.f32 0.25, %v1156_v36 }
 0x1be   : > { %v2056_v38 = vpop.f32.mrf.mxu1 }
 0x1bf   : > { %v1167_v39 = vadd.f32 %v1165_v35, %v1160_v37  ;;  %v1961_v38 = vld [vmem:[%s2714_s12] ss:$0 sm:$0xff] }
 0x1c0   : > { %v1255_v40 = vpop.f32.mrf.mxu1 }
 0x1c1   : > { %v1259_v41 = vmul.f32 0.25, %v1255_v40  ;;  %v1169_v42 = vsel %vm1168_vm7, %v1167_v39, -inf  ;;  %v1962_v40 = vld [vmem:[%s2715_s13] ss:$0 sm:$0xff] }
 0x1c2   : > { %1170 = vmax.xlane.f32.xlu0 %v1169_v42  ;;  %v2061_v43 = vpop.f32.mrf.mxu1 }
 0x1c3   : > { %v1260_v44 = vadd.f32 %v1259_v41, %v1165_v35  ;;  %v1620_v43 = vld [vmem:[%s2718_s16 + $0x10] sm:$0xff] }
 0x1c5   : > { %v1261_v45 = vsel %vm1168_vm7, %v1260_v44, -inf }
 0x1c6   : > { %1262 = vmax.xlane.f32.xlu0 %v1261_v45  ;;  %v1618_v45 = vld [vmem:[%s2718_s16] sm:$0xff] }
 0x24b   : > { %v1171_v46 = vpop.xlane.xlu0 %1170 }
 0x24c   : > { %v1172_v47 = vsub.f32 %v1167_v39, %v1171_v46  ;;  %v1963_v46 = vld [vmem:[%s2717_s15] ss:$0 sm:$0xff] }
 0x24e   : > { %v1173_v48 = vmul.f32 1.442695, %v1172_v47 }
 0x24f   : > { %v1263_v49 = vpop.xlane.xlu0 %1262 }
 0x250   : > { %2157 = vpow2.f32 %v1173_v48  ;;  %v1264_v50 = vsub.f32 %v1260_v44, %v1263_v49  ;;  %v1619_v44 = vld [vmem:[%s2718_s16 + $0x8] sm:$0xff] }
 0x252   : > { %v1265_v51 = vmul.f32 1.442695, %v1264_v50 }
 0x254   : > { %2159 = vpow2.f32 %v1265_v51 }
 0x25d   : > { %v2158_v52 = vpop.eup %2157 }
 0x25e   : > { %v1175_v53 = vsel %vm1168_vm7, %v2158_v52, 0.0 }
 0x25f   : > { %1176 = vadd.xlane.f32.xlu1 %v1175_v53 }
 0x261   : > { %v2160_v54 = vpop.eup %2159 }
 0x262   : > { %v1267_v55 = vsel %vm1168_vm7, %v2160_v54, 0.0 }
 0x263   : > { %1268 = vadd.xlane.f32.xlu1 %v1267_v55 }
 0x2e8   : > { %v1177_v62 = vpop.xlane.xlu1 %1176 }
 0x2e9   : > { %2161 = vrcp.f32 %v1177_v62 }
 0x2ec   : > { %v1269_v63 = vpop.xlane.xlu1 %1268 }
 0x2ed   : > { %2163 = vrcp.f32 %v1269_v63 }
 0x2f6   : > { %v2162_v0 = vpop.eup %2161 }
 0x2f7   : > { %v1179_v1 = vmul.f32 %v2162_v0, %v2158_v52 }
 0x2f9   : > { %2070 = vmatmul.mubr.msk.f32.vlgmr.msra.gmra.mxu1 %vm1168_vm7, %v1179_v1 }
 0x2fa   : > { %v2164_v3 = vpop.eup %2163  ;;  %2091 = vmatprep.mubr.msk.f32.mxu1 %vm2238_vm0, %v2237_v2  ;;  %2084 = vmatpush3.msra.mxu1 %v1536_v26  ;;  %v1971_v26 = vld [vmem:[%s2724_s22] ss:$0 sm:$0xff] }
 0x2fb   : > { %v1271_v4 = vmul.f32 %v2164_v3, %v2160_v54  ;;  %2085 = vmatprep.subr.mxu1 %v2237_v2 }
 0x2fd   : > { %2065 = vmatmul.mubr.msk.f32.vlgmr.msra.gmra.mxu0 %vm1168_vm7, %v1271_v4  ;;  %v1967_v4 = vld [vmem:[%s2720_s18] ss:$0 sm:$0xff] }
 0x2fe   : > { %2080 = vmatprep.mubr.msk.f32.mxu0 %vm2238_vm0, %v2237_v2  ;;  %2073 = vmatpush3.msra.mxu0 %v1421_v5 }
 0x2ff   : > { %2074 = vmatprep.subr.mxu0 %v2237_v2 }
 0x300   : > { %2075 = vmatpush3.msra.mxu0 %v1420_v7  ;;  %v1968_v7 = vld [vmem:[%s2721_s19] ss:$0 sm:$0xff] }
 0x301   : > { %2076 = vmatprep.subr.mxu0 %v2237_v2 }
 0x302   : > { %2077 = vmatpush3.msra.mxu0 %v1419_v8 }
 0x303   : > { %2078 = vmatprep.subr.mxu0 %v2237_v2 }
 0x304   : > { %2079 = vmatpush3.msra.mxu0 %v1418_v9 }
 0x305   : > { %2094 = vmatprep.subr.mxu0 %v2237_v2 }
 0x3b9   : > { %v1414_v10 = vpop.f32.mrf.mxu1 }
 0x3bb   : > { %v2071_v11 = vpop.f32.mrf.mxu1 }
 0x3bd   : > { %v1341_v12 = vpop.f32.mrf.mxu0 }
 0x3be   : > { %v1415_v13 = vadd.f32 %v1414_v10, %v1341_v12 }
 0x3bf   : > { %v2066_v14 = vpop.f32.mrf.mxu0 }
 0x3c0   : > { %2081 = vmatmul.mubr.msk.f32.vlgmr.msra.gmra.mxu0 %vm834_vm1, %v1415_v13 }
 0x3c1   : > { %2110 = vmatprep.mubr.msk.f32.mxu0 %vm2238_vm0, %v2237_v2  ;;  %2095 = vmatpush3.msra.mxu0 %v1625_v29  ;;  %v1972_v29 = vld [vmem:[#allocation2] ss:$0 sm:$0xff] }
 0x3c2   : > { %2096 = vmatprep.subr.mxu0 %v2237_v2 }
 0x3c3   : > { %2097 = vmatpush3.msra.mxu0 %v1624_v30 }
 0x3c4   : > { %2098 = vmatprep.subr.mxu0 %v2237_v2 }
 0x3c5   : > { %2099 = vmatpush3.msra.mxu0 %v1623_v31 }
 0x3c6   : > { %2100 = vmatprep.subr.mxu0 %v2237_v2 }
 0x3c7   : > { %2101 = vmatpush3.msra.mxu0 %v1622_v32 }
 0x3c8   : > { %2102 = vmatprep.subr.mxu0 %v2237_v2 }
 0x3c9   : > { %2103 = vmatpush3.msra.mxu0 %v1621_v33 }
 0x3ca   : > { %2104 = vmatprep.subr.mxu0 %v2237_v2 }
 0x3cb   : > { %2105 = vmatpush3.msra.mxu0 %v1620_v43 }
 0x3cc   : > { %2106 = vmatprep.subr.mxu0 %v2237_v2 }
 0x3cd   : > { %2107 = vmatpush3.msra.mxu0 %v1619_v44 }
 0x3ce   : > { %2108 = vmatprep.subr.mxu0 %v2237_v2 }
 0x3cf   : > { %2109 = vmatpush3.msra.mxu0 %v1618_v45 }
 0x480   : > { %v1498_v16 = vpop.f32.mrf.mxu0 }
 0x481   : > { %v1499_v17 = vadd.f32 %v1959_v15, %v1498_v16 }
 0x482   : > { %v2082_v18 = vpop.f32.mrf.mxu0 }
 0x483   : > { %v1502_v19 = vadd.f32 %v1499_v17, %v2454_v6  ;;  %v1535_v6 = vld [vmem:[%s2716_s14 + $0x10] sm:$0xff] }
 0x484   : > { %2086 = vmatpush3.msra.mxu1 %v1535_v6 }
 0x485   : > { %v1505_v20 = vsel %vm834_vm1, %v1502_v19, 0.0  ;;  %2087 = vmatprep.subr.mxu1 %v2237_v2 }
 0x486   : > { %1506 = vadd.xlane.f32.xlu0 %v1505_v20  ;;  %2088 = vmatpush3.msra.mxu1 %v1534_v27 }
 0x487   : > { %2089 = vmatprep.subr.mxu1 %v2237_v2  ;;  %v1965_v2 = vld [vmem:[%s2719_s17] ss:$0 sm:$0xff] }
 0x488   : > { %2090 = vmatpush3.msra.mxu1 %v1533_v28 }
 0x50f   : > { %v1507_v21 = vpop.xlane.xlu0 %1506 }
 0x510   : > { %v1509_v22 = vmul.f32 0.03125, %v1507_v21 }
 0x512   : > { %v1510_v23 = vsub.f32 %v1502_v19, %v1509_v22  ;;  %v1969_v22 = vld [vmem:[%s2722_s20] ss:$0 sm:$0xff] }
 0x514   : > { %v1511_v24 = vmul.f32 %v1510_v23, %v1510_v23 }
 0x516   : > { %v1512_v25 = vsel %vm834_vm1, %v1511_v24, 0.0  ;;  %v1970_v24 = vld [vmem:[%s2723_s21] ss:$0 sm:$0xff] }
 0x517   : > { %1513 = vadd.xlane.f32.xlu1 %v1512_v25 }
 0x5a0   : > { %v1514_v34 = vpop.xlane.xlu1 %1513 }
 0x5a1   : > { %v1515_v35 = vmul.f32 0.03125, %v1514_v34 }
 0x5a3   : > { %v1516_v36 = vadd.f32 1e-12, %v1515_v35 }
 0x5a5   : > { %2165 = vrsqrt.f32 %v1516_v36 }
 0x5b2   : > { %v2166_v37 = vpop.eup %2165 }
 0x5b3   : > { %v1518_v39 = vmul.f32 %v2166_v37, %v1510_v23 }
 0x5b5   : > { %v1525_v41 = vmul.f32 %v1961_v38, %v1518_v39 }
 0x5b7   : > { %v1532_v42 = vadd.f32 %v1962_v40, %v1525_v41 }
 0x5b9   : > { %2092 = vmatmul.mubr.msk.f32.vlgmr.msra.gmra.mxu1 %vm834_vm1, %v1532_v42 }
 0x679   : > { %v1613_v47 = vpop.f32.mrf.mxu1 }
 0x67a   : > { %v1614_v48 = vadd.f32 %v1963_v46, %v1613_v47 }
 0x67b   : > { %v2093_v49 = vpop.f32.mrf.mxu1 }
 0x67c   : > { %v1617_v50 = vmax.f32 %v1614_v48, 0.0 }
 0x67e   : > { %2111 = vmatmul.mubr.msk.f32.vlgmr.msra.gmra.mxu0 %vm1633_vm8, %v1617_v50 }
 0x73e   : > { %v1703_v51 = vpop.f32.mrf.mxu0 }
 0x73f   : > { %v1704_v52 = vadd.f32 %v1965_v2, %v1703_v51 }
 0x740   : > { %v2112_v53 = vpop.f32.mrf.mxu0 }
 0x741   : > { %v1707_v54 = vadd.f32 %v1704_v52, %v1532_v42 }
 0x743   : > { %v1710_v55 = vsel %vm834_vm1, %v1707_v54, 0.0 }
 0x744   : > { %1711 = vadd.xlane.f32.xlu0 %v1710_v55 }
 0x75a   : > { %1740 = vperm.xlu0 %2156, %v1737_v57  }
 0x7cd   : > { %v1712_v58 = vpop.xlane.xlu0 %1711 }
 0x7ce   : > { %v1713_v59 = vmul.f32 0.03125, %v1712_v58 }
 0x7d0   : > { %v1714_v60 = vsub.f32 %v1707_v54, %v1713_v59 }
 0x7d2   : > { %v1715_v61 = vmul.f32 %v1714_v60, %v1714_v60 }
 0x7d4   : > { %v1716_v62 = vsel %vm834_vm1, %v1715_v61, 0.0 }
 0x7d5   : > { %1717 = vadd.xlane.f32.xlu1 %v1716_v62  ;;  %v1741_v9 = vpop.permute.xlu0 %1740 }
 0x85e   : > { %v1718_v63 = vpop.xlane.xlu1 %1717 }
 0x85f   : > { %v1719_v0 = vmul.f32 0.03125, %v1718_v63 }
 0x861   : > { %v1720_v1 = vadd.f32 1e-12, %v1719_v0 }
 0x863   : > { %2167 = vrsqrt.f32 %v1720_v1 }
 0x870   : > { %v2168_v3 = vpop.eup %2167 }
 0x871   : > { %v1722_v5 = vmul.f32 %v2168_v3, %v1714_v60 }
 0x873   : > { %v1729_v8 = vmul.f32 %v1967_v4, %v1722_v5 }
 0x875   : > { %v1736_v10 = vadd.f32 %v1968_v7, %v1729_v8 }
 0x877   : > { %v1743_v11 = vmul.f32 %v1741_v9, %v1736_v10 }
 0x879   : > { %v1746_v12 = vsel %vm834_vm1, %v1743_v11, 0.0 }
 0x87a   : > { %1747 = vadd.xlane.f32.xlu1 %v1746_v12 }
 0x903   : > { %v1748_v13 = vpop.xlane.xlu1 %1747 }
 0x904   : > { %v1749_v14 = vmul.f32 0.03125, %v1748_v13 }
 0x906   : > { %v1750_v15 = vsub.f32 %v1743_v11, %v1749_v14 }
 0x908   : > { %v1751_v16 = vmul.f32 %v1750_v15, %v1750_v15 }
 0x90a   : > { %v1752_v17 = vsel %vm834_vm1, %v1751_v16, 0.0 }
 0x90b   : > { %1753 = vadd.xlane.f32.xlu1 %v1752_v17 }
 0x994   : > { %v1754_v18 = vpop.xlane.xlu1 %1753 }
 0x995   : > { %v1755_v19 = vmul.f32 0.03125, %v1754_v18 }
 0x997   : > { %v1756_v20 = vadd.f32 1e-12, %v1755_v19 }
 0x999   : > { %2169 = vrsqrt.f32 %v1756_v20 }
 0x9a6   : > { %v2170_v21 = vpop.eup %2169 }
 0x9a7   : > { %v1758_v23 = vmul.f32 %v2170_v21, %v1750_v15 }
 0x9a9   : > { %v1765_v25 = vmul.f32 %v1969_v22, %v1758_v23 }
 0x9ab   : > { %v1772_v6 = vadd.f32 %v1970_v24, %v1765_v25 }
 0x9ad   : > { %v1781_v27 = vmul.f32 %v1971_v26, %v1772_v6  ;;  %1773 = vst.msk [vmem:[%s820_s27] sm:$0xff] %vm834_vm1, %v1772_v6  ;;  %s2771_s27 = sld [smem:[#allocation23_spill]] }
 0x9af   : > { %v1782_v28 = vsel %vm834_vm1, %v1781_v27, 0.0 }
 0x9b0   : > { %1783 = vadd.xlane.f32.xlu1 %v1782_v28 }
 0x9b3   : > { %s2667_s5 = scalar_lea.hbm %s2771_s27, %s1974_s8 }
 0xa39   : > { %v1784_v30 = vpop.xlane.xlu1 %1783 }
 0xa3a   : > { %v1792_v31 = vadd.f32 %v1972_v29, %v1784_v30 }
 0xa3c   : > { %v1793_v32 = vsub.f32 0.0, %v1792_v31 }
 0xa3e   : > { %v1794_v33 = vmul.f32 1.442695, %v1793_v32 }
 0xa40   : > { %2171 = vpow2.f32 %v1794_v33 }
 0xa4d   : > { %v2172_v34 = vpop.eup %2171 }
 0xa4e   : > { %v1796_v35 = vadd.f32 1.0, %v2172_v34 }
 0xa50   : > { %2173 = vrcp.f32 %v1796_v35 }
 0xa5d   : > { %v2174_v36 = vpop.eup %2173 }
 0xa5e   : > { %1800 = vst.msk [vmem:[%s801_s1] sm:$0xff] %vm1799_vm9, %v2174_v36 }
 0xa5f   : > { %2188 = shalt.err (!%p2185_p3)
}
 0xa60   : > { %s2189_s7 = scalar_lea.hbm %s2667_s5, 128  ;;  %s2193_s10 = scalar_lea.hbm %s2771_s27, 256 }
 0xa61   : > { %p2190_p4 = scmp.ne.s32.totalorder %s2667_s5, %s2189_s7  ;;  %p2194_p9 = scmp.lt.s32.totalorder %s2667_s5, %s2771_s27 }
 0xa62   : > { %p2195_p10 = scmp.lt.s32.totalorder %s2193_s10, %s2189_s7 }
 0xa63   : > { %p2191_p7 = pnand %p2190_p4, %p2413_p5 }
 0xa64   : > { %p2196_p11 = por %p2195_p10, %p2194_p9 }
 0xa65   : > { %p2192_p8 = pneg %p2191_p7 }
 0xa67   : > { %p2197_p12 = pnand %p2196_p11, %p2192_p8 }
 0xa69   : > { %2200 = shalt.err (!%p2197_p12)
}
 0xa6a   : > { %2113 = dma.vmem_to_hbm [thread:$0]  (%p2413_p5), %s1823_s6, 128, %s2667_s5, %s1806_s26  }
 0xa6b PF: > { %s2772_s11 = sld [smem:[#allocation6_spill]]  ;;  %p2119_p13 = scmp.ge.s32.totalorder %s2235_s3, 2 }
 0xa6d   : > { %p2116_p0 = pnand %p2119_p13, %p2417_p6 }
 0xa6f   : > { %p2117_p1 = pneg %p2116_p0 }
 0xa71   : > { %s1841_s9 = sand.u32 1, %s2772_s11  }
 0xa72   : > { %s1842_s23 = scalar_lea.sflag [#allocation4], %s1841_s9 }
 0xa73   : > { %2218 = dma.done.wait (%p2117_p1), %s1842_s23, 128  }
 0xa74   : > { %2220 = vsyncadd (%p2117_p1), %s1842_s23, 4294967168  ;;  %s2774_s3 = sld [smem:[#allocation8_spill]]  ;;  %s2777_s6 = smov %s2227_s30 }
 0xa75   : > { %s2775_s7 = sld [smem:[#allocation7_spill]] }
 0xa76   : > { %s2776_s0 = sld [smem:[#allocation9_spill]] }
 0xa7a   : > { %p38_p2 = scmp.ge.s32.totalorder %s2774_s3, 4  }
 0xa7b   : > { %s2778_s30 = smov %s2775_s7 }
 0xa7c   : > { %s2779_s7 = smov %s2776_s0  ;;  %40 = sbr.rel (!%p38_p2) target bundleno = 17 (0x11), region = 172 }
 0xa81   :  { %1847 = vsyncpa [#allocation4], 1 }
 0xa82   :  { %1849 = vsyncpa [#allocation4 + $0x1], 1 }

// kernel: forward_test.9
= control target key start
LH: loop header
LB: loop body
LE: loop exit
PB: predicated region body
PF: predicated region fallthrough
CT: control target
= control target key end

     0   :  { %s2640_s0 = inlined_call_operand.vmem [shape: f32[2,8,32], index: 0, kind: input, shape index: {}]   ;;  %s2641_s1 = inlined_call_operand.vmem [shape: f32[2,8,32], index: 1, kind: input, shape index: {}]   ;;  %s2642_s2 = inlined_call_operand.vmem [shape: f32[2,1,8], index: 2, kind: input, shape index: {}]   ;;  %s2643_s3 = inlined_call_operand.vmem [shape: f32[2,8,1], index: 3, kind: input, shape index: {}]   ;;  %s2644_s4 = inlined_call_operand.vmem [shape: f32[32,32], index: 4, kind: input, shape index: {}]   ;;  %s2645_s5 = inlined_call_operand.vmem [shape: f32[1,32], index: 5, kind: input, shape index: {}]   ;;  %s2646_s6 = inlined_call_operand.vmem [shape: f32[32,32], index: 6, kind: input, shape index: {}]   ;;  %s2647_s7 = inlined_call_operand.vmem [shape: f32[1,32], index: 7, kind: input, shape index: {}]   ;;  %s2648_s8 = inlined_call_operand.vmem [shape: f32[32,32], index: 8, kind: input, shape index: {}]   ;;  %s2649_s9 = inlined_call_operand.vmem [shape: f32[1,32], index: 9, kind: input, shape index: {}]   ;;  %s2650_s10 = inlined_call_operand.vmem [shape: f32[32,32], index: 10, kind: input, shape index: {}]   ;;  %s2651_s11 = inlined_call_operand.vmem [shape: f32[1,32], index: 11, kind: input, shape index: {}]   ;;  %s2652_s12 = inlined_call_operand.vmem [shape: f32[1,32], index: 12, kind: input, shape index: {}]   ;;  %s2653_s13 = inlined_call_operand.vmem [shape: f32[1,32], index: 13, kind: input, shape index: {}]   ;;  %s2654_s14 = inlined_call_operand.vmem [shape: f32[32,64], index: 14, kind: input, shape index: {}]   ;;  %s2655_s15 = inlined_call_operand.vmem [shape: f32[1,64], index: 15, kind: input, shape index: {}]   ;;  %s2656_s16 = inlined_call_operand.vmem [shape: f32[64,32], index: 16, kind: input, shape index: {}]   ;;  %s2657_s17 = inlined_call_operand.vmem [shape: f32[1,32], index: 17, kind: input, shape index: {}]   ;;  %s2658_s18 = inlined_call_operand.vmem [shape: f32[1,32], index: 18, kind: input, shape index: {}]   ;;  %s2659_s19 = inlined_call_operand.vmem [shape: f32[1,32], index: 19, kind: input, shape index: {}]   ;;  %s2660_s20 = inlined_call_operand.vmem [shape: f32[1,32], index: 20, kind: input, shape index: {}]   ;;  %s2661_s21 = inlined_call_operand.vmem [shape: f32[1,32], index: 21, kind: input, shape index: {}]   ;;  %s2662_s22 = inlined_call_operand.vmem [shape: f32[1,32], index: 22, kind: input, shape index: {}]   ;;  %s2663_s23 = inlined_call_operand.<no memory space> [shape: f32[1,1], index: 23, kind: input, shape index: {}]   ;;  %s2664_s24 = inlined_call_operand.hbm [shape: f32[2,8,32], index: 24, kind: output, shape index: {0}]   ;;  %s2665_s25 = inlined_call_operand.vmem [shape: f32[2,8,1], index: 25, kind: output, shape index: {1}]  }
   0x1   :  { %2674 = sst [smem:[#allocation9_spill]] %s2640_s0  ;;  %v31_v0 = vstv %s2663_s23 }
   0x2   :  { %2675 = sst [smem:[#allocation10_spill]] %s2641_s1  ;;  %32 = vst [vmem:[#allocation2] sm:$0x1] %v31_v0 }
   0x3   :  { %2676 = sst [smem:[#allocation11_spill]] %s2642_s2 }
   0x4   :  { %2677 = sst [smem:[#allocation12_spill]] %s2644_s4 }
   0x5   :  { %2678 = sst [smem:[#allocation13_spill]] %s2645_s5 }
   0x6   :  { %2679 = sst [smem:[#allocation14_spill]] %s2646_s6 }
   0x7   :  { %2680 = sst [smem:[#allocation15_spill]] %s2647_s7 }
   0x8   :  { %2681 = sst [smem:[#allocation16_spill]] %s2648_s8 }
   0x9   :  { %2682 = sst [smem:[#allocation17_spill]] %s2649_s9 }
   0xa   :  { %2683 = sst [smem:[#allocation18_spill]] %s2650_s10 }
   0xb   :  { %2684 = sst [smem:[#allocation19_spill]] %s2651_s11 }
   0xc   :  { %33 = vsyncpa [#allocation4], 0 }
   0xd   :  { %35 = vsyncpa [#allocation4 + $0x1], 0  ;;  %s2331_s20 = smov 0   ;;  %s2333_s21 = smov 0  }
   0xe   :  { %s2335_s6 = smov 0   ;;  %s2337_s30 = smov 0  }
   0xf LB: > { %2685 = sst [smem:[#allocation6_spill]] %s2188_s6  ;;  %s2352_s23 = sadd.s32 4294967295, %s2192_s30   ;;  %s2192_s30 = sphi %s2337_s30, %s2701_s30   ;;  %s2188_s6 = sphi %s2335_s6, %s2703_s6   ;;  %s2184_s21 = sphi %s2333_s21, %s2705_s21   ;;  %s2180_s20 = sphi %s2331_s20, %s2704_s20  }
  0x10   : > { %s1902_s7 = sadd.s32 4294967294, %s2192_s30   ;;  %s2356_s3 = sadd.s32 1, %s2192_s30  }
  0x11   : > { %2686 = sst [smem:[#allocation7_spill]] %s2356_s3  ;;  %s572_s26 = sadd.s32 1, %s2188_s6 }
  0x12   : > { %s569_s1 = ssub.s32 %s2192_s30, %s2356_s3  ;;  %p582_p0 = scmp.ne.s32.totalorder %s2188_s6, %s2184_s21 }
  0x13   : > { %p570_p1 = scmp.eq.s32.totalorder %s569_s1, 0  ;;  %p583_p2 = scmp.eq.s32.totalorder %s2352_s23, 1 }
  0x14   : > { %p588_p3 = scmp.ne.s32.totalorder %s2184_s21, %s2180_s20  ;;  %p589_p4 = scmp.eq.s32.totalorder %s1902_s7, 1 }
  0x15   : > { %s2367_s8 = scalar_select %p570_p1, %s2188_s6, %s572_s26  }
  0x16   : > { %p2369_p5 = por %p583_p2, %p582_p0  ;;  %p2373_p6 = por %p589_p4, %p588_p3 }
  0x17   : > { %2687 = sst [smem:[#allocation8_spill]] %s2367_s8  ;;  %p1905_p7 = scmp.ge.s32.totalorder %s2192_s30, 1 }
  0x18   : > { %p720_p8 = scmp.lt.s32.totalorder %s2192_s30, 3 }
  0x1a   : > { %p721_p9 = pnand %p1905_p7, %p720_p8 }
  0x1b   : > { %s2690_s5 = sld [smem:[#allocation12_spill]] (!%p721_p9)  ;;  %p802_p10 = scmp.lt.s32.totalorder (!%p721_p9), %s2352_s23, 1 }
  0x1c   : > { %724 = sbr.rel (%p721_p9) target bundleno = 2343 (0x927), region = 116  ;;  %s2691_s8 = sld [smem:[#allocation9_spill]] (!%p721_p9) }
  0x1d   : > { %s2692_s3 = sld [smem:[#allocation14_spill]] (!%p721_p9) }
  0x1e   : > { %s2693_s7 = sld [smem:[#allocation10_spill]] (!%p721_p9) }
  0x1f   : > { %s2695_s29 = sld [smem:[#allocation13_spill]] (!%p721_p9) }
  0x20   : > { %s2696_s28 = sld [smem:[#allocation16_spill]] (!%p721_p9) }
  0x21   : > { %v826_v1 = vld [vmem:[%s2690_s5 + $0x18] sm:$0xff]  ;;  %v2194_v2 = vmov 0.0   ;;  %v825_v3 = vld [vmem:[%s2690_s5 + $0x10] sm:$0xff]  ;;  %vm2195_vm0 = vmmov 0   ;;  %s2390_s2 = scalar_select %p802_p10, %s2352_s23, 1  ;;  %v824_v4 = vld [vmem:[%s2690_s5 + $0x8] sm:$0xff]  ;;  %v1076_v12 = vlaneseq }
  0x22   : > { %1980 = vmatprep.subr.mxu1 %v2194_v2  ;;  %1988 = vmatprep.mubr.msk.f32.mxu1 %vm2195_vm0, %v2194_v2  ;;  %v823_v5 = vld [vmem:[%s2690_s5] sm:$0xff]  ;;  %vm834_vm1 = vcmask 261120   ;;  %s2697_s9 = sld [smem:[#allocation11_spill]]  ;;  %v2196_v33 = vmov -1e+09   ;;  %vm1168_vm7 = vcmask 64512  }
  0x23   : > { %1981 = vmatpush3.msra.mxu1 %v826_v1  ;;  %2002 = vmatprep.subr.mxu0 %v2194_v2  ;;  %s2400_s1 = sshll.u32 %s2390_s2, 3  ;;  %v911_v7 = vld [vmem:[%s2692_s3 + $0x18] sm:$0xff]  ;;  %v910_v8 = vld [vmem:[%s2692_s3 + $0x10] sm:$0xff]  ;;  %v909_v9 = vld [vmem:[%s2692_s3 + $0x8] sm:$0xff]  ;;  %v1077_v14 = vand.u32 127, %v1076_v12  ;;  %v1163_v31 = vshrl.u32 %v1076_v12, 7 }
  0x24   : > { %1982 = vmatprep.subr.mxu1 %v2194_v2  ;;  %2010 = vmatprep.mubr.msk.f32.mxu0 %vm2195_vm0, %v2194_v2  ;;  %s805_s6 = scalar_lea.vmem %s2691_s8, %s2400_s1  ;;  %s809_s26 = scalar_lea.vmem %s2693_s7, %s2400_s1  ;;  %v908_v10 = vld [vmem:[%s2692_s3] sm:$0xff]  ;;  %vm1633_vm8 = vcmask 523264  }
  0x25   : > { %1983 = vmatpush3.msra.mxu1 %v825_v3  ;;  %v2410_v6 = vld [vmem:[%s805_s6] sm:$0xff]  ;;  %vm1079_vm2 = vcmp.lt.s32.totalorder %v1077_v14, 16  ;;  %s2694_s6 = sld [smem:[#allocation15_spill]]  ;;  %vm1180_vm3 = vcmp.ge.s32.totalorder %v1077_v14, 16  ;;  %vm1181_vm4 = vcmp.lt.s32.totalorder %v1077_v14, 32  ;;  %v1164_v32 = vsub.s32 0, %v1163_v31 }
  0x26   : > { %1984 = vmatprep.subr.mxu1 %v2194_v2  ;;  %v822_v11 = vld [vmem:[%s809_s26] sm:$0xff]  ;;  %v2445_v18 = vsel %vm1079_vm2, 1.0, %v2194_v2  ;;  %vm1182_vm5 = vmand %vm1180_vm3, %vm1181_vm4  ;;  %v995_v26 = vld [vmem:[%s2696_s28 + $0x18] sm:$0xff]  ;;  %s2698_s8 = sld [smem:[#allocation17_spill]]  ;;  %s2197_s26 = smov [#allocation3]  }
  0x27   : > { %1985 = vmatpush3.msra.mxu1 %v824_v4  ;;  %v1910_v21 = vld [vmem:[%s2695_s29] ss:$0 sm:$0xff]  ;;  %v2452_v23 = vsel %vm1182_vm5, 1.0, %v2194_v2  ;;  %v994_v27 = vld [vmem:[%s2696_s28 + $0x10] sm:$0xff]  ;;  %2003 = vmatpush3.msra.mxu0 %v995_v26  ;;  %v993_v28 = vld [vmem:[%s2696_s28 + $0x8] sm:$0xff]  ;;  %s2699_s10 = sld [smem:[#allocation18_spill]] }
  0x28   : > { %1986 = vmatprep.subr.mxu1 %v2194_v2  ;;  %2004 = vmatprep.subr.mxu0 %v2194_v2  ;;  %v992_v29 = vld [vmem:[%s2696_s28] sm:$0xff]  ;;  %s812_s5 = scalar_lea.vmem %s2697_s9, %s2390_s2  ;;  %s2700_s11 = sld [smem:[#allocation19_spill]]  ;;  %v1536_v26 = vld [vmem:[%s2654_s14 + $0x18] sm:$0xff]  ;;  %v1623_v31 = vld [vmem:[%s2656_s16 + $0x28] sm:$0xff] }
  0x29   : > { %1987 = vmatpush3.msra.mxu1 %v823_v5  ;;  %2005 = vmatpush3.msra.mxu0 %v994_v27  ;;  %v1073_v30 = vld [vmem:[%s812_s5] sm:$0x1]  ;;  %v1534_v27 = vld [vmem:[%s2654_s14 + $0x8] sm:$0xff]  ;;  %s793_s2 = sand.u32 1, %s2184_s21  }
  0x2a   : > { %1989 = vmatmul.mubr.msk.f32.vlgmr.msra.gmra.mxu1 %vm834_vm1, %v2410_v6  ;;  %1991 = vmatprep.subr.mxu1 %v2194_v2  ;;  %vm1074_vm6 = vcmp.gt.f32.partialorder %v1073_v30, 0.0  ;;  %v1624_v30 = vld [vmem:[%s2656_s16 + $0x30] sm:$0xff]  ;;  %s1906_s0 = sshll.u32 %s793_s2, 3  ;;  %s1766_s7 = scalar_lea.sflag [#allocation4], %s793_s2 }
  0x2b   : > { %1992 = vmatpush3.msra.mxu1 %v911_v7  ;;  %1999 = vmatprep.mubr.msk.f32.mxu1 %vm2195_vm0, %v2194_v2  ;;  %v1912_v16 = vld [vmem:[%s2694_s6] ss:$0 sm:$0xff]  ;;  %v1075_v34 = vsel %vm1074_vm6, 0.0, %v2196_v33  ;;  %v1621_v33 = vld [vmem:[%s2656_s16 + $0x18] sm:$0xff]  ;;  %s795_s5 = scalar_lea.vmem [#allocation3], %s1906_s0  ;;  %s1935_s6 = sshll.u32 %s2352_s23, 7 }
  0x2c   : > { %1993 = vmatprep.subr.mxu1 %v2194_v2  ;;  %2006 = vmatprep.subr.mxu0 %v2194_v2  ;;  %v1165_v35 = vrot.slane %v1075_v34, %v1164_v32  ;;  %v1914_v56 = vld [vmem:[%s2698_s8] ss:$0 sm:$0xff]  ;;  %s1783_s8 = sshll.u32 %s795_s5, 4  ;;  %s1781_s29 = scalar_lea.hbm %s2664_s24, %s1935_s6  ;;  %s1784_s8 = int_to_ptr.vmem [resolvable:$true] %s1783_s8 }
  0x2d   : > { %1994 = vmatpush3.msra.mxu1 %v910_v8  ;;  %2007 = vmatpush3.msra.mxu0 %v993_v28  ;;  %v1421_v5 = vld [vmem:[%s2699_s10 + $0x18] sm:$0xff]  ;;  %v1420_v7 = vld [vmem:[%s2699_s10 + $0x10] sm:$0xff]  ;;  %v1419_v8 = vld [vmem:[%s2699_s10 + $0x8] sm:$0xff]  ;;  %s2136_s0 = sshll.u32 %s2197_s26, 4  ;;  %s2137_s0 = int_to_ptr.vmem [resolvable:$false] %s2136_s0 }
  0x2e   : > { %1995 = vmatprep.subr.mxu1 %v2194_v2  ;;  %2008 = vmatprep.subr.mxu0 %v2194_v2  ;;  %v1533_v28 = vld [vmem:[%s2654_s14] sm:$0xff]  ;;  %s2138_s9 = scalar_lea.vmem %s2137_s0, 256  ;;  %p2139_p0 = scmp.lt.s32.totalorder %s1784_s8, %s2137_s0 }
  0x2f   : > { %1996 = vmatpush3.msra.mxu1 %v909_v9  ;;  %2009 = vmatpush3.msra.mxu0 %v992_v29  ;;  %v1418_v9 = vld [vmem:[%s2699_s10] sm:$0xff]  ;;  %v1625_v29 = vld [vmem:[%s2656_s16 + $0x38] sm:$0xff] }
  0x30   : > { %1997 = vmatprep.subr.mxu1 %v2194_v2  ;;  %2011 = vmatmul.mubr.msk.f32.vlgmr.msra.gmra.mxu0 %vm834_vm1, %v822_v11  ;;  %v1622_v32 = vld [vmem:[%s2656_s16 + $0x20] sm:$0xff] }
  0x31   : > { %1998 = vmatpush3.msra.mxu1 %v908_v10  ;;  %2023 = vmatprep.subr.mxu0 %v2194_v2 }
  0x32   : > { %2000 = vmatmul.mubr.msk.f32.vlgmr.msra.gmra.mxu1 %vm834_vm1, %v822_v11  ;;  %2013 = vmatprep.subr.mxu1 %v2194_v2 }
  0x33   : > { %2015 = vmatprep.mubr.msk.f32.mxu1 %vm2195_vm0, %v2194_v2  ;;  %2025 = vmatprep.mubr.msk.f32.mxu0 %vm2195_vm0, %v2194_v2 }
  0xea   : > { %v904_v13 = vpop.f32.mrf.mxu1 }
  0xeb   : > { %v905_v24 = vadd.f32 %v1910_v21, %v904_v13 }
  0xec   : > { %v1990_v15 = vpop.f32.mrf.mxu1 }
  0xed   : > { %v1922_v15 = vld [vmem:[%s2700_s11] ss:$0 sm:$0xff]  ;;  %s2132_s11 = scalar_lea.vmem %s1784_s8, 128 }
  0xee   : > { %p2133_p11 = scmp.ne.s32.totalorder %s1784_s8, %s2132_s11  ;;  %p2140_p1 = scmp.lt.s32.totalorder %s2138_s9, %s2132_s11 }
  0xf0   : > { %v1069_v57 = vpop.f32.mrf.mxu0  ;;  %p2134_p12 = pnand %p2133_p11, %p2369_p5  ;;  %p2141_p2 = por %p2140_p1, %p2139_p0 }
  0xf1   : > { %v1070_v58 = vadd.f32 %v1914_v56, %v1069_v57 }
  0xf2   : > { %v988_v17 = vpop.f32.mrf.mxu1  ;;  %v2012_v59 = vpop.f32.mrf.mxu0  ;;  %p2135_p13 = pneg %p2134_p12 }
  0xf3   : > { %v989_v19 = vadd.f32 %v1912_v16, %v988_v17  ;;  %v1083_v60 = vmul.f32 %v2445_v18, %v1070_v58  ;;  %v1185_v61 = vmul.f32 %v2452_v23, %v1070_v58 }
  0xf4   : > { %v2001_v20 = vpop.f32.mrf.mxu1  ;;  %p2142_p3 = pnand %p2141_p2, %p2135_p13 }
  0xf5   : > { %v1082_v22 = vmul.f32 %v2445_v18, %v989_v19  ;;  %v1184_v25 = vmul.f32 %v2452_v23, %v989_v19  ;;  %2024 = vmatpush3.msra.mxu0 %v1185_v61 }
  0xf6   : > { %2033 = vmatprep.subr.mxu0 %v2194_v2 }
  0xf7   : > { %2014 = vmatpush3.xpose.msk.msra.mxu1 %vm834_vm1, %v1082_v22 }
  0xf8   : > { %2018 = vmatprep.subr.mxu1 %v2194_v2 }
  0xfa   : > { %2016 = vmatmul.mubr.msk.f32.vlgmr.msra.gmra.mxu1 %vm834_vm1, %v905_v24 }
  0xfb   : > { %2019 = vmatpush3.xpose.msk.msra.mxu1 %vm834_vm1, %v1184_v25  ;;  %2020 = vmatprep.mubr.msk.f32.mxu1 %vm2195_vm0, %v2194_v2 }
  0xfc   : > { %2028 = vmatprep.subr.mxu1 %v2194_v2 }
  0xfe   : > { %2021 = vmatmul.mubr.msk.f32.vlgmr.msra.gmra.mxu1 %vm834_vm1, %v905_v24 }
  0xff   : > { %2030 = vmatprep.mubr.msk.f32.mxu1 %vm2195_vm0, %v2194_v2  ;;  %2029 = vmatpush3.msra.mxu1 %v1083_v60 }
 0x100   : > { %2044 = vmatprep.subr.mxu1 %v2194_v2 }
 0x1ba   : > { %v1156_v36 = vpop.f32.mrf.mxu1 }
 0x1bb   : > { %v1160_v37 = vmul.f32 0.25, %v1156_v36 }
 0x1bc   : > { %v2017_v38 = vpop.f32.mrf.mxu1 }
 0x1bd   : > { %v1167_v39 = vadd.f32 %v1165_v35, %v1160_v37  ;;  %v1924_v38 = vld [vmem:[%s2652_s12] ss:$0 sm:$0xff] }
 0x1be   : > { %v1255_v40 = vpop.f32.mrf.mxu1 }
 0x1bf   : > { %v1259_v41 = vmul.f32 0.25, %v1255_v40  ;;  %v1169_v42 = vsel %vm1168_vm7, %v1167_v39, -inf  ;;  %v1925_v40 = vld [vmem:[%s2653_s13] ss:$0 sm:$0xff] }
 0x1c0   : > { %1170 = vmax.xlane.f32.xlu0 %v1169_v42  ;;  %v2022_v43 = vpop.f32.mrf.mxu1 }
 0x1c1   : > { %v1260_v44 = vadd.f32 %v1259_v41, %v1165_v35  ;;  %v1620_v43 = vld [vmem:[%s2656_s16 + $0x10] sm:$0xff] }
 0x1c3   : > { %v1261_v45 = vsel %vm1168_vm7, %v1260_v44, -inf }
 0x1c4   : > { %1262 = vmax.xlane.f32.xlu0 %v1261_v45  ;;  %v1618_v45 = vld [vmem:[%s2656_s16] sm:$0xff] }
 0x249   : > { %v1171_v46 = vpop.xlane.xlu0 %1170 }
 0x24a   : > { %v1172_v47 = vsub.f32 %v1167_v39, %v1171_v46  ;;  %v1926_v46 = vld [vmem:[%s2655_s15] ss:$0 sm:$0xff] }
 0x24c   : > { %v1173_v48 = vmul.f32 1.442695, %v1172_v47 }
 0x24d   : > { %v1263_v49 = vpop.xlane.xlu0 %1262 }
 0x24e   : > { %2116 = vpow2.f32 %v1173_v48  ;;  %v1264_v50 = vsub.f32 %v1260_v44, %v1263_v49  ;;  %v1619_v44 = vld [vmem:[%s2656_s16 + $0x8] sm:$0xff] }
 0x250   : > { %v1265_v51 = vmul.f32 1.442695, %v1264_v50 }
 0x252   : > { %2118 = vpow2.f32 %v1265_v51  ;;  %v1928_v51 = vld [vmem:[%s2657_s17] ss:$0 sm:$0xff] }
 0x25b   : > { %v2117_v52 = vpop.eup %2116 }
 0x25c   : > { %v1175_v53 = vsel %vm1168_vm7, %v2117_v52, 0.0 }
 0x25d   : > { %1176 = vadd.xlane.f32.xlu1 %v1175_v53 }
 0x25f   : > { %v2119_v54 = vpop.eup %2118 }
 0x260   : > { %v1267_v55 = vsel %vm1168_vm7, %v2119_v54, 0.0 }
 0x261   : > { %1268 = vadd.xlane.f32.xlu1 %v1267_v55 }
 0x2e6   : > { %v1177_v62 = vpop.xlane.xlu1 %1176 }
 0x2e7   : > { %2120 = vrcp.f32 %v1177_v62 }
 0x2ea   : > { %v1269_v63 = vpop.xlane.xlu1 %1268 }
 0x2eb   : > { %2122 = vrcp.f32 %v1269_v63 }
 0x2f4   : > { %v2121_v0 = vpop.eup %2120 }
 0x2f5   : > { %v1179_v1 = vmul.f32 %v2121_v0, %v2117_v52 }
 0x2f7   : > { %2031 = vmatmul.mubr.msk.f32.vlgmr.msra.gmra.mxu1 %vm1168_vm7, %v1179_v1  ;;  %v1930_v1 = vld [vmem:[%s2658_s18] ss:$0 sm:$0xff] }
 0x2f8   : > { %v2123_v3 = vpop.eup %2122  ;;  %2052 = vmatprep.mubr.msk.f32.mxu1 %vm2195_vm0, %v2194_v2  ;;  %2045 = vmatpush3.msra.mxu1 %v1536_v26 }
 0x2f9   : > { %v1271_v4 = vmul.f32 %v2123_v3, %v2119_v54  ;;  %2046 = vmatprep.subr.mxu1 %v2194_v2 }
 0x2fb   : > { %2026 = vmatmul.mubr.msk.f32.vlgmr.msra.gmra.mxu0 %vm1168_vm7, %v1271_v4  ;;  %v1931_v4 = vld [vmem:[%s2659_s19] ss:$0 sm:$0xff] }
 0x2fc   : > { %2041 = vmatprep.mubr.msk.f32.mxu0 %vm2195_vm0, %v2194_v2  ;;  %2034 = vmatpush3.msra.mxu0 %v1421_v5 }
 0x2fd   : > { %2035 = vmatprep.subr.mxu0 %v2194_v2 }
 0x2fe   : > { %2036 = vmatpush3.msra.mxu0 %v1420_v7  ;;  %v1932_v7 = vld [vmem:[%s2662_s22] ss:$0 sm:$0xff] }
 0x2ff   : > { %2037 = vmatprep.subr.mxu0 %v2194_v2 }
 0x300   : > { %2038 = vmatpush3.msra.mxu0 %v1419_v8 }
 0x301   : > { %2039 = vmatprep.subr.mxu0 %v2194_v2 }
 0x302   : > { %2040 = vmatpush3.msra.mxu0 %v1418_v9 }
 0x303   : > { %2055 = vmatprep.subr.mxu0 %v2194_v2 }
 0x3b7   : > { %v1414_v10 = vpop.f32.mrf.mxu1 }
 0x3b9   : > { %v2032_v11 = vpop.f32.mrf.mxu1 }
 0x3bb   : > { %v1341_v12 = vpop.f32.mrf.mxu0 }
 0x3bc   : > { %v1415_v13 = vadd.f32 %v1414_v10, %v1341_v12 }
 0x3bd   : > { %v2027_v14 = vpop.f32.mrf.mxu0 }
 0x3be   : > { %2042 = vmatmul.mubr.msk.f32.vlgmr.msra.gmra.mxu0 %vm834_vm1, %v1415_v13 }
 0x3bf   : > { %2071 = vmatprep.mubr.msk.f32.mxu0 %vm2195_vm0, %v2194_v2  ;;  %2056 = vmatpush3.msra.mxu0 %v1625_v29 }
 0x3c0   : > { %2057 = vmatprep.subr.mxu0 %v2194_v2 }
 0x3c1   : > { %2058 = vmatpush3.msra.mxu0 %v1624_v30 }
 0x3c2   : > { %2059 = vmatprep.subr.mxu0 %v2194_v2 }
 0x3c3   : > { %2060 = vmatpush3.msra.mxu0 %v1623_v31 }
 0x3c4   : > { %2061 = vmatprep.subr.mxu0 %v2194_v2 }
 0x3c5   : > { %2062 = vmatpush3.msra.mxu0 %v1622_v32 }
 0x3c6   : > { %2063 = vmatprep.subr.mxu0 %v2194_v2 }
 0x3c7   : > { %2064 = vmatpush3.msra.mxu0 %v1621_v33 }
 0x3c8   : > { %2065 = vmatprep.subr.mxu0 %v2194_v2 }
 0x3c9   : > { %2066 = vmatpush3.msra.mxu0 %v1620_v43 }
 0x3ca   : > { %2067 = vmatprep.subr.mxu0 %v2194_v2 }
 0x3cb   : > { %2068 = vmatpush3.msra.mxu0 %v1619_v44 }
 0x3cc   : > { %2069 = vmatprep.subr.mxu0 %v2194_v2 }
 0x3cd   : > { %2070 = vmatpush3.msra.mxu0 %v1618_v45 }
 0x47e   : > { %v1498_v16 = vpop.f32.mrf.mxu0 }
 0x47f   : > { %v1499_v17 = vadd.f32 %v1922_v15, %v1498_v16 }
 0x480   : > { %v2043_v18 = vpop.f32.mrf.mxu0 }
 0x481   : > { %v1502_v19 = vadd.f32 %v1499_v17, %v2410_v6  ;;  %v1535_v6 = vld [vmem:[%s2654_s14 + $0x10] sm:$0xff] }
 0x482   : > { %2047 = vmatpush3.msra.mxu1 %v1535_v6 }
 0x483   : > { %v1505_v20 = vsel %vm834_vm1, %v1502_v19, 0.0  ;;  %2048 = vmatprep.subr.mxu1 %v2194_v2 }
 0x484   : > { %1506 = vadd.xlane.f32.xlu0 %v1505_v20  ;;  %2049 = vmatpush3.msra.mxu1 %v1534_v27 }
 0x485   : > { %2050 = vmatprep.subr.mxu1 %v2194_v2 }
 0x486   : > { %2051 = vmatpush3.msra.mxu1 %v1533_v28 }
 0x50d   : > { %v1507_v21 = vpop.xlane.xlu0 %1506 }
 0x50e   : > { %v1509_v22 = vmul.f32 0.03125, %v1507_v21 }
 0x510   : > { %v1510_v23 = vsub.f32 %v1502_v19, %v1509_v22 }
 0x512   : > { %v1511_v24 = vmul.f32 %v1510_v23, %v1510_v23 }
 0x514   : > { %v1512_v25 = vsel %vm834_vm1, %v1511_v24, 0.0 }
 0x515   : > { %1513 = vadd.xlane.f32.xlu1 %v1512_v25 }
 0x59e   : > { %v1514_v34 = vpop.xlane.xlu1 %1513 }
 0x59f   : > { %v1515_v35 = vmul.f32 0.03125, %v1514_v34 }
 0x5a1   : > { %v1516_v36 = vadd.f32 1e-12, %v1515_v35 }
 0x5a3   : > { %2124 = vrsqrt.f32 %v1516_v36 }
 0x5b0   : > { %v2125_v37 = vpop.eup %2124 }
 0x5b1   : > { %v1518_v39 = vmul.f32 %v2125_v37, %v1510_v23 }
 0x5b3   : > { %v1525_v41 = vmul.f32 %v1924_v38, %v1518_v39 }
 0x5b5   : > { %v1532_v42 = vadd.f32 %v1925_v40, %v1525_v41 }
 0x5b7   : > { %2053 = vmatmul.mubr.msk.f32.vlgmr.msra.gmra.mxu1 %vm834_vm1, %v1532_v42 }
 0x677   : > { %v1613_v47 = vpop.f32.mrf.mxu1 }
 0x678   : > { %v1614_v48 = vadd.f32 %v1926_v46, %v1613_v47 }
 0x679   : > { %v2054_v49 = vpop.f32.mrf.mxu1 }
 0x67a   : > { %v1617_v50 = vmax.f32 %v1614_v48, 0.0 }
 0x67c   : > { %2072 = vmatmul.mubr.msk.f32.vlgmr.msra.gmra.mxu0 %vm1633_vm8, %v1617_v50 }
 0x73c   : > { %v1703_v2 = vpop.f32.mrf.mxu0 }
 0x73d   : > { %v1704_v52 = vadd.f32 %v1928_v51, %v1703_v2 }
 0x73e   : > { %v2073_v53 = vpop.f32.mrf.mxu0 }
 0x73f   : > { %v1707_v54 = vadd.f32 %v1704_v52, %v1532_v42 }
 0x741   : > { %v1710_v55 = vsel %vm834_vm1, %v1707_v54, 0.0 }
 0x742   : > { %1711 = vadd.xlane.f32.xlu0 %v1710_v55 }
 0x7cb   : > { %v1712_v56 = vpop.xlane.xlu0 %1711 }
 0x7cc   : > { %v1713_v57 = vmul.f32 0.03125, %v1712_v56 }
 0x7ce   : > { %v1714_v58 = vsub.f32 %v1707_v54, %v1713_v57 }
 0x7d0   : > { %v1715_v59 = vmul.f32 %v1714_v58, %v1714_v58 }
 0x7d2   : > { %v1716_v60 = vsel %vm834_vm1, %v1715_v59, 0.0 }
 0x7d3   : > { %1717 = vadd.xlane.f32.xlu1 %v1716_v60 }
 0x85c   : > { %v1718_v61 = vpop.xlane.xlu1 %1717 }
 0x85d   : > { %v1719_v62 = vmul.f32 0.03125, %v1718_v61 }
 0x85f   : > { %v1720_v63 = vadd.f32 1e-12, %v1719_v62 }
 0x861   : > { %2126 = vrsqrt.f32 %v1720_v63 }
 0x86e   : > { %v2127_v0 = vpop.eup %2126 }
 0x86f   : > { %v1722_v3 = vmul.f32 %v2127_v0, %v1714_v58 }
 0x871   : > { %v1729_v5 = vmul.f32 %v1930_v1, %v1722_v3 }
 0x873   : > { %v1736_v8 = vadd.f32 %v1931_v4, %v1729_v5 }
 0x875   : > { %v1745_v9 = vmul.f32 %v1932_v7, %v1736_v8  ;;  %1737 = vst.msk [vmem:[%s795_s5] sm:$0xff] %vm834_vm1, %v1736_v8 }
 0x877   : > { %v1746_v10 = vsel %vm834_vm1, %v1745_v9, 0.0 }
 0x878   : > { %1747 = vadd.xlane.f32.xlu0 %v1746_v10 }
 0x879   : > { %2145 = shalt.err (!%p2142_p3)
}
 0x87a   : > { %s2146_s23 = scalar_lea.hbm %s1781_s29, 128  ;;  %s2150_s2 = scalar_lea.hbm %s2664_s24, 256 }
 0x87b   : > { %p2147_p4 = scmp.ne.s32.totalorder %s1781_s29, %s2146_s23  ;;  %p2151_p9 = scmp.lt.s32.totalorder %s1781_s29, %s2664_s24 }
 0x87c   : > { %p2152_p10 = scmp.lt.s32.totalorder %s2150_s2, %s2146_s23 }
 0x87d   : > { %p2148_p7 = pnand %p2147_p4, %p2369_p5 }
 0x87e   : > { %p2153_p11 = por %p2152_p10, %p2151_p9 }
 0x87f   : > { %p2149_p8 = pneg %p2148_p7 }
 0x881   : > { %p2154_p12 = pnand %p2153_p11, %p2149_p8 }
 0x883   : > { %2157 = shalt.err (!%p2154_p12)
}
 0x884   : > { %2074 = dma.vmem_to_hbm [thread:$0]  (%p2369_p5), %s1784_s8, 128, %s1781_s29, %s1766_s7   ;;  %v1933_v11 = vld [vmem:[#allocation2] ss:$0 sm:$0xff]  ;;  %vm1763_vm9 = vcmask 7168  }
 0x885   : > { %s820_s0 = scalar_lea.vmem %s2665_s25, %s2400_s1 }
 0x901   : > { %v1748_v12 = vpop.xlane.xlu0 %1747 }
 0x902   : > { %v1756_v13 = vadd.f32 %v1933_v11, %v1748_v12 }
 0x904   : > { %v1757_v14 = vsub.f32 0.0, %v1756_v13 }
 0x906   : > { %v1758_v15 = vmul.f32 1.442695, %v1757_v14 }
 0x908   : > { %2128 = vpow2.f32 %v1758_v15 }
 0x915   : > { %v2129_v16 = vpop.eup %2128 }
 0x916   : > { %v1760_v17 = vadd.f32 1.0, %v2129_v16 }
 0x918   : > { %2130 = vrcp.f32 %v1760_v17 }
 0x925   : > { %v2131_v18 = vpop.eup %2130 }
 0x926   : > { %1764 = vst.msk [vmem:[%s820_s0] sm:$0xff] %vm1763_vm9, %v2131_v18 }
 0x927 PF: > { %p2080_p5 = scmp.ge.s32.totalorder %s2192_s30, 2  ;;  %s1798_s27 = sand.u32 1, %s2180_s20  }
 0x928   : > { %s1799_s8 = scalar_lea.sflag [#allocation4], %s1798_s27 }
 0x929   : > { %p2077_p13 = pnand %p2080_p5, %p2373_p6 }
 0x92b   : > { %p2078_p0 = pneg %p2077_p13 }
 0x92d   : > { %2175 = dma.done.wait (%p2078_p0), %s1799_s8, 128  }
 0x92e   : > { %2177 = vsyncadd (%p2078_p0), %s1799_s8, 4294967168  ;;  %s2701_s30 = sld [smem:[#allocation7_spill]]  ;;  %s2704_s20 = smov %s2184_s21 }
 0x92f   : > { %s2702_s29 = sld [smem:[#allocation6_spill]] }
 0x930   : > { %s2703_s6 = sld [smem:[#allocation8_spill]] }
 0x934   : > { %p38_p1 = scmp.ge.s32.totalorder %s2701_s30, 4  }
 0x935   : > { %s2705_s21 = smov %s2702_s29 }
 0x936   :  { %40 = sbr.rel (!%p38_p1) target bundleno = 15 (0xf), region = 172 }
 0x93b   :  { %1811 = vsyncpa [#allocation4], 1 }
 0x93c   :  { %1813 = vsyncpa [#allocation4 + $0x1], 1 }

// kernel: forward_test.6
= control target key start
LH: loop header
LB: loop body
LE: loop exit
PB: predicated region body
PF: predicated region fallthrough
CT: control target
= control target key end

     0   :  { %s2661_s0 = inlined_call_operand.vmem [shape: f32[2,8,32], index: 0, kind: input, shape index: {}, may-alias: {0,1}]   ;;  %s2662_s1 = inlined_call_operand.vmem [shape: f32[2,8,32], index: 1, kind: input, shape index: {}, may-alias: {0,1}]   ;;  %s2663_s2 = inlined_call_operand.vmem [shape: f32[2,1,8], index: 2, kind: input, shape index: {}]   ;;  %s2664_s3 = inlined_call_operand.vmem [shape: f32[2,8,1], index: 3, kind: input, shape index: {}]   ;;  %s2665_s4 = inlined_call_operand.vmem [shape: f32[32,32], index: 4, kind: input, shape index: {}]   ;;  %s2666_s5 = inlined_call_operand.vmem [shape: f32[1,32], index: 5, kind: input, shape index: {}]   ;;  %s2667_s6 = inlined_call_operand.vmem [shape: f32[32,32], index: 6, kind: input, shape index: {}]   ;;  %s2668_s7 = inlined_call_operand.vmem [shape: f32[1,32], index: 7, kind: input, shape index: {}]   ;;  %s2669_s8 = inlined_call_operand.vmem [shape: f32[32,32], index: 8, kind: input, shape index: {}]   ;;  %s2670_s9 = inlined_call_operand.vmem [shape: f32[1,32], index: 9, kind: input, shape index: {}]   ;;  %s2671_s10 = inlined_call_operand.vmem [shape: f32[32,32], index: 10, kind: input, shape index: {}]   ;;  %s2672_s11 = inlined_call_operand.vmem [shape: f32[1,32], index: 11, kind: input, shape index: {}]   ;;  %s2673_s12 = inlined_call_operand.vmem [shape: f32[1,32], index: 12, kind: input, shape index: {}]   ;;  %s2674_s13 = inlined_call_operand.vmem [shape: f32[1,32], index: 13, kind: input, shape index: {}]   ;;  %s2675_s14 = inlined_call_operand.vmem [shape: f32[32,64], index: 14, kind: input, shape index: {}]   ;;  %s2676_s15 = inlined_call_operand.vmem [shape: f32[1,64], index: 15, kind: input, shape index: {}]   ;;  %s2677_s16 = inlined_call_operand.vmem [shape: f32[64,32], index: 16, kind: input, shape index: {}]   ;;  %s2678_s17 = inlined_call_operand.vmem [shape: f32[1,32], index: 17, kind: input, shape index: {}]   ;;  %s2679_s18 = inlined_call_operand.vmem [shape: f32[1,32], index: 18, kind: input, shape index: {}]   ;;  %s2680_s19 = inlined_call_operand.vmem [shape: f32[1,32], index: 19, kind: input, shape index: {}]   ;;  %s2681_s20 = inlined_call_operand.vmem [shape: f32[1,32], index: 20, kind: input, shape index: {}]   ;;  %s2682_s21 = inlined_call_operand.vmem [shape: f32[1,32], index: 21, kind: input, shape index: {}]   ;;  %s2683_s22 = inlined_call_operand.vmem [shape: f32[1,32], index: 22, kind: input, shape index: {}]   ;;  %s2684_s23 = inlined_call_operand.<no memory space> [shape: f32[1,1], index: 23, kind: input, shape index: {}]   ;;  %s2685_s24 = inlined_call_operand.vmem [shape: f32[2,8,32], index: 24, kind: output, shape index: {0}]   ;;  %s2686_s25 = inlined_call_operand.hbm [shape: f32[2,8,1], index: 25, kind: output, shape index: {1}]  }
   0x1   :  { %2695 = sst [smem:[#allocation9_spill]] %s2661_s0  ;;  %v31_v0 = vstv %s2684_s23 }
   0x2   :  { %2696 = sst [smem:[#allocation10_spill]] %s2662_s1  ;;  %32 = vst [vmem:[#allocation2] sm:$0x1] %v31_v0 }
   0x3   :  { %2697 = sst [smem:[#allocation11_spill]] %s2663_s2 }
   0x4   :  { %2698 = sst [smem:[#allocation12_spill]] %s2664_s3 }
   0x5   :  { %2699 = sst [smem:[#allocation13_spill]] %s2665_s4 }
   0x6   :  { %2700 = sst [smem:[#allocation14_spill]] %s2666_s5 }
   0x7   :  { %2701 = sst [smem:[#allocation15_spill]] %s2667_s6 }
   0x8   :  { %2702 = sst [smem:[#allocation16_spill]] %s2668_s7 }
   0x9   :  { %2703 = sst [smem:[#allocation17_spill]] %s2669_s8 }
   0xa   :  { %2704 = sst [smem:[#allocation18_spill]] %s2670_s9 }
   0xb   :  { %2705 = sst [smem:[#allocation19_spill]] %s2671_s10 }
   0xc   :  { %33 = vsyncpa [#allocation4], 0 }
   0xd   :  { %35 = vsyncpa [#allocation4 + $0x1], 0  ;;  %s2342_s20 = smov 0   ;;  %s2344_s21 = smov 0  }
   0xe   :  { %s2346_s6 = smov 0   ;;  %s2348_s30 = smov 0  }
   0xf LB: > { %2706 = sst [smem:[#allocation6_spill]] %s2198_s6  ;;  %s2363_s23 = sadd.s32 4294967295, %s2202_s30   ;;  %s2202_s30 = sphi %s2348_s30, %s2722_s30   ;;  %s2198_s6 = sphi %s2346_s6, %s2724_s6   ;;  %s2194_s21 = sphi %s2344_s21, %s2726_s21   ;;  %s2190_s20 = sphi %s2342_s20, %s2725_s20  }
  0x10   : > { %s1909_s7 = sadd.s32 4294967294, %s2202_s30   ;;  %s2367_s3 = sadd.s32 1, %s2202_s30  }
  0x11   : > { %2707 = sst [smem:[#allocation7_spill]] %s2367_s3  ;;  %s598_s26 = sadd.s32 1, %s2198_s6 }
  0x12   : > { %s595_s1 = ssub.s32 %s2202_s30, %s2367_s3  ;;  %p608_p0 = scmp.ne.s32.totalorder %s2198_s6, %s2194_s21 }
  0x13   : > { %p596_p1 = scmp.eq.s32.totalorder %s595_s1, 0  ;;  %p609_p2 = scmp.eq.s32.totalorder %s2363_s23, 1 }
  0x14   : > { %p614_p3 = scmp.ne.s32.totalorder %s2194_s21, %s2190_s20  ;;  %p615_p4 = scmp.eq.s32.totalorder %s1909_s7, 1 }
  0x15   : > { %s2378_s8 = scalar_select %p596_p1, %s2198_s6, %s598_s26  }
  0x16   : > { %p2380_p5 = por %p609_p2, %p608_p0  ;;  %p2384_p6 = por %p615_p4, %p614_p3 }
  0x17   : > { %2708 = sst [smem:[#allocation8_spill]] %s2378_s8  ;;  %p1912_p7 = scmp.ge.s32.totalorder %s2202_s30, 1 }
  0x18   : > { %p720_p8 = scmp.lt.s32.totalorder %s2202_s30, 3 }
  0x1a   : > { %p721_p9 = pnand %p1912_p7, %p720_p8 }
  0x1b   : > { %s2711_s5 = sld [smem:[#allocation13_spill]] (!%p721_p9)  ;;  %p802_p10 = scmp.lt.s32.totalorder (!%p721_p9), %s2363_s23, 1 }
  0x1c   : > { %724 = sbr.rel (%p721_p9) target bundleno = 2357 (0x935), region = 116  ;;  %s2712_s8 = sld [smem:[#allocation9_spill]] (!%p721_p9) }
  0x1d   : > { %s2713_s3 = sld [smem:[#allocation15_spill]] (!%p721_p9) }
  0x1e   : > { %s2714_s7 = sld [smem:[#allocation10_spill]] (!%p721_p9) }
  0x1f   : > { %s2716_s29 = sld [smem:[#allocation14_spill]] (!%p721_p9) }
  0x20   : > { %s2717_s28 = sld [smem:[#allocation17_spill]] (!%p721_p9) }
  0x21   : > { %v826_v1 = vld [vmem:[%s2711_s5 + $0x18] sm:$0xff]  ;;  %v2204_v2 = vmov 0.0   ;;  %v825_v3 = vld [vmem:[%s2711_s5 + $0x10] sm:$0xff]  ;;  %vm2205_vm0 = vmmov 0   ;;  %s2401_s2 = scalar_select %p802_p10, %s2363_s23, 1  ;;  %v824_v4 = vld [vmem:[%s2711_s5 + $0x8] sm:$0xff]  ;;  %v1076_v12 = vlaneseq }
  0x22   : > { %1988 = vmatprep.subr.mxu1 %v2204_v2  ;;  %1996 = vmatprep.mubr.msk.f32.mxu1 %vm2205_vm0, %v2204_v2  ;;  %v823_v5 = vld [vmem:[%s2711_s5] sm:$0xff]  ;;  %vm834_vm1 = vcmask 261120   ;;  %s2718_s9 = sld [smem:[#allocation11_spill]]  ;;  %v2206_v33 = vmov -1e+09   ;;  %vm1168_vm7 = vcmask 64512  }
  0x23   : > { %1989 = vmatpush3.msra.mxu1 %v826_v1  ;;  %2010 = vmatprep.subr.mxu0 %v2204_v2  ;;  %s2411_s1 = sshll.u32 %s2401_s2, 3  ;;  %v911_v7 = vld [vmem:[%s2713_s3 + $0x18] sm:$0xff]  ;;  %v910_v8 = vld [vmem:[%s2713_s3 + $0x10] sm:$0xff]  ;;  %v909_v9 = vld [vmem:[%s2713_s3 + $0x8] sm:$0xff]  ;;  %v1077_v14 = vand.u32 127, %v1076_v12  ;;  %v1163_v31 = vshrl.u32 %v1076_v12, 7 }
  0x24   : > { %1990 = vmatprep.subr.mxu1 %v2204_v2  ;;  %2018 = vmatprep.mubr.msk.f32.mxu0 %vm2205_vm0, %v2204_v2  ;;  %s805_s6 = scalar_lea.vmem %s2712_s8, %s2411_s1  ;;  %s809_s26 = scalar_lea.vmem %s2714_s7, %s2411_s1  ;;  %v908_v10 = vld [vmem:[%s2713_s3] sm:$0xff]  ;;  %vm1633_vm8 = vcmask 523264   ;;  %vm1770_vm9 = vcmask 7168  }
  0x25   : > { %1991 = vmatpush3.msra.mxu1 %v825_v3  ;;  %v2421_v6 = vld [vmem:[%s805_s6] sm:$0xff]  ;;  %vm1079_vm2 = vcmp.lt.s32.totalorder %v1077_v14, 16  ;;  %s2715_s6 = sld [smem:[#allocation16_spill]]  ;;  %vm1180_vm3 = vcmp.ge.s32.totalorder %v1077_v14, 16  ;;  %vm1181_vm4 = vcmp.lt.s32.totalorder %v1077_v14, 32  ;;  %v1164_v32 = vsub.s32 0, %v1163_v31 }
  0x26   : > { %1992 = vmatprep.subr.mxu1 %v2204_v2  ;;  %v822_v11 = vld [vmem:[%s809_s26] sm:$0xff]  ;;  %v2456_v18 = vsel %vm1079_vm2, 1.0, %v2204_v2  ;;  %vm1182_vm5 = vmand %vm1180_vm3, %vm1181_vm4  ;;  %v995_v26 = vld [vmem:[%s2717_s28 + $0x18] sm:$0xff]  ;;  %s2719_s8 = sld [smem:[#allocation18_spill]]  ;;  %s1943_s7 = sshll.u32 %s2363_s23, 7 }
  0x27   : > { %1993 = vmatpush3.msra.mxu1 %v824_v4  ;;  %v1918_v21 = vld [vmem:[%s2716_s29] ss:$0 sm:$0xff]  ;;  %v2463_v23 = vsel %vm1182_vm5, 1.0, %v2204_v2  ;;  %v994_v27 = vld [vmem:[%s2717_s28 + $0x10] sm:$0xff]  ;;  %2011 = vmatpush3.msra.mxu0 %v995_v26  ;;  %v993_v28 = vld [vmem:[%s2717_s28 + $0x8] sm:$0xff]  ;;  %s2720_s10 = sld [smem:[#allocation19_spill]] }
  0x28   : > { %1994 = vmatprep.subr.mxu1 %v2204_v2  ;;  %2012 = vmatprep.subr.mxu0 %v2204_v2  ;;  %v992_v29 = vld [vmem:[%s2717_s28] sm:$0xff]  ;;  %s812_s5 = scalar_lea.vmem %s2718_s9, %s2401_s2  ;;  %v1536_v26 = vld [vmem:[%s2675_s14 + $0x18] sm:$0xff]  ;;  %v1623_v31 = vld [vmem:[%s2677_s16 + $0x28] sm:$0xff]  ;;  %s2208_s3 = smov [#allocation3]  }
  0x29   : > { %1995 = vmatpush3.msra.mxu1 %v823_v5  ;;  %2013 = vmatpush3.msra.mxu0 %v994_v27  ;;  %v1073_v30 = vld [vmem:[%s812_s5] sm:$0x1]  ;;  %v1534_v27 = vld [vmem:[%s2675_s14 + $0x8] sm:$0xff] }
  0x2a   : > { %1997 = vmatmul.mubr.msk.f32.vlgmr.msra.gmra.mxu1 %vm834_vm1, %v2421_v6  ;;  %1999 = vmatprep.subr.mxu1 %v2204_v2  ;;  %vm1074_vm6 = vcmp.gt.f32.partialorder %v1073_v30, 0.0  ;;  %v1624_v30 = vld [vmem:[%s2677_s16 + $0x30] sm:$0xff] }
  0x2b   : > { %2000 = vmatpush3.msra.mxu1 %v911_v7  ;;  %2007 = vmatprep.mubr.msk.f32.mxu1 %vm2205_vm0, %v2204_v2  ;;  %v1920_v16 = vld [vmem:[%s2715_s6] ss:$0 sm:$0xff]  ;;  %v1075_v34 = vsel %vm1074_vm6, 0.0, %v2206_v33  ;;  %v1621_v33 = vld [vmem:[%s2677_s16 + $0x18] sm:$0xff]  ;;  %s820_s6 = scalar_lea.vmem %s2685_s24, %s2411_s1 }
  0x2c   : > { %2001 = vmatprep.subr.mxu1 %v2204_v2  ;;  %2014 = vmatprep.subr.mxu0 %v2204_v2  ;;  %v1165_v35 = vrot.slane %v1075_v34, %v1164_v32  ;;  %v1922_v56 = vld [vmem:[%s2719_s8] ss:$0 sm:$0xff]  ;;  %s2721_s8 = sld [smem:[#allocation12_spill]] }
  0x2d   : > { %2002 = vmatpush3.msra.mxu1 %v910_v8  ;;  %2015 = vmatpush3.msra.mxu0 %v993_v28  ;;  %v1421_v5 = vld [vmem:[%s2720_s10 + $0x18] sm:$0xff]  ;;  %v1420_v7 = vld [vmem:[%s2720_s10 + $0x10] sm:$0xff]  ;;  %v1419_v8 = vld [vmem:[%s2720_s10 + $0x8] sm:$0xff] }
  0x2e   : > { %2003 = vmatprep.subr.mxu1 %v2204_v2  ;;  %2016 = vmatprep.subr.mxu0 %v2204_v2  ;;  %v1533_v28 = vld [vmem:[%s2675_s14] sm:$0xff] }
  0x2f   : > { %2004 = vmatpush3.msra.mxu1 %v909_v9  ;;  %2017 = vmatpush3.msra.mxu0 %v992_v29  ;;  %v1418_v9 = vld [vmem:[%s2720_s10] sm:$0xff]  ;;  %v1625_v29 = vld [vmem:[%s2677_s16 + $0x38] sm:$0xff]  ;;  %s2146_s10 = sshll.u32 %s2208_s3, 4  ;;  %s2147_s10 = int_to_ptr.vmem [resolvable:$false] %s2146_s10 }
  0x30   : > { %2005 = vmatprep.subr.mxu1 %v2204_v2  ;;  %2019 = vmatmul.mubr.msk.f32.vlgmr.msra.gmra.mxu0 %vm834_vm1, %v822_v11  ;;  %v1622_v32 = vld [vmem:[%s2677_s16 + $0x20] sm:$0xff]  ;;  %s2148_s23 = scalar_lea.vmem %s2147_s10, 256 }
  0x31   : > { %2006 = vmatpush3.msra.mxu1 %v908_v10  ;;  %2031 = vmatprep.subr.mxu0 %v2204_v2 }
  0x32   : > { %2008 = vmatmul.mubr.msk.f32.vlgmr.msra.gmra.mxu1 %vm834_vm1, %v822_v11  ;;  %2021 = vmatprep.subr.mxu1 %v2204_v2  ;;  %s816_s0 = scalar_lea.vmem %s2721_s8, %s2411_s1  ;;  %s799_s1 = sand.u32 1, %s2194_s21  }
  0x33   : > { %2023 = vmatprep.mubr.msk.f32.mxu1 %vm2205_vm0, %v2204_v2  ;;  %2033 = vmatprep.mubr.msk.f32.mxu0 %vm2205_vm0, %v2204_v2  ;;  %s1913_s29 = sshll.u32 %s799_s1, 3  ;;  %s1777_s8 = scalar_lea.sflag [#allocation4], %s799_s1 }
  0x34   : > { %s801_s26 = scalar_lea.vmem [#allocation3], %s1913_s29 }
  0x35   : > { %s1793_s9 = sshll.u32 %s801_s26, 4  ;;  %s1794_s9 = int_to_ptr.vmem [resolvable:$true] %s1793_s9 }
  0x36   : > { %p2149_p0 = scmp.lt.s32.totalorder %s1794_s9, %s2147_s10 }
  0xea   : > { %v904_v13 = vpop.f32.mrf.mxu1 }
  0xeb   : > { %v905_v24 = vadd.f32 %v1918_v21, %v904_v13 }
  0xec   : > { %v1998_v15 = vpop.f32.mrf.mxu1 }
  0xed   : > { %v1930_v15 = vld [vmem:[%s2672_s11] ss:$0 sm:$0xff] }
  0xf0   : > { %v1069_v57 = vpop.f32.mrf.mxu0 }
  0xf1   : > { %v1070_v58 = vadd.f32 %v1922_v56, %v1069_v57  ;;  %v2207_v56 = vmov 0   ;;  %v1737_v57 = vld [vmem:[%s816_s0] sm:$0xff]  ;;  %s2142_s0 = scalar_lea.vmem %s1794_s9, 128 }
  0xf2   : > { %v988_v17 = vpop.f32.mrf.mxu1  ;;  %v2020_v59 = vpop.f32.mrf.mxu0  ;;  %2125 = vset.pattern.permute.xlu0 %v2207_v56  ;;  %p2143_p11 = scmp.ne.s32.totalorder %s1794_s9, %s2142_s0  ;;  %p2150_p1 = scmp.lt.s32.totalorder %s2148_s23, %s2142_s0 }
  0xf3   : > { %v989_v19 = vadd.f32 %v1920_v16, %v988_v17  ;;  %v1083_v60 = vmul.f32 %v2456_v18, %v1070_v58  ;;  %v1185_v61 = vmul.f32 %v2463_v23, %v1070_v58 }
  0xf4   : > { %v2009_v20 = vpop.f32.mrf.mxu1  ;;  %p2144_p12 = pnand %p2143_p11, %p2380_p5  ;;  %p2151_p2 = por %p2150_p1, %p2149_p0 }
  0xf5   : > { %v1082_v22 = vmul.f32 %v2456_v18, %v989_v19  ;;  %v1184_v25 = vmul.f32 %v2463_v23, %v989_v19  ;;  %2032 = vmatpush3.msra.mxu0 %v1185_v61 }
  0xf6   : > { %2041 = vmatprep.subr.mxu0 %v2204_v2  ;;  %p2145_p13 = pneg %p2144_p12 }
  0xf7   : > { %2022 = vmatpush3.xpose.msk.msra.mxu1 %vm834_vm1, %v1082_v22 }
  0xf8   : > { %2026 = vmatprep.subr.mxu1 %v2204_v2  ;;  %p2152_p3 = pnand %p2151_p2, %p2145_p13 }
  0xfa   : > { %2024 = vmatmul.mubr.msk.f32.vlgmr.msra.gmra.mxu1 %vm834_vm1, %v905_v24 }
  0xfb   : > { %2027 = vmatpush3.xpose.msk.msra.mxu1 %vm834_vm1, %v1184_v25  ;;  %2028 = vmatprep.mubr.msk.f32.mxu1 %vm2205_vm0, %v2204_v2 }
  0xfc   : > { %2036 = vmatprep.subr.mxu1 %v2204_v2 }
  0xfe   : > { %2029 = vmatmul.mubr.msk.f32.vlgmr.msra.gmra.mxu1 %vm834_vm1, %v905_v24 }
  0xff   : > { %2038 = vmatprep.mubr.msk.f32.mxu1 %vm2205_vm0, %v2204_v2  ;;  %2037 = vmatpush3.msra.mxu1 %v1083_v60 }
 0x100   : > { %2052 = vmatprep.subr.mxu1 %v2204_v2 }
 0x1ba   : > { %v1156_v36 = vpop.f32.mrf.mxu1 }
 0x1bb   : > { %v1160_v37 = vmul.f32 0.25, %v1156_v36 }
 0x1bc   : > { %v2025_v38 = vpop.f32.mrf.mxu1 }
 0x1bd   : > { %v1167_v39 = vadd.f32 %v1165_v35, %v1160_v37  ;;  %v1932_v38 = vld [vmem:[%s2673_s12] ss:$0 sm:$0xff] }
 0x1be   : > { %v1255_v40 = vpop.f32.mrf.mxu1 }
 0x1bf   : > { %v1259_v41 = vmul.f32 0.25, %v1255_v40  ;;  %v1169_v42 = vsel %vm1168_vm7, %v1167_v39, -inf  ;;  %v1933_v40 = vld [vmem:[%s2674_s13] ss:$0 sm:$0xff] }
 0x1c0   : > { %1170 = vmax.xlane.f32.xlu0 %v1169_v42  ;;  %v2030_v43 = vpop.f32.mrf.mxu1 }
 0x1c1   : > { %v1260_v44 = vadd.f32 %v1259_v41, %v1165_v35  ;;  %v1620_v43 = vld [vmem:[%s2677_s16 + $0x10] sm:$0xff] }
 0x1c3   : > { %v1261_v45 = vsel %vm1168_vm7, %v1260_v44, -inf }
 0x1c4   : > { %1262 = vmax.xlane.f32.xlu0 %v1261_v45  ;;  %v1618_v45 = vld [vmem:[%s2677_s16] sm:$0xff] }
 0x249   : > { %v1171_v46 = vpop.xlane.xlu0 %1170 }
 0x24a   : > { %v1172_v47 = vsub.f32 %v1167_v39, %v1171_v46  ;;  %v1934_v46 = vld [vmem:[%s2676_s15] ss:$0 sm:$0xff] }
 0x24c   : > { %v1173_v48 = vmul.f32 1.442695, %v1172_v47 }
 0x24d   : > { %v1263_v49 = vpop.xlane.xlu0 %1262 }
 0x24e   : > { %2126 = vpow2.f32 %v1173_v48  ;;  %v1264_v50 = vsub.f32 %v1260_v44, %v1263_v49  ;;  %v1619_v44 = vld [vmem:[%s2677_s16 + $0x8] sm:$0xff] }
 0x250   : > { %v1265_v51 = vmul.f32 1.442695, %v1264_v50 }
 0x252   : > { %2128 = vpow2.f32 %v1265_v51 }
 0x25b   : > { %v2127_v52 = vpop.eup %2126 }
 0x25c   : > { %v1175_v53 = vsel %vm1168_vm7, %v2127_v52, 0.0 }
 0x25d   : > { %1176 = vadd.xlane.f32.xlu1 %v1175_v53 }
 0x25f   : > { %v2129_v54 = vpop.eup %2128 }
 0x260   : > { %v1267_v55 = vsel %vm1168_vm7, %v2129_v54, 0.0 }
 0x261   : > { %1268 = vadd.xlane.f32.xlu1 %v1267_v55 }
 0x2e6   : > { %v1177_v62 = vpop.xlane.xlu1 %1176 }
 0x2e7   : > { %2130 = vrcp.f32 %v1177_v62 }
 0x2ea   : > { %v1269_v63 = vpop.xlane.xlu1 %1268 }
 0x2eb   : > { %2132 = vrcp.f32 %v1269_v63 }
 0x2f4   : > { %v2131_v0 = vpop.eup %2130 }
 0x2f5   : > { %v1179_v1 = vmul.f32 %v2131_v0, %v2127_v52 }
 0x2f7   : > { %2039 = vmatmul.mubr.msk.f32.vlgmr.msra.gmra.mxu1 %vm1168_vm7, %v1179_v1 }
 0x2f8   : > { %v2133_v3 = vpop.eup %2132  ;;  %2060 = vmatprep.mubr.msk.f32.mxu1 %vm2205_vm0, %v2204_v2  ;;  %2053 = vmatpush3.msra.mxu1 %v1536_v26 }
 0x2f9   : > { %v1271_v4 = vmul.f32 %v2133_v3, %v2129_v54  ;;  %2054 = vmatprep.subr.mxu1 %v2204_v2 }
 0x2fb   : > { %2034 = vmatmul.mubr.msk.f32.vlgmr.msra.gmra.mxu0 %vm1168_vm7, %v1271_v4  ;;  %v1938_v4 = vld [vmem:[%s2679_s18] ss:$0 sm:$0xff] }
 0x2fc   : > { %2049 = vmatprep.mubr.msk.f32.mxu0 %vm2205_vm0, %v2204_v2  ;;  %2042 = vmatpush3.msra.mxu0 %v1421_v5 }
 0x2fd   : > { %2043 = vmatprep.subr.mxu0 %v2204_v2 }
 0x2fe   : > { %2044 = vmatpush3.msra.mxu0 %v1420_v7  ;;  %v1939_v7 = vld [vmem:[%s2680_s19] ss:$0 sm:$0xff] }
 0x2ff   : > { %2045 = vmatprep.subr.mxu0 %v2204_v2 }
 0x300   : > { %2046 = vmatpush3.msra.mxu0 %v1419_v8 }
 0x301   : > { %2047 = vmatprep.subr.mxu0 %v2204_v2 }
 0x302   : > { %2048 = vmatpush3.msra.mxu0 %v1418_v9 }
 0x303   : > { %2063 = vmatprep.subr.mxu0 %v2204_v2 }
 0x3b7   : > { %v1414_v10 = vpop.f32.mrf.mxu1 }
 0x3b9   : > { %v2040_v11 = vpop.f32.mrf.mxu1 }
 0x3ba   : > { %v1940_v11 = vld [vmem:[%s2683_s22] ss:$0 sm:$0xff] }
 0x3bb   : > { %v1341_v12 = vpop.f32.mrf.mxu0 }
 0x3bc   : > { %v1415_v13 = vadd.f32 %v1414_v10, %v1341_v12 }
 0x3bd   : > { %v2035_v14 = vpop.f32.mrf.mxu0 }
 0x3be   : > { %2050 = vmatmul.mubr.msk.f32.vlgmr.msra.gmra.mxu0 %vm834_vm1, %v1415_v13 }
 0x3bf   : > { %2079 = vmatprep.mubr.msk.f32.mxu0 %vm2205_vm0, %v2204_v2  ;;  %2064 = vmatpush3.msra.mxu0 %v1625_v29 }
 0x3c0   : > { %2065 = vmatprep.subr.mxu0 %v2204_v2 }
 0x3c1   : > { %2066 = vmatpush3.msra.mxu0 %v1624_v30 }
 0x3c2   : > { %2067 = vmatprep.subr.mxu0 %v2204_v2 }
 0x3c3   : > { %2068 = vmatpush3.msra.mxu0 %v1623_v31 }
 0x3c4   : > { %2069 = vmatprep.subr.mxu0 %v2204_v2 }
 0x3c5   : > { %2070 = vmatpush3.msra.mxu0 %v1622_v32 }
 0x3c6   : > { %2071 = vmatprep.subr.mxu0 %v2204_v2 }
 0x3c7   : > { %2072 = vmatpush3.msra.mxu0 %v1621_v33 }
 0x3c8   : > { %2073 = vmatprep.subr.mxu0 %v2204_v2 }
 0x3c9   : > { %2074 = vmatpush3.msra.mxu0 %v1620_v43 }
 0x3ca   : > { %2075 = vmatprep.subr.mxu0 %v2204_v2 }
 0x3cb   : > { %2076 = vmatpush3.msra.mxu0 %v1619_v44 }
 0x3cc   : > { %2077 = vmatprep.subr.mxu0 %v2204_v2 }
 0x3cd   : > { %2078 = vmatpush3.msra.mxu0 %v1618_v45 }
 0x47e   : > { %v1498_v16 = vpop.f32.mrf.mxu0 }
 0x47f   : > { %v1499_v17 = vadd.f32 %v1930_v15, %v1498_v16  ;;  %v1941_v15 = vld [vmem:[#allocation2] ss:$0 sm:$0xff] }
 0x480   : > { %v2051_v18 = vpop.f32.mrf.mxu0 }
 0x481   : > { %v1502_v19 = vadd.f32 %v1499_v17, %v2421_v6  ;;  %v1535_v6 = vld [vmem:[%s2675_s14 + $0x10] sm:$0xff] }
 0x482   : > { %2055 = vmatpush3.msra.mxu1 %v1535_v6 }
 0x483   : > { %v1505_v20 = vsel %vm834_vm1, %v1502_v19, 0.0  ;;  %2056 = vmatprep.subr.mxu1 %v2204_v2 }
 0x484   : > { %1506 = vadd.xlane.f32.xlu0 %v1505_v20  ;;  %2057 = vmatpush3.msra.mxu1 %v1534_v27 }
 0x485   : > { %2058 = vmatprep.subr.mxu1 %v2204_v2  ;;  %v1936_v2 = vld [vmem:[%s2678_s17] ss:$0 sm:$0xff] }
 0x486   : > { %2059 = vmatpush3.msra.mxu1 %v1533_v28 }
 0x50d   : > { %v1507_v21 = vpop.xlane.xlu0 %1506 }
 0x50e   : > { %v1509_v22 = vmul.f32 0.03125, %v1507_v21 }
 0x510   : > { %v1510_v23 = vsub.f32 %v1502_v19, %v1509_v22 }
 0x512   : > { %v1511_v24 = vmul.f32 %v1510_v23, %v1510_v23 }
 0x514   : > { %v1512_v25 = vsel %vm834_vm1, %v1511_v24, 0.0 }
 0x515   : > { %1513 = vadd.xlane.f32.xlu1 %v1512_v25 }
 0x59e   : > { %v1514_v34 = vpop.xlane.xlu1 %1513 }
 0x59f   : > { %v1515_v35 = vmul.f32 0.03125, %v1514_v34 }
 0x5a1   : > { %v1516_v36 = vadd.f32 1e-12, %v1515_v35 }
 0x5a3   : > { %2134 = vrsqrt.f32 %v1516_v36 }
 0x5b0   : > { %v2135_v37 = vpop.eup %2134 }
 0x5b1   : > { %v1518_v39 = vmul.f32 %v2135_v37, %v1510_v23 }
 0x5b3   : > { %v1525_v41 = vmul.f32 %v1932_v38, %v1518_v39 }
 0x5b5   : > { %v1532_v42 = vadd.f32 %v1933_v40, %v1525_v41 }
 0x5b7   : > { %2061 = vmatmul.mubr.msk.f32.vlgmr.msra.gmra.mxu1 %vm834_vm1, %v1532_v42 }
 0x677   : > { %v1613_v47 = vpop.f32.mrf.mxu1 }
 0x678   : > { %v1614_v48 = vadd.f32 %v1934_v46, %v1613_v47 }
 0x679   : > { %v2062_v49 = vpop.f32.mrf.mxu1 }
 0x67a   : > { %v1617_v50 = vmax.f32 %v1614_v48, 0.0 }
 0x67c   : > { %2080 = vmatmul.mubr.msk.f32.vlgmr.msra.gmra.mxu0 %vm1633_vm8, %v1617_v50 }
 0x73c   : > { %v1703_v51 = vpop.f32.mrf.mxu0 }
 0x73d   : > { %v1704_v52 = vadd.f32 %v1936_v2, %v1703_v51 }
 0x73e   : > { %v2081_v53 = vpop.f32.mrf.mxu0 }
 0x73f   : > { %v1707_v54 = vadd.f32 %v1704_v52, %v1532_v42 }
 0x741   : > { %v1710_v55 = vsel %vm834_vm1, %v1707_v54, 0.0 }
 0x742   : > { %1711 = vadd.xlane.f32.xlu0 %v1710_v55 }
 0x758   : > { %1740 = vperm.xlu0 %2125, %v1737_v57  }
 0x7cb   : > { %v1712_v58 = vpop.xlane.xlu0 %1711 }
 0x7cc   : > { %v1713_v59 = vmul.f32 0.03125, %v1712_v58 }
 0x7ce   : > { %v1714_v60 = vsub.f32 %v1707_v54, %v1713_v59 }
 0x7d0   : > { %v1715_v61 = vmul.f32 %v1714_v60, %v1714_v60 }
 0x7d2   : > { %v1716_v62 = vsel %vm834_vm1, %v1715_v61, 0.0 }
 0x7d3   : > { %1717 = vadd.xlane.f32.xlu1 %v1716_v62  ;;  %v1741_v9 = vpop.permute.xlu0 %1740 }
 0x85c   : > { %v1718_v63 = vpop.xlane.xlu1 %1717 }
 0x85d   : > { %v1719_v0 = vmul.f32 0.03125, %v1718_v63 }
 0x85f   : > { %v1720_v1 = vadd.f32 1e-12, %v1719_v0 }
 0x861   : > { %2136 = vrsqrt.f32 %v1720_v1 }
 0x86e   : > { %v2137_v3 = vpop.eup %2136 }
 0x86f   : > { %v1722_v5 = vmul.f32 %v2137_v3, %v1714_v60 }
 0x871   : > { %v1729_v8 = vmul.f32 %v1938_v4, %v1722_v5 }
 0x873   : > { %v1736_v10 = vadd.f32 %v1939_v7, %v1729_v8 }
 0x875   : > { %v1743_v12 = vmul.f32 %v1741_v9, %v1736_v10 }
 0x877   : > { %1744 = vst.msk [vmem:[%s820_s6] sm:$0xff] %vm834_vm1, %v1743_v12  ;;  %v1752_v13 = vmul.f32 %v1940_v11, %v1743_v12  ;;  %s2626_s6 = scalar_lea.hbm %s2686_s25, %s1943_s7 }
 0x879   : > { %v1753_v14 = vsel %vm834_vm1, %v1752_v13, 0.0 }
 0x87a   : > { %1754 = vadd.xlane.f32.xlu1 %v1753_v14 }
 0x903   : > { %v1755_v16 = vpop.xlane.xlu1 %1754 }
 0x904   : > { %v1763_v17 = vadd.f32 %v1941_v15, %v1755_v16 }
 0x906   : > { %v1764_v18 = vsub.f32 0.0, %v1763_v17 }
 0x908   : > { %v1765_v19 = vmul.f32 1.442695, %v1764_v18 }
 0x90a   : > { %2138 = vpow2.f32 %v1765_v19 }
 0x917   : > { %v2139_v20 = vpop.eup %2138 }
 0x918   : > { %v1767_v21 = vadd.f32 1.0, %v2139_v20 }
 0x91a   : > { %2140 = vrcp.f32 %v1767_v21 }
 0x927   : > { %v2141_v22 = vpop.eup %2140 }
 0x928   : > { %1771 = vst.msk [vmem:[%s801_s26] sm:$0xff] %vm1770_vm9, %v2141_v22 }
 0x929   : > { %2155 = shalt.err (!%p2152_p3)
}
 0x92a   : > { %s2156_s29 = scalar_lea.hbm %s2626_s6, 128  ;;  %s2160_s3 = scalar_lea.hbm %s2686_s25, 256 }
 0x92b   : > { %p2157_p4 = scmp.ne.s32.totalorder %s2626_s6, %s2156_s29  ;;  %p2161_p9 = scmp.lt.s32.totalorder %s2626_s6, %s2686_s25 }
 0x92c   : > { %p2162_p10 = scmp.lt.s32.totalorder %s2160_s3, %s2156_s29 }
 0x92d   : > { %p2158_p7 = pnand %p2157_p4, %p2380_p5 }
 0x92e   : > { %p2163_p11 = por %p2162_p10, %p2161_p9 }
 0x92f   : > { %p2159_p8 = pneg %p2158_p7 }
 0x931   : > { %p2164_p12 = pnand %p2163_p11, %p2159_p8 }
 0x933   : > { %2167 = shalt.err (!%p2164_p12)
}
 0x934   : > { %2082 = dma.vmem_to_hbm [thread:$0]  (%p2380_p5), %s1794_s9, 128, %s2626_s6, %s1777_s8  }
 0x935 PF: > { %p2088_p13 = scmp.ge.s32.totalorder %s2202_s30, 2  ;;  %s1812_s10 = sand.u32 1, %s2190_s20  }
 0x936   : > { %s1813_s2 = scalar_lea.sflag [#allocation4], %s1812_s10 }
 0x937   : > { %p2085_p0 = pnand %p2088_p13, %p2384_p6 }
 0x939   : > { %p2086_p1 = pneg %p2085_p0 }
 0x93b   : > { %2185 = dma.done.wait (%p2086_p1), %s1813_s2, 128  }
 0x93c   : > { %2187 = vsyncadd (%p2086_p1), %s1813_s2, 4294967168  ;;  %s2722_s30 = sld [smem:[#allocation7_spill]]  ;;  %s2725_s20 = smov %s2194_s21 }
 0x93d   : > { %s2723_s0 = sld [smem:[#allocation6_spill]] }
 0x93e   : > { %s2724_s6 = sld [smem:[#allocation8_spill]] }
 0x942   : > { %p38_p2 = scmp.ge.s32.totalorder %s2722_s30, 4  }
 0x943   : > { %s2726_s21 = smov %s2723_s0 }
 0x944   :  { %40 = sbr.rel (!%p38_p2) target bundleno = 15 (0xf), region = 172 }
 0x949   :  { %1818 = vsyncpa [#allocation4], 1 }
 0x94a   :  { %1820 = vsyncpa [#allocation4 + $0x1], 1 }

</bundles_post_ra>
